<compile_context>
chip_gen: v6e
topology: v6e:2x2x1
jax: 0.10.0
libtpu: 0.0.40
codegen_flags: <defaults>
</compile_context>

<pallas_src>
import functools

import jax
import jax.numpy as jnp
from jax.experimental import pallas as pl
from jax.experimental.pallas import tpu as pltpu

# ----------------------------- config -------------------------------------
IMG = 16
PATCH = 4
IN_CH = 3
VIT_D = 32
VIT_DEPTH = 4
VIT_HEADS = 4
VIT_MLP = 64
EXTRACT_LAYERS = (0, 1, 2)          # activations = hidden_states[i + 1]

TXT_VOCAB = 32
TXT_LEN = 8
TXT_D = 32
TXT_DEPTH = 2
TXT_HEADS = 4
TXT_FFN = 64
PROJ_DIM = 16                       # text projection dim == clipseg projection_dim
PAD_ID = 0

REDUCE_DIM = 16
DEC_HEADS = 2
DEC_FFN = 32
COND_LAYER = 0                      # clipseg config.conditional_layer

_BF16 = jnp.bfloat16
_F32 = jnp.float32

_TOWER_PARAMS = pltpu.CompilerParams(
    dimension_semantics=("parallel", "arbitrary"),
    vmem_limit_bytes=48 * 1024 * 1024,
)


# --------------------------- in-kernel helpers ------------------------------
def _ln(x, g, b, eps):
    mu = jnp.mean(x, axis=-1, keepdims=True)
    xc = x - mu
    var = jnp.mean(xc * xc, axis=-1, keepdims=True)
    return xc * jax.lax.rsqrt(var + eps) * g + b


def _gelu(x):
    # TODO(synk): timm/BERT use exact erf GELU; tanh approximation used here.
    return jax.nn.gelu(x)


def _mha(x_in, wqkv_ref, bqkv_ref, wo_ref, bo_ref, ctx_scr, n_heads, mask_add):
    """Fused MHA on an (S, D) slab.

    One (D, 3D) QKV matmul, per-head softmax with the scale folded into q,
    each head's (S, Dh) context stored into ctx_scr (bf16, (S, D)) at its
    static column offset, then a single (S, D) @ (D, D) output projection.
    """
    S, D = x_in.shape
    Dh = D // n_heads
    scale = float(Dh) ** -0.5

    qkv = jnp.dot(x_in.astype(_BF16), wqkv_ref[...],
                  preferred_element_type=_F32) + bqkv_ref[...]          # (S, 3D) f32

    # TODO(synk): at real head counts (12) switch to lax.fori_loop over heads
    # so per-head (S,S)/(S,Dh) temporaries do not all stay live.
    for h in range(n_heads):
        q = qkv[:, h * Dh:(h + 1) * Dh] * scale                         # scale folded into q
        k = qkv[:, D + h * Dh: D + (h + 1) * Dh]
        v = qkv[:, 2 * D + h * Dh: 2 * D + (h + 1) * Dh]
        s = jax.lax.dot_general(q.astype(_BF16), k.astype(_BF16),
                                (((1,), (1,)), ((), ())),
                                preferred_element_type=_F32)            # (S, S)
        if mask_add is not None:
            s = s + mask_add                                            # (1, S) broadcast
        s = s - jnp.max(s, axis=-1, keepdims=True)
        p_ = jnp.exp(s)
        denom = jnp.sum(p_, axis=-1, keepdims=True)
        ctx = jnp.dot(p_.astype(_BF16), v.astype(_BF16),
                      preferred_element_type=_F32)                      # (S, Dh)
        # TODO(synk): approx reciprocal (EUP) drifts ~1e-3 rel. vs exact divide.
        ctx = ctx * pl.reciprocal(denom, approx=True)
        ctx_scr[:, h * Dh:(h + 1) * Dh] = ctx.astype(_BF16)

    return jnp.dot(ctx_scr[...], wo_ref[...],
                   preferred_element_type=_F32) + bo_ref[...]


# --------------------------- fused tower kernels ----------------------------
def _vit_tower_kernel(patch_ref, patch_w, patch_b, cls_pos,
                      ln1g, ln1b, wqkv, bqkv, wo, bo, ln2g, ln2b,
                      w1, b1, w2, b2, o_ref, x_scr, ctx_scr, *, n_heads, eps):
    """timm pre-LN ViT block at grid=(b, depth); depth==0 does patch embed."""
    d = pl.program_id(1)
    np_tokens = patch_ref.shape[0]

    @pl.when(d == 0)
    def _():
        # patch_embed (stride==kernel conv as im2col matmul) + cls/pos add
        emb = jnp.dot(patch_ref[...], patch_w[...],
                      preferred_element_type=_F32) + patch_b[...]       # (Np, D)
        x_scr[...] = cls_pos[...]                                       # cls + pos, pos
        x_scr[pl.ds(1, np_tokens), :] = x_scr[pl.ds(1, np_tokens), :] + emb

    x = x_scr[...]
    h = _ln(x, ln1g[...], ln1b[...], eps)
    x = x + _mha(h, wqkv, bqkv, wo, bo, ctx_scr, n_heads, None)
    h = _ln(x, ln2g[...], ln2b[...], eps)
    h = _gelu(jnp.dot(h.astype(_BF16), w1[...],
                      preferred_element_type=_F32) + b1[...])
    h = jnp.dot(h.astype(_BF16), w2[...], preferred_element_type=_F32) + b2[...]
    x = x + h
    x_scr[...] = x
    o_ref[...] = x.astype(o_ref.dtype)                                  # hidden_states[d]


def _bert_tower_kernel(x_ref, m_ref, embg, embb,
                       wqkv, bqkv, wo, bo, ln1g, ln1b,
                       w1, b1, w2, b2, ln2g, ln2b,
                       proj1, proj2, o_ref, x_scr, ctx_scr, *, n_heads, eps):
    """BERT post-LN block at grid=(b, depth); prologue=emb LN, epilogue=pool+proj."""
    d = pl.program_id(1)

    @pl.when(d == 0)
    def _():
        x_scr[...] = _ln(x_ref[...], embg[...], embb[...], eps)

    x = x_scr[...]
    mask_add = (m_ref[...] - 1.0) * 1e9                                 # 0 keep, -1e9 pad
    a = _mha(x, wqkv, bqkv, wo, bo, ctx_scr, n_heads, mask_add)
    x = _ln(x + a, ln1g[...], ln1b[...], eps)
    h = _gelu(jnp.dot(x.astype(_BF16), w1[...],
                      preferred_element_type=_F32) + b1[...])
    h = jnp.dot(h.astype(_BF16), w2[...], preferred_element_type=_F32) + b2[...]
    x = _ln(x + h, ln2g[...], ln2b[...], eps)
    x_scr[...] = x

    @pl.when(d == pl.num_programs(1) - 1)
    def _():
        pooled = x[0:1, :]                          # ClsPooler (cls_token_position=0)
        hh = _gelu(jnp.dot(pooled.astype(_BF16), proj1[...],
                           preferred_element_type=_F32))
        o_ref[...] = jnp.dot(hh.astype(_BF16), proj2[...],
                             preferred_element_type=_F32)


def _decoder_kernel(act_ref, red_w, red_b, cond_ref, film_w, film_b,
                    wqkv, bqkv, wo, bo, ln1g, ln1b,
                    w1, b1, w2, b2, ln2g, ln2b,
                    convt_w, convt_b, o_ref, out_scr, ctx_scr, *, n_heads, eps):
    """CLIPSeg decoder level at grid=(b, level): reduce + FiLM + post-LN ReLU
    layer; the conv-transpose head is fused into the last level."""
    l = pl.program_id(1)
    rd = out_scr.shape[-1]

    red = jnp.dot(act_ref[...], red_w[...],
                  preferred_element_type=_F32) + red_b[...]             # (S, RD)

    @pl.when(l == 0)
    def _():
        out_scr[...] = red

    @pl.when(l != 0)
    def _():
        out_scr[...] = out_scr[...] + red

    @pl.when(l == COND_LAYER)                                           # FiLM conditioning
    def _():
        film = jnp.dot(cond_ref[...].astype(_BF16), film_w[...],
                       preferred_element_type=_F32) + film_b[...]       # (1, 2*RD)
        out_scr[...] = film[:, :rd] * out_scr[...] + film[:, rd:]

    x = out_scr[...]
    a = _mha(x, wqkv, bqkv, wo, bo, ctx_scr, n_heads, None)
    x = _ln(x + a, ln1g[...], ln1b[...], eps)
    h = jnp.maximum(jnp.dot(x.astype(_BF16), w1[...],
                            preferred_element_type=_F32) + b1[...], 0.0)
    h = jnp.dot(h.astype(_BF16), w2[...], preferred_element_type=_F32) + b2[...]
    x = _ln(x + h, ln2g[...], ln2b[...], eps)
    out_scr[...] = x

    @pl.when(l == pl.num_programs(1) - 1)
    def _():
        tokens = x[1:, :]                                               # drop CLS token
        # ConvTranspose2d(reduce_dim, 1, PATCH, stride=PATCH) == per-token linear
        y = jnp.dot(tokens.astype(_BF16), convt_w[...],
                    preferred_element_type=_F32) + convt_b[...]         # (Np, P*P)
        o_ref[...] = y


# --------------------------- pallas_call wrappers ---------------------------
_VIT_ORDER = ("ln1_g", "ln1_b", "wqkv", "bqkv", "wo", "bo",
              "ln2_g", "ln2_b", "fc1_w", "fc1_b", "fc2_w", "fc2_b")
_POSTLN_ORDER = ("wqkv", "bqkv", "wo", "bo", "ln1_g", "ln1_b",
                 "fc1_w", "fc1_b", "fc2_w", "fc2_b", "ln2_g", "ln2_b")


def _rep_spec(arr):
    """Whole-array block, same block every grid step (shared weights)."""
    nd = arr.ndim
    return pl.BlockSpec(arr.shape, lambda b, d, _n=nd: (0,) * _n)


def _layer_spec(arr):
    """Leading layer axis selected by the second grid index (streamed weights)."""
    nd = arr.ndim
    return pl.BlockSpec((None,) + arr.shape[1:],
                        lambda b, d, _n=nd: (d,) + (0,) * (_n - 1))


def vit_tower(patches, p):
    B, Np, CPP = patches.shape
    S = Np + 1
    layer_args = [p["vit_blocks"][k] for k in _VIT_ORDER]
    kern = functools.partial(_vit_tower_kernel, n_heads=VIT_HEADS, eps=1e-6)
    return pl.pallas_call(
        kern,
        grid=(B, VIT_DEPTH),
        in_specs=[pl.BlockSpec((None, Np, CPP), lambda b, d: (b, 0, 0)),
                  _rep_spec(p["patch_w"]), _rep_spec(p["patch_b"]),
                  _rep_spec(p["cls_pos"])]
                 + [_layer_spec(a) for a in layer_args],
        out_specs=pl.BlockSpec((None, None, S, VIT_D), lambda b, d: (d, b, 0, 0)),
        out_shape=jax.ShapeDtypeStruct((VIT_DEPTH, B, S, VIT_D), _BF16),
        scratch_shapes=[pltpu.VMEM((S, VIT_D), _F32),     # resident activation
                        pltpu.VMEM((S, VIT_D), _BF16)],   # per-head ctx slab
        compiler_params=_TOWER_PARAMS,
    )(patches, p["patch_w"], p["patch_b"], p["cls_pos"], *layer_args)


def bert_tower(x_emb, mask, p):
    B, S, D = x_emb.shape
    layer_args = [p["bert_blocks"][k] for k in _POSTLN_ORDER]
    kern = functools.partial(_bert_tower_kernel, n_heads=TXT_HEADS, eps=1e-12)
    return pl.pallas_call(
        kern,
        grid=(B, TXT_DEPTH),
        in_specs=[pl.BlockSpec((None, S, D), lambda b, d: (b, 0, 0)),
                  pl.BlockSpec((None, 1, S), lambda b, d: (b, 0, 0)),
                  _rep_spec(p["emb_ln_g"]), _rep_spec(p["emb_ln_b"])]
                 + [_layer_spec(a) for a in layer_args]
                 + [_rep_spec(p["proj1_w"]), _rep_spec(p["proj2_w"])],
        out_specs=pl.BlockSpec((None, 1, PROJ_DIM), lambda b, d: (b, 0, 0)),
        out_shape=jax.ShapeDtypeStruct((B, 1, PROJ_DIM), _F32),
        scratch_shapes=[pltpu.VMEM((S, D), _F32),
                        pltpu.VMEM((S, D), _BF16)],
        compiler_params=_TOWER_PARAMS,
    )(x_emb, mask, p["emb_ln_g"], p["emb_ln_b"], *layer_args,
      p["proj1_w"], p["proj2_w"])


def decoder_tower(acts, cond, p):
    L, B, S, DV = acts.shape
    Np = S - 1
    PP = PATCH * PATCH
    layer_args = [p["dec_blocks"][k] for k in _POSTLN_ORDER]
    kern = functools.partial(_decoder_kernel, n_heads=DEC_HEADS, eps=1e-5)
    return pl.pallas_call(
        kern,
        grid=(B, L),
        in_specs=[pl.BlockSpec((None, None, S, DV), lambda b, l: (l, b, 0, 0)),
                  _layer_spec(p["red_w"]), _layer_spec(p["red_b"]),
                  pl.BlockSpec((None, 1, PROJ_DIM), lambda b, l: (b, 0, 0)),
                  _rep_spec(p["film_w"]), _rep_spec(p["film_b"])]
                 + [_layer_spec(a) for a in layer_args]
                 + [_rep_spec(p["convt_w"]), _rep_spec(p["convt_b"])],
        out_specs=pl.BlockSpec((None, Np, PP), lambda b, l: (b, 0, 0)),
        out_shape=jax.ShapeDtypeStruct((B, Np, PP), _F32),
        scratch_shapes=[pltpu.VMEM((S, REDUCE_DIM), _F32),
                        pltpu.VMEM((S, REDUCE_DIM), _BF16)],
        compiler_params=_TOWER_PARAMS,
    )(acts, p["red_w"], p["red_b"], cond, p["film_w"], p["film_b"],
      *layer_args, p["convt_w"], p["convt_b"])


# ------------------------------ parameters ----------------------------------
class KeyGen:
    def __init__(self, seed):
        self.key = jax.random.PRNGKey(seed)

    def __call__(self):
        self.key, k = jax.random.split(self.key)
        return k


def _stack(dicts):
    return {k: jnp.stack([d[k] for d in dicts], axis=0) for k in dicts[0]}


def init_params(seed=0):
    kg = KeyGen(seed)
    nrm = lambda shape, s=0.02: jax.random.normal(kg(), shape, _F32) * s
    g1 = lambda n: jnp.ones((1, n), _F32)
    z1 = lambda n: jnp.zeros((1, n), _F32)
    bf = lambda a: a.astype(_BF16)

    def mha(D):
        wq, wk, wv, wo = nrm((D, D)), nrm((D, D)), nrm((D, D)), nrm((D, D))
        return {"wqkv": bf(jnp.concatenate([wq, wk, wv], axis=1)),
                "bqkv": jnp.zeros((1, 3 * D), _F32),
                "wo": bf(wo), "bo": jnp.zeros((1, D), _F32)}

    Np = (IMG // PATCH) ** 2
    S = Np + 1
    p = {}

    # --- ViT trunk (biomedclip.visual.trunk) ---
    p["patch_w"] = bf(nrm((IN_CH * PATCH * PATCH, VIT_D)))   # im2col conv weight
    p["patch_b"] = nrm((1, VIT_D))
    cls_token = nrm((1, VIT_D))
    pos_embed = nrm((S, VIT_D))
    # cls token pre-added to position 0 of pos_embed (done once at init).
    p["cls_pos"] = pos_embed + jnp.concatenate(
        [cls_token, jnp.zeros((Np, VIT_D), _F32)], axis=0)
    vit_blocks = []
    for _ in range(VIT_DEPTH):
        vit_blocks.append({
            "ln1_g": g1(VIT_D), "ln1_b": z1(VIT_D),
            **mha(VIT_D),
            "ln2_g": g1(VIT_D), "ln2_b": z1(VIT_D),
            "fc1_w": bf(nrm((VIT_D, VIT_MLP))), "fc1_b": z1(VIT_MLP),
            "fc2_w": bf(nrm((VIT_MLP, VIT_D))), "fc2_b": z1(VIT_D),
        })
    p["vit_blocks"] = _stack(vit_blocks)
    # Final ViT norm + visual projection head feed only pooled_output, which
    # BiomedCLIPSeg.forward discards -> dead compute, skipped.

    # --- BERT text tower (biomedclip.text) ---
    p["tok_emb"] = nrm((TXT_VOCAB, TXT_D))
    p["pos_emb"] = nrm((TXT_LEN, TXT_D))
    p["emb_ln_g"] = g1(TXT_D)
    p["emb_ln_b"] = z1(TXT_D)
    bert_blocks = []
    for _ in range(TXT_DEPTH):
        bert_blocks.append({
            **mha(TXT_D),
            "ln1_g": g1(TXT_D), "ln1_b": z1(TXT_D),
            "fc1_w": bf(nrm((TXT_D, TXT_FFN))), "fc1_b": z1(TXT_FFN),
            "fc2_w": bf(nrm((TXT_FFN, TXT_D))), "fc2_b": z1(TXT_D),
            "ln2_g": g1(TXT_D), "ln2_b": z1(TXT_D),
        })
    p["bert_blocks"] = _stack(bert_blocks)
    hidden = (TXT_D + PROJ_DIM) // 2                 # open_clip 'mlp' proj (bias-free)
    p["proj1_w"] = bf(nrm((TXT_D, hidden)))
    p["proj2_w"] = bf(nrm((hidden, PROJ_DIM)))

    # --- CLIPSeg decoder (rand_init_decoder=True) ---
    p["film_w"] = bf(jnp.concatenate([nrm((PROJ_DIM, REDUCE_DIM)),
                                      nrm((PROJ_DIM, REDUCE_DIM))], axis=1))
    p["film_b"] = jnp.zeros((1, 2 * REDUCE_DIM), _F32)
    L = len(EXTRACT_LAYERS)
    p["red_w"] = bf(jnp.stack([nrm((VIT_D, REDUCE_DIM)) for _ in range(L)], 0))
    p["red_b"] = jnp.zeros((L, 1, REDUCE_DIM), _F32)
    dec_blocks = []
    for _ in range(L):
        dec_blocks.append({
            **mha(REDUCE_DIM),
            "ln1_g": g1(REDUCE_DIM), "ln1_b": z1(REDUCE_DIM),
            "fc1_w": bf(nrm((REDUCE_DIM, DEC_FFN))), "fc1_b": z1(DEC_FFN),
            "fc2_w": bf(nrm((DEC_FFN, REDUCE_DIM))), "fc2_b": z1(REDUCE_DIM),
            "ln2_g": g1(REDUCE_DIM), "ln2_b": z1(REDUCE_DIM),
        })
    p["dec_blocks"] = _stack(dec_blocks)
    p["convt_w"] = bf(nrm((REDUCE_DIM, PATCH * PATCH)))
    p["convt_b"] = jnp.broadcast_to(nrm((1,)), (1, PATCH * PATCH)).astype(_F32)
    return p


# ------------------------------ forward pass --------------------------------
def biomedclipseg_forward(pixel_values, input_ids, attention_mask, params):
    B = pixel_values.shape[0]
    Hp = Wp = IMG // PATCH
    Np = Hp * Wp

    # ---- ViT trunk (patch embed folded into the tower kernel) ----
    patches = pixel_values.reshape(B, IN_CH, Hp, PATCH, Wp, PATCH)
    patches = patches.transpose(0, 2, 4, 1, 3, 5).reshape(
        B, Np, IN_CH * PATCH * PATCH)
    hidden = vit_tower(patches.astype(_BF16), params)       # (depth, B, S, D) bf16

    # activations = hidden_states[i + 1], deepest level first (CLIPSeg order)
    order = [i + 1 for i in EXTRACT_LAYERS][::-1]
    acts = jnp.stack([hidden[i] for i in order], axis=0)    # (L, B, S, D) bf16

    # ---- BERT text tower -> conditional embeddings ----
    S_txt = input_ids.shape[1]
    x_emb = (jnp.take(params["tok_emb"], input_ids, axis=0)
             + params["pos_emb"][None, :S_txt])
    mask = attention_mask.astype(_F32).reshape(B, 1, S_txt)
    cond = bert_tower(x_emb, mask, params)                  # (B, 1, PROJ_DIM)

    # ---- CLIPSeg decoder ----
    y = decoder_tower(acts, cond, params)                   # (B, Np, P*P)
    y = y.reshape(B, Hp, Wp, PATCH, PATCH).transpose(0, 1, 3, 2, 4)
    logits = y.reshape(B, Hp * PATCH, Wp * PATCH)
    return logits[:, None]                                  # (B, 1, H, W)


# ---------------------------------- main -------------------------------------
if __name__ == "__main__":
    params = init_params(seed=0)

    key = jax.random.PRNGKey(0)
    k_img, k_txt = jax.random.split(key)
    pixel_values = jax.random.normal(k_img, (2, IN_CH, IMG, IMG), _F32)
    input_ids = jax.random.randint(k_txt, (2, TXT_LEN), 1, TXT_VOCAB).astype(jnp.int32)
    input_ids = input_ids.at[1, -2:].set(PAD_ID)            # a couple of pad tokens
    attention_mask = (input_ids != PAD_ID).astype(jnp.int32)

    fwd = jax.jit(biomedclipseg_forward)
    logits = fwd(pixel_values, input_ids, attention_mask, params)
    jax.block_until_ready(logits)

    assert logits.shape == (2, 1, IMG, IMG), logits.shape
    assert bool(jnp.all(jnp.isfinite(logits)))
    print("KERNEL_OK")
</pallas_src>

<mosaic_0001>
module attributes {stable_mosaic.version = 11 : i64} {
  func.func @_vit_tower_kernel(%arg0: i32, %arg1: i32, %arg2: memref<1x16x48xbf16, #tpu.memory_space<vmem>>, %arg3: memref<48x32xbf16, #tpu.memory_space<vmem>>, %arg4: memref<1x32xf32, #tpu.memory_space<vmem>>, %arg5: memref<17x32xf32, #tpu.memory_space<vmem>>, %arg6: memref<1x1x32xf32, #tpu.memory_space<vmem>>, %arg7: memref<1x1x32xf32, #tpu.memory_space<vmem>>, %arg8: memref<1x32x96xbf16, #tpu.memory_space<vmem>>, %arg9: memref<1x1x96xf32, #tpu.memory_space<vmem>>, %arg10: memref<1x32x32xbf16, #tpu.memory_space<vmem>>, %arg11: memref<1x1x32xf32, #tpu.memory_space<vmem>>, %arg12: memref<1x1x32xf32, #tpu.memory_space<vmem>>, %arg13: memref<1x1x32xf32, #tpu.memory_space<vmem>>, %arg14: memref<1x32x64xbf16, #tpu.memory_space<vmem>>, %arg15: memref<1x1x64xf32, #tpu.memory_space<vmem>>, %arg16: memref<1x64x32xbf16, #tpu.memory_space<vmem>>, %arg17: memref<1x1x32xf32, #tpu.memory_space<vmem>>, %arg18: memref<1x1x17x32xbf16, #tpu.memory_space<vmem>>, %arg19: memref<17x32xf32, #tpu.memory_space<vmem>>, %arg20: memref<17x32xbf16, #tpu.memory_space<vmem>>) attributes {dimension_semantics = [#tpu.dimension_semantics<parallel>, #tpu.dimension_semantics<arbitrary>], iteration_bounds = array<i64: 2, 4>, scalar_prefetch = 0 : i64, scratch_operands = 2 : i64, tpu.core_type = #tpu.core_type<tc>, window_params = [{transform_indices = @transform_0, window_bounds = array<i64: 1, 16, 48>}, {pipeline_mode = #tpu.pipeline_mode<synchronous>, transform_indices = @transform_1, window_bounds = array<i64: 48, 32>}, {pipeline_mode = #tpu.pipeline_mode<synchronous>, transform_indices = @transform_2, window_bounds = array<i64: 1, 32>}, {pipeline_mode = #tpu.pipeline_mode<synchronous>, transform_indices = @transform_3, window_bounds = array<i64: 17, 32>}, {transform_indices = @transform_4, window_bounds = array<i64: 1, 1, 32>}, {transform_indices = @transform_5, window_bounds = array<i64: 1, 1, 32>}, {transform_indices = @transform_6, window_bounds = array<i64: 1, 32, 96>}, {transform_indices = @transform_7, window_bounds = array<i64: 1, 1, 96>}, {transform_indices = @transform_8, window_bounds = array<i64: 1, 32, 32>}, {transform_indices = @transform_9, window_bounds = array<i64: 1, 1, 32>}, {transform_indices = @transform_10, window_bounds = array<i64: 1, 1, 32>}, {transform_indices = @transform_11, window_bounds = array<i64: 1, 1, 32>}, {transform_indices = @transform_12, window_bounds = array<i64: 1, 32, 64>}, {transform_indices = @transform_13, window_bounds = array<i64: 1, 1, 64>}, {transform_indices = @transform_14, window_bounds = array<i64: 1, 64, 32>}, {transform_indices = @transform_15, window_bounds = array<i64: 1, 1, 32>}, {transform_indices = @transform_16, window_bounds = array<i64: 1, 1, 17, 32>}]} {
    %c0_i32 = arith.constant 0 : i32
    %0 = arith.cmpi eq, %arg1, %c0_i32 : i32
    %1 = arith.extui %0 : i1 to i32
    %c0_i32_0 = arith.constant 0 : i32
    %2 = arith.cmpi ne, %1, %c0_i32_0 : i32
    scf.if %2 {
      %c0_88 = arith.constant 0 : index
      %c0_89 = arith.constant 0 : index
      %c0_90 = arith.constant 0 : index
      %196 = vector.load %arg2[%c0_88, %c0_89, %c0_90] : memref<1x16x48xbf16, #tpu.memory_space<vmem>>, vector<1x16x48xbf16>
      %197 = vector.shape_cast %196 : vector<1x16x48xbf16> to vector<16x48xbf16>
      %c0_91 = arith.constant 0 : index
      %c0_92 = arith.constant 0 : index
      %198 = vector.load %arg3[%c0_91, %c0_92] : memref<48x32xbf16, #tpu.memory_space<vmem>>, vector<48x32xbf16>
      %cst_93 = arith.constant dense<0.000000e+00> : vector<16x32xf32>
      %199 = tpu.matmul %197, %198, %cst_93 {dimension_numbers = #tpu.dot_dimension_numbers<[1], [0], [0], [1], [0, 0, 1, 1], [], []>} : vector<16x48xbf16>, vector<48x32xbf16>, vector<16x32xf32> -> vector<16x32xf32>
      %c0_94 = arith.constant 0 : index
      %c0_95 = arith.constant 0 : index
      %200 = vector.load %arg4[%c0_94, %c0_95] : memref<1x32xf32, #tpu.memory_space<vmem>>, vector<1x32xf32>
      %201 = vector.broadcast %200 : vector<1x32xf32> to vector<16x32xf32>
      %202 = arith.addf %199, %201 : vector<16x32xf32>
      %c0_96 = arith.constant 0 : index
      %c0_97 = arith.constant 0 : index
      %203 = vector.load %arg5[%c0_96, %c0_97] : memref<17x32xf32, #tpu.memory_space<vmem>>, vector<17x32xf32>
      %c0_98 = arith.constant 0 : index
      %c0_99 = arith.constant 0 : index
      %204 = vector.load %arg19[%c0_98, %c0_99] : memref<17x32xf32, #tpu.memory_space<vmem>>, vector<17x32xf32>
      tpu.vector_store %arg19[%c0_98, %c0_99], %203 {strides = array<i32>} : memref<17x32xf32, #tpu.memory_space<vmem>>, vector<17x32xf32>,
      %c1 = arith.constant 1 : index
      %c0_100 = arith.constant 0 : index
      %205 = vector.load %arg19[%c1, %c0_100] : memref<17x32xf32, #tpu.memory_space<vmem>>, vector<16x32xf32>
      %206 = arith.addf %205, %202 : vector<16x32xf32>
      %c1_101 = arith.constant 1 : index
      %c0_102 = arith.constant 0 : index
      %207 = vector.load %arg19[%c1_101, %c0_102] : memref<17x32xf32, #tpu.memory_space<vmem>>, vector<16x32xf32>
      tpu.vector_store %arg19[%c1_101, %c0_102], %206 {strides = array<i32>} : memref<17x32xf32, #tpu.memory_space<vmem>>, vector<16x32xf32>,
    } else {
    }
    %c0 = arith.constant 0 : index
    %c0_1 = arith.constant 0 : index
    %3 = vector.load %arg19[%c0, %c0_1] : memref<17x32xf32, #tpu.memory_space<vmem>>, vector<17x32xf32>
    %c0_2 = arith.constant 0 : index
    %c0_3 = arith.constant 0 : index
    %c0_4 = arith.constant 0 : index
    %4 = vector.load %arg6[%c0_2, %c0_3, %c0_4] : memref<1x1x32xf32, #tpu.memory_space<vmem>>, vector<1x1x32xf32>
    %5 = vector.shape_cast %4 : vector<1x1x32xf32> to vector<1x32xf32>
    %c0_5 = arith.constant 0 : index
    %c0_6 = arith.constant 0 : index
    %c0_7 = arith.constant 0 : index
    %6 = vector.load %arg7[%c0_5, %c0_6, %c0_7] : memref<1x1x32xf32, #tpu.memory_space<vmem>>, vector<1x1x32xf32>
    %7 = vector.shape_cast %6 : vector<1x1x32xf32> to vector<1x32xf32>
    %cst = arith.constant dense<0.000000e+00> : vector<17xf32>
    %8 = vector.multi_reduction <add>, %3, %cst [1] : vector<17x32xf32> to vector<17xf32>
    %9 = vector.shape_cast %8 : vector<17xf32> to vector<17x1xf32>
    %cst_8 = arith.constant 3.200000e+01 : f32
    %10 = vector.broadcast %cst_8 : f32 to vector<17x1xf32>
    %11 = arith.divf %9, %10 : vector<17x1xf32>
    %12 = vector.broadcast %11 : vector<17x1xf32> to vector<17x32xf32>
    %13 = arith.subf %3, %12 : vector<17x32xf32>
    %14 = arith.mulf %13, %13 : vector<17x32xf32>
    %cst_9 = arith.constant dense<0.000000e+00> : vector<17xf32>
    %15 = vector.multi_reduction <add>, %14, %cst_9 [1] : vector<17x32xf32> to vector<17xf32>
    %16 = vector.shape_cast %15 : vector<17xf32> to vector<17x1xf32>
    %cst_10 = arith.constant 3.200000e+01 : f32
    %17 = vector.broadcast %cst_10 : f32 to vector<17x1xf32>
    %18 = arith.divf %16, %17 : vector<17x1xf32>
    %cst_11 = arith.constant 9.99999997E-7 : f32
    %19 = vector.broadcast %cst_11 : f32 to vector<17x1xf32>
    %20 = arith.addf %18, %19 : vector<17x1xf32>
    %21 = math.rsqrt %20 : vector<17x1xf32>
    %22 = vector.broadcast %21 : vector<17x1xf32> to vector<17x32xf32>
    %23 = arith.mulf %13, %22 : vector<17x32xf32>
    %24 = vector.broadcast %5 : vector<1x32xf32> to vector<17x32xf32>
    %25 = arith.mulf %23, %24 : vector<17x32xf32>
    %26 = vector.broadcast %7 : vector<1x32xf32> to vector<17x32xf32>
    %27 = arith.addf %25, %26 : vector<17x32xf32>
    %28 = arith.truncf %27 : vector<17x32xf32> to vector<17x32xbf16>
    %c0_12 = arith.constant 0 : index
    %c0_13 = arith.constant 0 : index
    %c0_14 = arith.constant 0 : index
    %29 = vector.load %arg8[%c0_12, %c0_13, %c0_14] : memref<1x32x96xbf16, #tpu.memory_space<vmem>>, vector<1x32x96xbf16>
    %30 = vector.shape_cast %29 : vector<1x32x96xbf16> to vector<32x96xbf16>
    %cst_15 = arith.constant dense<0.000000e+00> : vector<17x96xf32>
    %31 = tpu.matmul %28, %30, %cst_15 {dimension_numbers = #tpu.dot_dimension_numbers<[1], [0], [0], [1], [0, 0, 1, 1], [], []>} : vector<17x32xbf16>, vector<32x96xbf16>, vector<17x96xf32> -> vector<17x96xf32>
    %c0_16 = arith.constant 0 : index
    %c0_17 = arith.constant 0 : index
    %c0_18 = arith.constant 0 : index
    %32 = vector.load %arg9[%c0_16, %c0_17, %c0_18] : memref<1x1x96xf32, #tpu.memory_space<vmem>>, vector<1x1x96xf32>
    %33 = vector.shape_cast %32 : vector<1x1x96xf32> to vector<1x96xf32>
    %34 = vector.broadcast %33 : vector<1x96xf32> to vector<17x96xf32>
    %35 = arith.addf %31, %34 : vector<17x96xf32>
    %36 = vector.extract_strided_slice %35 {offsets = [0, 0], sizes = [17, 8], strides = [1, 1]} : vector<17x96xf32> to vector<17x8xf32>
    %cst_19 = arith.constant 0.353553385 : f32
    %37 = vector.broadcast %cst_19 : f32 to vector<17x8xf32>
    %38 = arith.mulf %36, %37 : vector<17x8xf32>
    %39 = vector.extract_strided_slice %35 {offsets = [0, 32], sizes = [17, 8], strides = [1, 1]} : vector<17x96xf32> to vector<17x8xf32>
    %40 = vector.extract_strided_slice %35 {offsets = [0, 64], sizes = [17, 8], strides = [1, 1]} : vector<17x96xf32> to vector<17x8xf32>
    %41 = arith.truncf %38 : vector<17x8xf32> to vector<17x8xbf16>
    %42 = arith.truncf %39 : vector<17x8xf32> to vector<17x8xbf16>
    %cst_20 = arith.constant dense<0.000000e+00> : vector<17x17xf32>
    %43 = tpu.matmul %41, %42, %cst_20 {dimension_numbers = #tpu.dot_dimension_numbers<[1], [1], [0], [0], [0, 0, 1, 0], [], []>} : vector<17x8xbf16>, vector<17x8xbf16>, vector<17x17xf32> -> vector<17x17xf32>
    %cst_21 = arith.constant dense<0xFF800000> : vector<17xf32>
    %44 = vector.multi_reduction <maximumf>, %43, %cst_21 [1] : vector<17x17xf32> to vector<17xf32>
    %45 = vector.shape_cast %44 : vector<17xf32> to vector<17x1xf32>
    %46 = vector.broadcast %45 : vector<17x1xf32> to vector<17x17xf32>
    %47 = arith.subf %43, %46 : vector<17x17xf32>
    %48 = math.exp %47 : vector<17x17xf32>
    %cst_22 = arith.constant dense<0.000000e+00> : vector<17xf32>
    %49 = vector.multi_reduction <add>, %48, %cst_22 [1] : vector<17x17xf32> to vector<17xf32>
    %50 = vector.shape_cast %49 : vector<17xf32> to vector<17x1xf32>
    %51 = arith.truncf %48 : vector<17x17xf32> to vector<17x17xbf16>
    %52 = arith.truncf %40 : vector<17x8xf32> to vector<17x8xbf16>
    %cst_23 = arith.constant dense<0.000000e+00> : vector<17x8xf32>
    %53 = tpu.matmul %51, %52, %cst_23 {dimension_numbers = #tpu.dot_dimension_numbers<[1], [0], [0], [1], [0, 0, 1, 1], [], []>} : vector<17x17xbf16>, vector<17x8xbf16>, vector<17x8xf32> -> vector<17x8xf32>
    %54 = tpu.reciprocal %50 {approx = true} : vector<17x1xf32> -> vector<17x1xf32>
    %55 = vector.broadcast %54 : vector<17x1xf32> to vector<17x8xf32>
    %56 = arith.mulf %53, %55 : vector<17x8xf32>
    %57 = arith.truncf %56 : vector<17x8xf32> to vector<17x8xbf16>
    %c0_24 = arith.constant 0 : index
    %c0_25 = arith.constant 0 : index
    %58 = vector.load %arg20[%c0_24, %c0_25] : memref<17x32xbf16, #tpu.memory_space<vmem>>, vector<17x8xbf16>
    tpu.vector_store %arg20[%c0_24, %c0_25], %57 {strides = array<i32>} : memref<17x32xbf16, #tpu.memory_space<vmem>>, vector<17x8xbf16>,
    %59 = vector.extract_strided_slice %35 {offsets = [0, 8], sizes = [17, 8], strides = [1, 1]} : vector<17x96xf32> to vector<17x8xf32>
    %cst_26 = arith.constant 0.353553385 : f32
    %60 = vector.broadcast %cst_26 : f32 to vector<17x8xf32>
    %61 = arith.mulf %59, %60 : vector<17x8xf32>
    %62 = vector.extract_strided_slice %35 {offsets = [0, 40], sizes = [17, 8], strides = [1, 1]} : vector<17x96xf32> to vector<17x8xf32>
    %63 = vector.extract_strided_slice %35 {offsets = [0, 72], sizes = [17, 8], strides = [1, 1]} : vector<17x96xf32> to vector<17x8xf32>
    %64 = arith.truncf %61 : vector<17x8xf32> to vector<17x8xbf16>
    %65 = arith.truncf %62 : vector<17x8xf32> to vector<17x8xbf16>
    %cst_27 = arith.constant dense<0.000000e+00> : vector<17x17xf32>
    %66 = tpu.matmul %64, %65, %cst_27 {dimension_numbers = #tpu.dot_dimension_numbers<[1], [1], [0], [0], [0, 0, 1, 0], [], []>} : vector<17x8xbf16>, vector<17x8xbf16>, vector<17x17xf32> -> vector<17x17xf32>
    %cst_28 = arith.constant dense<0xFF800000> : vector<17xf32>
    %67 = vector.multi_reduction <maximumf>, %66, %cst_28 [1] : vector<17x17xf32> to vector<17xf32>
    %68 = vector.shape_cast %67 : vector<17xf32> to vector<17x1xf32>
    %69 = vector.broadcast %68 : vector<17x1xf32> to vector<17x17xf32>
    %70 = arith.subf %66, %69 : vector<17x17xf32>
    %71 = math.exp %70 : vector<17x17xf32>
    %cst_29 = arith.constant dense<0.000000e+00> : vector<17xf32>
    %72 = vector.multi_reduction <add>, %71, %cst_29 [1] : vector<17x17xf32> to vector<17xf32>
    %73 = vector.shape_cast %72 : vector<17xf32> to vector<17x1xf32>
    %74 = arith.truncf %71 : vector<17x17xf32> to vector<17x17xbf16>
    %75 = arith.truncf %63 : vector<17x8xf32> to vector<17x8xbf16>
    %cst_30 = arith.constant dense<0.000000e+00> : vector<17x8xf32>
    %76 = tpu.matmul %74, %75, %cst_30 {dimension_numbers = #tpu.dot_dimension_numbers<[1], [0], [0], [1], [0, 0, 1, 1], [], []>} : vector<17x17xbf16>, vector<17x8xbf16>, vector<17x8xf32> -> vector<17x8xf32>
    %77 = tpu.reciprocal %73 {approx = true} : vector<17x1xf32> -> vector<17x1xf32>
    %78 = vector.broadcast %77 : vector<17x1xf32> to vector<17x8xf32>
    %79 = arith.mulf %76, %78 : vector<17x8xf32>
    %80 = arith.truncf %79 : vector<17x8xf32> to vector<17x8xbf16>
    %c0_31 = arith.constant 0 : index
    %c8 = arith.constant 8 : index
    %81 = vector.load %arg20[%c0_31, %c8] : memref<17x32xbf16, #tpu.memory_space<vmem>>, vector<17x8xbf16>
    tpu.vector_store %arg20[%c0_31, %c8], %80 {strides = array<i32>} : memref<17x32xbf16, #tpu.memory_space<vmem>>, vector<17x8xbf16>,
    %82 = vector.extract_strided_slice %35 {offsets = [0, 16], sizes = [17, 8], strides = [1, 1]} : vector<17x96xf32> to vector<17x8xf32>
    %cst_32 = arith.constant 0.353553385 : f32
    %83 = vector.broadcast %cst_32 : f32 to vector<17x8xf32>
    %84 = arith.mulf %82, %83 : vector<17x8xf32>
    %85 = vector.extract_strided_slice %35 {offsets = [0, 48], sizes = [17, 8], strides = [1, 1]} : vector<17x96xf32> to vector<17x8xf32>
    %86 = vector.extract_strided_slice %35 {offsets = [0, 80], sizes = [17, 8], strides = [1, 1]} : vector<17x96xf32> to vector<17x8xf32>
    %87 = arith.truncf %84 : vector<17x8xf32> to vector<17x8xbf16>
    %88 = arith.truncf %85 : vector<17x8xf32> to vector<17x8xbf16>
    %cst_33 = arith.constant dense<0.000000e+00> : vector<17x17xf32>
    %89 = tpu.matmul %87, %88, %cst_33 {dimension_numbers = #tpu.dot_dimension_numbers<[1], [1], [0], [0], [0, 0, 1, 0], [], []>} : vector<17x8xbf16>, vector<17x8xbf16>, vector<17x17xf32> -> vector<17x17xf32>
    %cst_34 = arith.constant dense<0xFF800000> : vector<17xf32>
    %90 = vector.multi_reduction <maximumf>, %89, %cst_34 [1] : vector<17x17xf32> to vector<17xf32>
    %91 = vector.shape_cast %90 : vector<17xf32> to vector<17x1xf32>
    %92 = vector.broadcast %91 : vector<17x1xf32> to vector<17x17xf32>
    %93 = arith.subf %89, %92 : vector<17x17xf32>
    %94 = math.exp %93 : vector<17x17xf32>
    %cst_35 = arith.constant dense<0.000000e+00> : vector<17xf32>
    %95 = vector.multi_reduction <add>, %94, %cst_35 [1] : vector<17x17xf32> to vector<17xf32>
    %96 = vector.shape_cast %95 : vector<17xf32> to vector<17x1xf32>
    %97 = arith.truncf %94 : vector<17x17xf32> to vector<17x17xbf16>
    %98 = arith.truncf %86 : vector<17x8xf32> to vector<17x8xbf16>
    %cst_36 = arith.constant dense<0.000000e+00> : vector<17x8xf32>
    %99 = tpu.matmul %97, %98, %cst_36 {dimension_numbers = #tpu.dot_dimension_numbers<[1], [0], [0], [1], [0, 0, 1, 1], [], []>} : vector<17x17xbf16>, vector<17x8xbf16>, vector<17x8xf32> -> vector<17x8xf32>
    %100 = tpu.reciprocal %96 {approx = true} : vector<17x1xf32> -> vector<17x1xf32>
    %101 = vector.broadcast %100 : vector<17x1xf32> to vector<17x8xf32>
    %102 = arith.mulf %99, %101 : vector<17x8xf32>
    %103 = arith.truncf %102 : vector<17x8xf32> to vector<17x8xbf16>
    %c0_37 = arith.constant 0 : index
    %c16 = arith.constant 16 : index
    %104 = vector.load %arg20[%c0_37, %c16] : memref<17x32xbf16, #tpu.memory_space<vmem>>, vector<17x8xbf16>
    tpu.vector_store %arg20[%c0_37, %c16], %103 {strides = array<i32>} : memref<17x32xbf16, #tpu.memory_space<vmem>>, vector<17x8xbf16>,
    %105 = vector.extract_strided_slice %35 {offsets = [0, 24], sizes = [17, 8], strides = [1, 1]} : vector<17x96xf32> to vector<17x8xf32>
    %cst_38 = arith.constant 0.353553385 : f32
    %106 = vector.broadcast %cst_38 : f32 to vector<17x8xf32>
    %107 = arith.mulf %105, %106 : vector<17x8xf32>
    %108 = vector.extract_strided_slice %35 {offsets = [0, 56], sizes = [17, 8], strides = [1, 1]} : vector<17x96xf32> to vector<17x8xf32>
    %109 = vector.extract_strided_slice %35 {offsets = [0, 88], sizes = [17, 8], strides = [1, 1]} : vector<17x96xf32> to vector<17x8xf32>
    %110 = arith.truncf %107 : vector<17x8xf32> to vector<17x8xbf16>
    %111 = arith.truncf %108 : vector<17x8xf32> to vector<17x8xbf16>
    %cst_39 = arith.constant dense<0.000000e+00> : vector<17x17xf32>
    %112 = tpu.matmul %110, %111, %cst_39 {dimension_numbers = #tpu.dot_dimension_numbers<[1], [1], [0], [0], [0, 0, 1, 0], [], []>} : vector<17x8xbf16>, vector<17x8xbf16>, vector<17x17xf32> -> vector<17x17xf32>
    %cst_40 = arith.constant dense<0xFF800000> : vector<17xf32>
    %113 = vector.multi_reduction <maximumf>, %112, %cst_40 [1] : vector<17x17xf32> to vector<17xf32>
    %114 = vector.shape_cast %113 : vector<17xf32> to vector<17x1xf32>
    %115 = vector.broadcast %114 : vector<17x1xf32> to vector<17x17xf32>
    %116 = arith.subf %112, %115 : vector<17x17xf32>
    %117 = math.exp %116 : vector<17x17xf32>
    %cst_41 = arith.constant dense<0.000000e+00> : vector<17xf32>
    %118 = vector.multi_reduction <add>, %117, %cst_41 [1] : vector<17x17xf32> to vector<17xf32>
    %119 = vector.shape_cast %118 : vector<17xf32> to vector<17x1xf32>
    %120 = arith.truncf %117 : vector<17x17xf32> to vector<17x17xbf16>
    %121 = arith.truncf %109 : vector<17x8xf32> to vector<17x8xbf16>
    %cst_42 = arith.constant dense<0.000000e+00> : vector<17x8xf32>
    %122 = tpu.matmul %120, %121, %cst_42 {dimension_numbers = #tpu.dot_dimension_numbers<[1], [0], [0], [1], [0, 0, 1, 1], [], []>} : vector<17x17xbf16>, vector<17x8xbf16>, vector<17x8xf32> -> vector<17x8xf32>
    %123 = tpu.reciprocal %119 {approx = true} : vector<17x1xf32> -> vector<17x1xf32>
    %124 = vector.broadcast %123 : vector<17x1xf32> to vector<17x8xf32>
    %125 = arith.mulf %122, %124 : vector<17x8xf32>
    %126 = arith.truncf %125 : vector<17x8xf32> to vector<17x8xbf16>
    %c0_43 = arith.constant 0 : index
    %c24 = arith.constant 24 : index
    %127 = vector.load %arg20[%c0_43, %c24] : memref<17x32xbf16, #tpu.memory_space<vmem>>, vector<17x8xbf16>
    tpu.vector_store %arg20[%c0_43, %c24], %126 {strides = array<i32>} : memref<17x32xbf16, #tpu.memory_space<vmem>>, vector<17x8xbf16>,
    %c0_44 = arith.constant 0 : index
    %c0_45 = arith.constant 0 : index
    %128 = vector.load %arg20[%c0_44, %c0_45] : memref<17x32xbf16, #tpu.memory_space<vmem>>, vector<17x32xbf16>
    %c0_46 = arith.constant 0 : index
    %c0_47 = arith.constant 0 : index
    %c0_48 = arith.constant 0 : index
    %129 = vector.load %arg10[%c0_46, %c0_47, %c0_48] : memref<1x32x32xbf16, #tpu.memory_space<vmem>>, vector<1x32x32xbf16>
    %130 = vector.shape_cast %129 : vector<1x32x32xbf16> to vector<32x32xbf16>
    %cst_49 = arith.constant dense<0.000000e+00> : vector<17x32xf32>
    %131 = tpu.matmul %128, %130, %cst_49 {dimension_numbers = #tpu.dot_dimension_numbers<[1], [0], [0], [1], [0, 0, 1, 1], [], []>} : vector<17x32xbf16>, vector<32x32xbf16>, vector<17x32xf32> -> vector<17x32xf32>
    %c0_50 = arith.constant 0 : index
    %c0_51 = arith.constant 0 : index
    %c0_52 = arith.constant 0 : index
    %132 = vector.load %arg11[%c0_50, %c0_51, %c0_52] : memref<1x1x32xf32, #tpu.memory_space<vmem>>, vector<1x1x32xf32>
    %133 = vector.shape_cast %132 : vector<1x1x32xf32> to vector<1x32xf32>
    %134 = vector.broadcast %133 : vector<1x32xf32> to vector<17x32xf32>
    %135 = arith.addf %131, %134 : vector<17x32xf32>
    %136 = arith.addf %3, %135 : vector<17x32xf32>
    %c0_53 = arith.constant 0 : index
    %c0_54 = arith.constant 0 : index
    %c0_55 = arith.constant 0 : index
    %137 = vector.load %arg12[%c0_53, %c0_54, %c0_55] : memref<1x1x32xf32, #tpu.memory_space<vmem>>, vector<1x1x32xf32>
    %138 = vector.shape_cast %137 : vector<1x1x32xf32> to vector<1x32xf32>
    %c0_56 = arith.constant 0 : index
    %c0_57 = arith.constant 0 : index
    %c0_58 = arith.constant 0 : index
    %139 = vector.load %arg13[%c0_56, %c0_57, %c0_58] : memref<1x1x32xf32, #tpu.memory_space<vmem>>, vector<1x1x32xf32>
    %140 = vector.shape_cast %139 : vector<1x1x32xf32> to vector<1x32xf32>
    %cst_59 = arith.constant dense<0.000000e+00> : vector<17xf32>
    %141 = vector.multi_reduction <add>, %136, %cst_59 [1] : vector<17x32xf32> to vector<17xf32>
    %142 = vector.shape_cast %141 : vector<17xf32> to vector<17x1xf32>
    %cst_60 = arith.constant 3.200000e+01 : f32
    %143 = vector.broadcast %cst_60 : f32 to vector<17x1xf32>
    %144 = arith.divf %142, %143 : vector<17x1xf32>
    %145 = vector.broadcast %144 : vector<17x1xf32> to vector<17x32xf32>
    %146 = arith.subf %136, %145 : vector<17x32xf32>
    %147 = arith.mulf %146, %146 : vector<17x32xf32>
    %cst_61 = arith.constant dense<0.000000e+00> : vector<17xf32>
    %148 = vector.multi_reduction <add>, %147, %cst_61 [1] : vector<17x32xf32> to vector<17xf32>
    %149 = vector.shape_cast %148 : vector<17xf32> to vector<17x1xf32>
    %cst_62 = arith.constant 3.200000e+01 : f32
    %150 = vector.broadcast %cst_62 : f32 to vector<17x1xf32>
    %151 = arith.divf %149, %150 : vector<17x1xf32>
    %cst_63 = arith.constant 9.99999997E-7 : f32
    %152 = vector.broadcast %cst_63 : f32 to vector<17x1xf32>
    %153 = arith.addf %151, %152 : vector<17x1xf32>
    %154 = math.rsqrt %153 : vector<17x1xf32>
    %155 = vector.broadcast %154 : vector<17x1xf32> to vector<17x32xf32>
    %156 = arith.mulf %146, %155 : vector<17x32xf32>
    %157 = vector.broadcast %138 : vector<1x32xf32> to vector<17x32xf32>
    %158 = arith.mulf %156, %157 : vector<17x32xf32>
    %159 = vector.broadcast %140 : vector<1x32xf32> to vector<17x32xf32>
    %160 = arith.addf %158, %159 : vector<17x32xf32>
    %161 = arith.truncf %160 : vector<17x32xf32> to vector<17x32xbf16>
    %c0_64 = arith.constant 0 : index
    %c0_65 = arith.constant 0 : index
    %c0_66 = arith.constant 0 : index
    %162 = vector.load %arg14[%c0_64, %c0_65, %c0_66] : memref<1x32x64xbf16, #tpu.memory_space<vmem>>, vector<1x32x64xbf16>
    %163 = vector.shape_cast %162 : vector<1x32x64xbf16> to vector<32x64xbf16>
    %cst_67 = arith.constant dense<0.000000e+00> : vector<17x64xf32>
    %164 = tpu.matmul %161, %163, %cst_67 {dimension_numbers = #tpu.dot_dimension_numbers<[1], [0], [0], [1], [0, 0, 1, 1], [], []>} : vector<17x32xbf16>, vector<32x64xbf16>, vector<17x64xf32> -> vector<17x64xf32>
    %c0_68 = arith.constant 0 : index
    %c0_69 = arith.constant 0 : index
    %c0_70 = arith.constant 0 : index
    %165 = vector.load %arg15[%c0_68, %c0_69, %c0_70] : memref<1x1x64xf32, #tpu.memory_space<vmem>>, vector<1x1x64xf32>
    %166 = vector.shape_cast %165 : vector<1x1x64xf32> to vector<1x64xf32>
    %167 = vector.broadcast %166 : vector<1x64xf32> to vector<17x64xf32>
    %168 = arith.addf %164, %167 : vector<17x64xf32>
    %169 = arith.mulf %168, %168 : vector<17x64xf32>
    %170 = arith.mulf %168, %169 : vector<17x64xf32>
    %cst_71 = arith.constant 4.471500e-02 : f32
    %171 = vector.broadcast %cst_71 : f32 to vector<17x64xf32>
    %172 = arith.mulf %171, %170 : vector<17x64xf32>
    %173 = arith.addf %168, %172 : vector<17x64xf32>
    %cst_72 = arith.constant 0.797884583 : f32
    %174 = vector.broadcast %cst_72 : f32 to vector<17x64xf32>
    %175 = arith.mulf %174, %173 : vector<17x64xf32>
    %176 = math.tanh %175 : vector<17x64xf32>
    %cst_73 = arith.constant 1.000000e+00 : f32
    %177 = vector.broadcast %cst_73 : f32 to vector<17x64xf32>
    %178 = arith.addf %177, %176 : vector<17x64xf32>
    %cst_74 = arith.constant 5.000000e-01 : f32
    %179 = vector.broadcast %cst_74 : f32 to vector<17x64xf32>
    %180 = arith.mulf %179, %178 : vector<17x64xf32>
    %181 = arith.mulf %168, %180 : vector<17x64xf32>
    %182 = arith.truncf %181 : vector<17x64xf32> to vector<17x64xbf16>
    %c0_75 = arith.constant 0 : index
    %c0_76 = arith.constant 0 : index
    %c0_77 = arith.constant 0 : index
    %183 = vector.load %arg16[%c0_75, %c0_76, %c0_77] : memref<1x64x32xbf16, #tpu.memory_space<vmem>>, vector<1x64x32xbf16>
    %184 = vector.shape_cast %183 : vector<1x64x32xbf16> to vector<64x32xbf16>
    %cst_78 = arith.constant dense<0.000000e+00> : vector<17x32xf32>
    %185 = tpu.matmul %182, %184, %cst_78 {dimension_numbers = #tpu.dot_dimension_numbers<[1], [0], [0], [1], [0, 0, 1, 1], [], []>} : vector<17x64xbf16>, vector<64x32xbf16>, vector<17x32xf32> -> vector<17x32xf32>
    %c0_79 = arith.constant 0 : index
    %c0_80 = arith.constant 0 : index
    %c0_81 = arith.constant 0 : index
    %186 = vector.load %arg17[%c0_79, %c0_80, %c0_81] : memref<1x1x32xf32, #tpu.memory_space<vmem>>, vector<1x1x32xf32>
    %187 = vector.shape_cast %186 : vector<1x1x32xf32> to vector<1x32xf32>
    %188 = vector.broadcast %187 : vector<1x32xf32> to vector<17x32xf32>
    %189 = arith.addf %185, %188 : vector<17x32xf32>
    %190 = arith.addf %136, %189 : vector<17x32xf32>
    %c0_82 = arith.constant 0 : index
    %c0_83 = arith.constant 0 : index
    %191 = vector.load %arg19[%c0_82, %c0_83] : memref<17x32xf32, #tpu.memory_space<vmem>>, vector<17x32xf32>
    tpu.vector_store %arg19[%c0_82, %c0_83], %190 {strides = array<i32>} : memref<17x32xf32, #tpu.memory_space<vmem>>, vector<17x32xf32>,
    %192 = arith.truncf %190 : vector<17x32xf32> to vector<17x32xbf16>
    %c0_84 = arith.constant 0 : index
    %c0_85 = arith.constant 0 : index
    %c0_86 = arith.constant 0 : index
    %c0_87 = arith.constant 0 : index
    %193 = vector.load %arg18[%c0_84, %c0_85, %c0_86, %c0_87] : memref<1x1x17x32xbf16, #tpu.memory_space<vmem>>, vector<1x1x17x32xbf16>
    %194 = vector.shape_cast %193 : vector<1x1x17x32xbf16> to vector<17x32xbf16>
    %195 = vector.shape_cast %192 : vector<17x32xbf16> to vector<1x1x17x32xbf16>
    tpu.vector_store %arg18[%c0_84, %c0_85, %c0_86, %c0_87], %195 {strides = array<i32>} : memref<1x1x17x32xbf16, #tpu.memory_space<vmem>>, vector<1x1x17x32xbf16>,
    return
  }
  func.func @transform_0(%arg0: i32, %arg1: i32) -> (i32, i32, i32) {
    %c0_i32 = arith.constant 0 : i32
    %c0_i32_0 = arith.constant 0 : i32
    %c0_i32_1 = arith.constant 0 : i32
    return %arg0, %c0_i32, %c0_i32_0 : i32, i32, i32
  }
  func.func @transform_1(%arg0: i32, %arg1: i32) -> (i32, i32) {
    %c0_i32 = arith.constant 0 : i32
    %c0_i32_0 = arith.constant 0 : i32
    %c0_i32_1 = arith.constant 0 : i32
    return %c0_i32, %c0_i32_0 : i32, i32
  }
  func.func @transform_2(%arg0: i32, %arg1: i32) -> (i32, i32) {
    %c0_i32 = arith.constant 0 : i32
    %c0_i32_0 = arith.constant 0 : i32
    %c0_i32_1 = arith.constant 0 : i32
    return %c0_i32, %c0_i32_0 : i32, i32
  }
  func.func @transform_3(%arg0: i32, %arg1: i32) -> (i32, i32) {
    %c0_i32 = arith.constant 0 : i32
    %c0_i32_0 = arith.constant 0 : i32
    %c0_i32_1 = arith.constant 0 : i32
    return %c0_i32, %c0_i32_0 : i32, i32
  }
  func.func @transform_4(%arg0: i32, %arg1: i32) -> (i32, i32, i32) {
    %c0_i32 = arith.constant 0 : i32
    %c0_i32_0 = arith.constant 0 : i32
    %c0_i32_1 = arith.constant 0 : i32
    return %arg1, %c0_i32, %c0_i32_0 : i32, i32, i32
  }
  func.func @transform_5(%arg0: i32, %arg1: i32) -> (i32, i32, i32) {
    %c0_i32 = arith.constant 0 : i32
    %c0_i32_0 = arith.constant 0 : i32
    %c0_i32_1 = arith.constant 0 : i32
    return %arg1, %c0_i32, %c0_i32_0 : i32, i32, i32
  }
  func.func @transform_6(%arg0: i32, %arg1: i32) -> (i32, i32, i32) {
    %c0_i32 = arith.constant 0 : i32
    %c0_i32_0 = arith.constant 0 : i32
    %c0_i32_1 = arith.constant 0 : i32
    return %arg1, %c0_i32, %c0_i32_0 : i32, i32, i32
  }
  func.func @transform_7(%arg0: i32, %arg1: i32) -> (i32, i32, i32) {
    %c0_i32 = arith.constant 0 : i32
    %c0_i32_0 = arith.constant 0 : i32
    %c0_i32_1 = arith.constant 0 : i32
    return %arg1, %c0_i32, %c0_i32_0 : i32, i32, i32
  }
  func.func @transform_8(%arg0: i32, %arg1: i32) -> (i32, i32, i32) {
    %c0_i32 = arith.constant 0 : i32
    %c0_i32_0 = arith.constant 0 : i32
    %c0_i32_1 = arith.constant 0 : i32
    return %arg1, %c0_i32, %c0_i32_0 : i32, i32, i32
  }
  func.func @transform_9(%arg0: i32, %arg1: i32) -> (i32, i32, i32) {
    %c0_i32 = arith.constant 0 : i32
    %c0_i32_0 = arith.constant 0 : i32
    %c0_i32_1 = arith.constant 0 : i32
    return %arg1, %c0_i32, %c0_i32_0 : i32, i32, i32
  }
  func.func @transform_10(%arg0: i32, %arg1: i32) -> (i32, i32, i32) {
    %c0_i32 = arith.constant 0 : i32
    %c0_i32_0 = arith.constant 0 : i32
    %c0_i32_1 = arith.constant 0 : i32
    return %arg1, %c0_i32, %c0_i32_0 : i32, i32, i32
  }
  func.func @transform_11(%arg0: i32, %arg1: i32) -> (i32, i32, i32) {
    %c0_i32 = arith.constant 0 : i32
    %c0_i32_0 = arith.constant 0 : i32
    %c0_i32_1 = arith.constant 0 : i32
    return %arg1, %c0_i32, %c0_i32_0 : i32, i32, i32
  }
  func.func @transform_12(%arg0: i32, %arg1: i32) -> (i32, i32, i32) {
    %c0_i32 = arith.constant 0 : i32
    %c0_i32_0 = arith.constant 0 : i32
    %c0_i32_1 = arith.constant 0 : i32
    return %arg1, %c0_i32, %c0_i32_0 : i32, i32, i32
  }
  func.func @transform_13(%arg0: i32, %arg1: i32) -> (i32, i32, i32) {
    %c0_i32 = arith.constant 0 : i32
    %c0_i32_0 = arith.constant 0 : i32
    %c0_i32_1 = arith.constant 0 : i32
    return %arg1, %c0_i32, %c0_i32_0 : i32, i32, i32
  }
  func.func @transform_14(%arg0: i32, %arg1: i32) -> (i32, i32, i32) {
    %c0_i32 = arith.constant 0 : i32
    %c0_i32_0 = arith.constant 0 : i32
    %c0_i32_1 = arith.constant 0 : i32
    return %arg1, %c0_i32, %c0_i32_0 : i32, i32, i32
  }
  func.func @transform_15(%arg0: i32, %arg1: i32) -> (i32, i32, i32) {
    %c0_i32 = arith.constant 0 : i32
    %c0_i32_0 = arith.constant 0 : i32
    %c0_i32_1 = arith.constant 0 : i32
    return %arg1, %c0_i32, %c0_i32_0 : i32, i32, i32
  }
  func.func @transform_16(%arg0: i32, %arg1: i32) -> (i32, i32, i32, i32) {
    %c0_i32 = arith.constant 0 : i32
    %c0_i32_0 = arith.constant 0 : i32
    %c0_i32_1 = arith.constant 0 : i32
    return %arg1, %arg0, %c0_i32, %c0_i32_0 : i32, i32, i32, i32
  }
}

module attributes {stable_mosaic.version = 11 : i64} {
  func.func @_bert_tower_kernel(%arg0: i32, %arg1: i32, %arg2: memref<1x8x32xf32, #tpu.memory_space<vmem>>, %arg3: memref<1x1x8xf32, #tpu.memory_space<vmem>>, %arg4: memref<1x32xf32, #tpu.memory_space<vmem>>, %arg5: memref<1x32xf32, #tpu.memory_space<vmem>>, %arg6: memref<1x32x96xbf16, #tpu.memory_space<vmem>>, %arg7: memref<1x1x96xf32, #tpu.memory_space<vmem>>, %arg8: memref<1x32x32xbf16, #tpu.memory_space<vmem>>, %arg9: memref<1x1x32xf32, #tpu.memory_space<vmem>>, %arg10: memref<1x1x32xf32, #tpu.memory_space<vmem>>, %arg11: memref<1x1x32xf32, #tpu.memory_space<vmem>>, %arg12: memref<1x32x64xbf16, #tpu.memory_space<vmem>>, %arg13: memref<1x1x64xf32, #tpu.memory_space<vmem>>, %arg14: memref<1x64x32xbf16, #tpu.memory_space<vmem>>, %arg15: memref<1x1x32xf32, #tpu.memory_space<vmem>>, %arg16: memref<1x1x32xf32, #tpu.memory_space<vmem>>, %arg17: memref<1x1x32xf32, #tpu.memory_space<vmem>>, %arg18: memref<32x24xbf16, #tpu.memory_space<vmem>>, %arg19: memref<24x16xbf16, #tpu.memory_space<vmem>>, %arg20: memref<1x1x16xf32, #tpu.memory_space<vmem>>, %arg21: memref<8x32xf32, #tpu.memory_space<vmem>>, %arg22: memref<8x32xbf16, #tpu.memory_space<vmem>>) attributes {dimension_semantics = [#tpu.dimension_semantics<parallel>, #tpu.dimension_semantics<arbitrary>], iteration_bounds = array<i64: 2, 2>, scalar_prefetch = 0 : i64, scratch_operands = 2 : i64, tpu.core_type = #tpu.core_type<tc>, window_params = [{transform_indices = @transform_0, window_bounds = array<i64: 1, 8, 32>}, {transform_indices = @transform_1, window_bounds = array<i64: 1, 1, 8>}, {pipeline_mode = #tpu.pipeline_mode<synchronous>, transform_indices = @transform_2, window_bounds = array<i64: 1, 32>}, {pipeline_mode = #tpu.pipeline_mode<synchronous>, transform_indices = @transform_3, window_bounds = array<i64: 1, 32>}, {transform_indices = @transform_4, window_bounds = array<i64: 1, 32, 96>}, {transform_indices = @transform_5, window_bounds = array<i64: 1, 1, 96>}, {transform_indices = @transform_6, window_bounds = array<i64: 1, 32, 32>}, {transform_indices = @transform_7, window_bounds = array<i64: 1, 1, 32>}, {transform_indices = @transform_8, window_bounds = array<i64: 1, 1, 32>}, {transform_indices = @transform_9, window_bounds = array<i64: 1, 1, 32>}, {transform_indices = @transform_10, window_bounds = array<i64: 1, 32, 64>}, {transform_indices = @transform_11, window_bounds = array<i64: 1, 1, 64>}, {transform_indices = @transform_12, window_bounds = array<i64: 1, 64, 32>}, {transform_indices = @transform_13, window_bounds = array<i64: 1, 1, 32>}, {transform_indices = @transform_14, window_bounds = array<i64: 1, 1, 32>}, {transform_indices = @transform_15, window_bounds = array<i64: 1, 1, 32>}, {pipeline_mode = #tpu.pipeline_mode<synchronous>, transform_indices = @transform_16, window_bounds = array<i64: 32, 24>}, {pipeline_mode = #tpu.pipeline_mode<synchronous>, transform_indices = @transform_17, window_bounds = array<i64: 24, 16>}, {transform_indices = @transform_18, window_bounds = array<i64: 1, 1, 16>}]} {
    %c0_i32 = arith.constant 0 : i32
    %0 = arith.cmpi eq, %arg1, %c0_i32 : i32
    %1 = arith.extui %0 : i1 to i32
    %c0_i32_0 = arith.constant 0 : i32
    %2 = arith.cmpi ne, %1, %c0_i32_0 : i32
    scf.if %2 {
      %c0_90 = arith.constant 0 : index
      %c0_91 = arith.constant 0 : index
      %c0_92 = arith.constant 0 : index
      %209 = vector.load %arg2[%c0_90, %c0_91, %c0_92] : memref<1x8x32xf32, #tpu.memory_space<vmem>>, vector<1x8x32xf32>
      %210 = vector.shape_cast %209 : vector<1x8x32xf32> to vector<8x32xf32>
      %c0_93 = arith.constant 0 : index
      %c0_94 = arith.constant 0 : index
      %211 = vector.load %arg4[%c0_93, %c0_94] : memref<1x32xf32, #tpu.memory_space<vmem>>, vector<1x32xf32>
      %c0_95 = arith.constant 0 : index
      %c0_96 = arith.constant 0 : index
      %212 = vector.load %arg5[%c0_95, %c0_96] : memref<1x32xf32, #tpu.memory_space<vmem>>, vector<1x32xf32>
      %cst_97 = arith.constant dense<0.000000e+00> : vector<8xf32>
      %213 = vector.multi_reduction <add>, %210, %cst_97 [1] : vector<8x32xf32> to vector<8xf32>
      %214 = vector.shape_cast %213 : vector<8xf32> to vector<8x1xf32>
      %cst_98 = arith.constant 3.200000e+01 : f32
      %215 = vector.broadcast %cst_98 : f32 to vector<8x1xf32>
      %216 = arith.divf %214, %215 : vector<8x1xf32>
      %217 = vector.broadcast %216 : vector<8x1xf32> to vector<8x32xf32>
      %218 = arith.subf %210, %217 : vector<8x32xf32>
      %219 = arith.mulf %218, %218 : vector<8x32xf32>
      %cst_99 = arith.constant dense<0.000000e+00> : vector<8xf32>
      %220 = vector.multi_reduction <add>, %219, %cst_99 [1] : vector<8x32xf32> to vector<8xf32>
      %221 = vector.shape_cast %220 : vector<8xf32> to vector<8x1xf32>
      %cst_100 = arith.constant 3.200000e+01 : f32
      %222 = vector.broadcast %cst_100 : f32 to vector<8x1xf32>
      %223 = arith.divf %221, %222 : vector<8x1xf32>
      %cst_101 = arith.constant 9.99999996E-13 : f32
      %224 = vector.broadcast %cst_101 : f32 to vector<8x1xf32>
      %225 = arith.addf %223, %224 : vector<8x1xf32>
      %226 = math.rsqrt %225 : vector<8x1xf32>
      %227 = vector.broadcast %226 : vector<8x1xf32> to vector<8x32xf32>
      %228 = arith.mulf %218, %227 : vector<8x32xf32>
      %229 = vector.broadcast %211 : vector<1x32xf32> to vector<8x32xf32>
      %230 = arith.mulf %228, %229 : vector<8x32xf32>
      %231 = vector.broadcast %212 : vector<1x32xf32> to vector<8x32xf32>
      %232 = arith.addf %230, %231 : vector<8x32xf32>
      %c0_102 = arith.constant 0 : index
      %c0_103 = arith.constant 0 : index
      %233 = vector.load %arg21[%c0_102, %c0_103] : memref<8x32xf32, #tpu.memory_space<vmem>>, vector<8x32xf32>
      tpu.vector_store %arg21[%c0_102, %c0_103], %232 {strides = array<i32>} : memref<8x32xf32, #tpu.memory_space<vmem>>, vector<8x32xf32>,
    } else {
    }
    %c0 = arith.constant 0 : index
    %c0_1 = arith.constant 0 : index
    %3 = vector.load %arg21[%c0, %c0_1] : memref<8x32xf32, #tpu.memory_space<vmem>>, vector<8x32xf32>
    %c0_2 = arith.constant 0 : index
    %c0_3 = arith.constant 0 : index
    %c0_4 = arith.constant 0 : index
    %4 = vector.load %arg3[%c0_2, %c0_3, %c0_4] : memref<1x1x8xf32, #tpu.memory_space<vmem>>, vector<1x1x8xf32>
    %5 = vector.shape_cast %4 : vector<1x1x8xf32> to vector<1x8xf32>
    %cst = arith.constant 1.000000e+00 : f32
    %6 = vector.broadcast %cst : f32 to vector<1x8xf32>
    %7 = arith.subf %5, %6 : vector<1x8xf32>
    %cst_5 = arith.constant 1.000000e+09 : f32
    %8 = vector.broadcast %cst_5 : f32 to vector<1x8xf32>
    %9 = arith.mulf %7, %8 : vector<1x8xf32>
    %10 = arith.truncf %3 : vector<8x32xf32> to vector<8x32xbf16>
    %c0_6 = arith.constant 0 : index
    %c0_7 = arith.constant 0 : index
    %c0_8 = arith.constant 0 : index
    %11 = vector.load %arg6[%c0_6, %c0_7, %c0_8] : memref<1x32x96xbf16, #tpu.memory_space<vmem>>, vector<1x32x96xbf16>
    %12 = vector.shape_cast %11 : vector<1x32x96xbf16> to vector<32x96xbf16>
    %cst_9 = arith.constant dense<0.000000e+00> : vector<8x96xf32>
    %13 = tpu.matmul %10, %12, %cst_9 {dimension_numbers = #tpu.dot_dimension_numbers<[1], [0], [0], [1], [0, 0, 1, 1], [], []>} : vector<8x32xbf16>, vector<32x96xbf16>, vector<8x96xf32> -> vector<8x96xf32>
    %c0_10 = arith.constant 0 : index
    %c0_11 = arith.constant 0 : index
    %c0_12 = arith.constant 0 : index
    %14 = vector.load %arg7[%c0_10, %c0_11, %c0_12] : memref<1x1x96xf32, #tpu.memory_space<vmem>>, vector<1x1x96xf32>
    %15 = vector.shape_cast %14 : vector<1x1x96xf32> to vector<1x96xf32>
    %16 = vector.broadcast %15 : vector<1x96xf32> to vector<8x96xf32>
    %17 = arith.addf %13, %16 : vector<8x96xf32>
    %18 = vector.extract_strided_slice %17 {offsets = [0, 0], sizes = [8, 8], strides = [1, 1]} : vector<8x96xf32> to vector<8x8xf32>
    %cst_13 = arith.constant 0.353553385 : f32
    %19 = vector.broadcast %cst_13 : f32 to vector<8x8xf32>
    %20 = arith.mulf %18, %19 : vector<8x8xf32>
    %21 = vector.extract_strided_slice %17 {offsets = [0, 32], sizes = [8, 8], strides = [1, 1]} : vector<8x96xf32> to vector<8x8xf32>
    %22 = vector.extract_strided_slice %17 {offsets = [0, 64], sizes = [8, 8], strides = [1, 1]} : vector<8x96xf32> to vector<8x8xf32>
    %23 = arith.truncf %20 : vector<8x8xf32> to vector<8x8xbf16>
    %24 = arith.truncf %21 : vector<8x8xf32> to vector<8x8xbf16>
    %cst_14 = arith.constant dense<0.000000e+00> : vector<8x8xf32>
    %25 = tpu.matmul %23, %24, %cst_14 {dimension_numbers = #tpu.dot_dimension_numbers<[1], [1], [0], [0], [0, 0, 1, 0], [], []>} : vector<8x8xbf16>, vector<8x8xbf16>, vector<8x8xf32> -> vector<8x8xf32>
    %26 = vector.broadcast %9 : vector<1x8xf32> to vector<8x8xf32>
    %27 = arith.addf %25, %26 : vector<8x8xf32>
    %cst_15 = arith.constant dense<0xFF800000> : vector<8xf32>
    %28 = vector.multi_reduction <maximumf>, %27, %cst_15 [1] : vector<8x8xf32> to vector<8xf32>
    %29 = vector.shape_cast %28 : vector<8xf32> to vector<8x1xf32>
    %30 = vector.broadcast %29 : vector<8x1xf32> to vector<8x8xf32>
    %31 = arith.subf %27, %30 : vector<8x8xf32>
    %32 = math.exp %31 : vector<8x8xf32>
    %cst_16 = arith.constant dense<0.000000e+00> : vector<8xf32>
    %33 = vector.multi_reduction <add>, %32, %cst_16 [1] : vector<8x8xf32> to vector<8xf32>
    %34 = vector.shape_cast %33 : vector<8xf32> to vector<8x1xf32>
    %35 = arith.truncf %32 : vector<8x8xf32> to vector<8x8xbf16>
    %36 = arith.truncf %22 : vector<8x8xf32> to vector<8x8xbf16>
    %cst_17 = arith.constant dense<0.000000e+00> : vector<8x8xf32>
    %37 = tpu.matmul %35, %36, %cst_17 {dimension_numbers = #tpu.dot_dimension_numbers<[1], [0], [0], [1], [0, 0, 1, 1], [], []>} : vector<8x8xbf16>, vector<8x8xbf16>, vector<8x8xf32> -> vector<8x8xf32>
    %38 = tpu.reciprocal %34 {approx = true} : vector<8x1xf32> -> vector<8x1xf32>
    %39 = vector.broadcast %38 : vector<8x1xf32> to vector<8x8xf32>
    %40 = arith.mulf %37, %39 : vector<8x8xf32>
    %41 = arith.truncf %40 : vector<8x8xf32> to vector<8x8xbf16>
    %c0_18 = arith.constant 0 : index
    %c0_19 = arith.constant 0 : index
    %42 = vector.load %arg22[%c0_18, %c0_19] : memref<8x32xbf16, #tpu.memory_space<vmem>>, vector<8x8xbf16>
    tpu.vector_store %arg22[%c0_18, %c0_19], %41 {strides = array<i32>} : memref<8x32xbf16, #tpu.memory_space<vmem>>, vector<8x8xbf16>,
    %43 = vector.extract_strided_slice %17 {offsets = [0, 8], sizes = [8, 8], strides = [1, 1]} : vector<8x96xf32> to vector<8x8xf32>
    %cst_20 = arith.constant 0.353553385 : f32
    %44 = vector.broadcast %cst_20 : f32 to vector<8x8xf32>
    %45 = arith.mulf %43, %44 : vector<8x8xf32>
    %46 = vector.extract_strided_slice %17 {offsets = [0, 40], sizes = [8, 8], strides = [1, 1]} : vector<8x96xf32> to vector<8x8xf32>
    %47 = vector.extract_strided_slice %17 {offsets = [0, 72], sizes = [8, 8], strides = [1, 1]} : vector<8x96xf32> to vector<8x8xf32>
    %48 = arith.truncf %45 : vector<8x8xf32> to vector<8x8xbf16>
    %49 = arith.truncf %46 : vector<8x8xf32> to vector<8x8xbf16>
    %cst_21 = arith.constant dense<0.000000e+00> : vector<8x8xf32>
    %50 = tpu.matmul %48, %49, %cst_21 {dimension_numbers = #tpu.dot_dimension_numbers<[1], [1], [0], [0], [0, 0, 1, 0], [], []>} : vector<8x8xbf16>, vector<8x8xbf16>, vector<8x8xf32> -> vector<8x8xf32>
    %51 = vector.broadcast %9 : vector<1x8xf32> to vector<8x8xf32>
    %52 = arith.addf %50, %51 : vector<8x8xf32>
    %cst_22 = arith.constant dense<0xFF800000> : vector<8xf32>
    %53 = vector.multi_reduction <maximumf>, %52, %cst_22 [1] : vector<8x8xf32> to vector<8xf32>
    %54 = vector.shape_cast %53 : vector<8xf32> to vector<8x1xf32>
    %55 = vector.broadcast %54 : vector<8x1xf32> to vector<8x8xf32>
    %56 = arith.subf %52, %55 : vector<8x8xf32>
    %57 = math.exp %56 : vector<8x8xf32>
    %cst_23 = arith.constant dense<0.000000e+00> : vector<8xf32>
    %58 = vector.multi_reduction <add>, %57, %cst_23 [1] : vector<8x8xf32> to vector<8xf32>
    %59 = vector.shape_cast %58 : vector<8xf32> to vector<8x1xf32>
    %60 = arith.truncf %57 : vector<8x8xf32> to vector<8x8xbf16>
    %61 = arith.truncf %47 : vector<8x8xf32> to vector<8x8xbf16>
    %cst_24 = arith.constant dense<0.000000e+00> : vector<8x8xf32>
    %62 = tpu.matmul %60, %61, %cst_24 {dimension_numbers = #tpu.dot_dimension_numbers<[1], [0], [0], [1], [0, 0, 1, 1], [], []>} : vector<8x8xbf16>, vector<8x8xbf16>, vector<8x8xf32> -> vector<8x8xf32>
    %63 = tpu.reciprocal %59 {approx = true} : vector<8x1xf32> -> vector<8x1xf32>
    %64 = vector.broadcast %63 : vector<8x1xf32> to vector<8x8xf32>
    %65 = arith.mulf %62, %64 : vector<8x8xf32>
    %66 = arith.truncf %65 : vector<8x8xf32> to vector<8x8xbf16>
    %c0_25 = arith.constant 0 : index
    %c8 = arith.constant 8 : index
    %67 = vector.load %arg22[%c0_25, %c8] : memref<8x32xbf16, #tpu.memory_space<vmem>>, vector<8x8xbf16>
    tpu.vector_store %arg22[%c0_25, %c8], %66 {strides = array<i32>} : memref<8x32xbf16, #tpu.memory_space<vmem>>, vector<8x8xbf16>,
    %68 = vector.extract_strided_slice %17 {offsets = [0, 16], sizes = [8, 8], strides = [1, 1]} : vector<8x96xf32> to vector<8x8xf32>
    %cst_26 = arith.constant 0.353553385 : f32
    %69 = vector.broadcast %cst_26 : f32 to vector<8x8xf32>
    %70 = arith.mulf %68, %69 : vector<8x8xf32>
    %71 = vector.extract_strided_slice %17 {offsets = [0, 48], sizes = [8, 8], strides = [1, 1]} : vector<8x96xf32> to vector<8x8xf32>
    %72 = vector.extract_strided_slice %17 {offsets = [0, 80], sizes = [8, 8], strides = [1, 1]} : vector<8x96xf32> to vector<8x8xf32>
    %73 = arith.truncf %70 : vector<8x8xf32> to vector<8x8xbf16>
    %74 = arith.truncf %71 : vector<8x8xf32> to vector<8x8xbf16>
    %cst_27 = arith.constant dense<0.000000e+00> : vector<8x8xf32>
    %75 = tpu.matmul %73, %74, %cst_27 {dimension_numbers = #tpu.dot_dimension_numbers<[1], [1], [0], [0], [0, 0, 1, 0], [], []>} : vector<8x8xbf16>, vector<8x8xbf16>, vector<8x8xf32> -> vector<8x8xf32>
    %76 = vector.broadcast %9 : vector<1x8xf32> to vector<8x8xf32>
    %77 = arith.addf %75, %76 : vector<8x8xf32>
    %cst_28 = arith.constant dense<0xFF800000> : vector<8xf32>
    %78 = vector.multi_reduction <maximumf>, %77, %cst_28 [1] : vector<8x8xf32> to vector<8xf32>
    %79 = vector.shape_cast %78 : vector<8xf32> to vector<8x1xf32>
    %80 = vector.broadcast %79 : vector<8x1xf32> to vector<8x8xf32>
    %81 = arith.subf %77, %80 : vector<8x8xf32>
    %82 = math.exp %81 : vector<8x8xf32>
    %cst_29 = arith.constant dense<0.000000e+00> : vector<8xf32>
    %83 = vector.multi_reduction <add>, %82, %cst_29 [1] : vector<8x8xf32> to vector<8xf32>
    %84 = vector.shape_cast %83 : vector<8xf32> to vector<8x1xf32>
    %85 = arith.truncf %82 : vector<8x8xf32> to vector<8x8xbf16>
    %86 = arith.truncf %72 : vector<8x8xf32> to vector<8x8xbf16>
    %cst_30 = arith.constant dense<0.000000e+00> : vector<8x8xf32>
    %87 = tpu.matmul %85, %86, %cst_30 {dimension_numbers = #tpu.dot_dimension_numbers<[1], [0], [0], [1], [0, 0, 1, 1], [], []>} : vector<8x8xbf16>, vector<8x8xbf16>, vector<8x8xf32> -> vector<8x8xf32>
    %88 = tpu.reciprocal %84 {approx = true} : vector<8x1xf32> -> vector<8x1xf32>
    %89 = vector.broadcast %88 : vector<8x1xf32> to vector<8x8xf32>
    %90 = arith.mulf %87, %89 : vector<8x8xf32>
    %91 = arith.truncf %90 : vector<8x8xf32> to vector<8x8xbf16>
    %c0_31 = arith.constant 0 : index
    %c16 = arith.constant 16 : index
    %92 = vector.load %arg22[%c0_31, %c16] : memref<8x32xbf16, #tpu.memory_space<vmem>>, vector<8x8xbf16>
    tpu.vector_store %arg22[%c0_31, %c16], %91 {strides = array<i32>} : memref<8x32xbf16, #tpu.memory_space<vmem>>, vector<8x8xbf16>,
    %93 = vector.extract_strided_slice %17 {offsets = [0, 24], sizes = [8, 8], strides = [1, 1]} : vector<8x96xf32> to vector<8x8xf32>
    %cst_32 = arith.constant 0.353553385 : f32
    %94 = vector.broadcast %cst_32 : f32 to vector<8x8xf32>
    %95 = arith.mulf %93, %94 : vector<8x8xf32>
    %96 = vector.extract_strided_slice %17 {offsets = [0, 56], sizes = [8, 8], strides = [1, 1]} : vector<8x96xf32> to vector<8x8xf32>
    %97 = vector.extract_strided_slice %17 {offsets = [0, 88], sizes = [8, 8], strides = [1, 1]} : vector<8x96xf32> to vector<8x8xf32>
    %98 = arith.truncf %95 : vector<8x8xf32> to vector<8x8xbf16>
    %99 = arith.truncf %96 : vector<8x8xf32> to vector<8x8xbf16>
    %cst_33 = arith.constant dense<0.000000e+00> : vector<8x8xf32>
    %100 = tpu.matmul %98, %99, %cst_33 {dimension_numbers = #tpu.dot_dimension_numbers<[1], [1], [0], [0], [0, 0, 1, 0], [], []>} : vector<8x8xbf16>, vector<8x8xbf16>, vector<8x8xf32> -> vector<8x8xf32>
    %101 = vector.broadcast %9 : vector<1x8xf32> to vector<8x8xf32>
    %102 = arith.addf %100, %101 : vector<8x8xf32>
    %cst_34 = arith.constant dense<0xFF800000> : vector<8xf32>
    %103 = vector.multi_reduction <maximumf>, %102, %cst_34 [1] : vector<8x8xf32> to vector<8xf32>
    %104 = vector.shape_cast %103 : vector<8xf32> to vector<8x1xf32>
    %105 = vector.broadcast %104 : vector<8x1xf32> to vector<8x8xf32>
    %106 = arith.subf %102, %105 : vector<8x8xf32>
    %107 = math.exp %106 : vector<8x8xf32>
    %cst_35 = arith.constant dense<0.000000e+00> : vector<8xf32>
    %108 = vector.multi_reduction <add>, %107, %cst_35 [1] : vector<8x8xf32> to vector<8xf32>
    %109 = vector.shape_cast %108 : vector<8xf32> to vector<8x1xf32>
    %110 = arith.truncf %107 : vector<8x8xf32> to vector<8x8xbf16>
    %111 = arith.truncf %97 : vector<8x8xf32> to vector<8x8xbf16>
    %cst_36 = arith.constant dense<0.000000e+00> : vector<8x8xf32>
    %112 = tpu.matmul %110, %111, %cst_36 {dimension_numbers = #tpu.dot_dimension_numbers<[1], [0], [0], [1], [0, 0, 1, 1], [], []>} : vector<8x8xbf16>, vector<8x8xbf16>, vector<8x8xf32> -> vector<8x8xf32>
    %113 = tpu.reciprocal %109 {approx = true} : vector<8x1xf32> -> vector<8x1xf32>
    %114 = vector.broadcast %113 : vector<8x1xf32> to vector<8x8xf32>
    %115 = arith.mulf %112, %114 : vector<8x8xf32>
    %116 = arith.truncf %115 : vector<8x8xf32> to vector<8x8xbf16>
    %c0_37 = arith.constant 0 : index
    %c24 = arith.constant 24 : index
    %117 = vector.load %arg22[%c0_37, %c24] : memref<8x32xbf16, #tpu.memory_space<vmem>>, vector<8x8xbf16>
    tpu.vector_store %arg22[%c0_37, %c24], %116 {strides = array<i32>} : memref<8x32xbf16, #tpu.memory_space<vmem>>, vector<8x8xbf16>,
    %c0_38 = arith.constant 0 : index
    %c0_39 = arith.constant 0 : index
    %118 = vector.load %arg22[%c0_38, %c0_39] : memref<8x32xbf16, #tpu.memory_space<vmem>>, vector<8x32xbf16>
    %c0_40 = arith.constant 0 : index
    %c0_41 = arith.constant 0 : index
    %c0_42 = arith.constant 0 : index
    %119 = vector.load %arg8[%c0_40, %c0_41, %c0_42] : memref<1x32x32xbf16, #tpu.memory_space<vmem>>, vector<1x32x32xbf16>
    %120 = vector.shape_cast %119 : vector<1x32x32xbf16> to vector<32x32xbf16>
    %cst_43 = arith.constant dense<0.000000e+00> : vector<8x32xf32>
    %121 = tpu.matmul %118, %120, %cst_43 {dimension_numbers = #tpu.dot_dimension_numbers<[1], [0], [0], [1], [0, 0, 1, 1], [], []>} : vector<8x32xbf16>, vector<32x32xbf16>, vector<8x32xf32> -> vector<8x32xf32>
    %c0_44 = arith.constant 0 : index
    %c0_45 = arith.constant 0 : index
    %c0_46 = arith.constant 0 : index
    %122 = vector.load %arg9[%c0_44, %c0_45, %c0_46] : memref<1x1x32xf32, #tpu.memory_space<vmem>>, vector<1x1x32xf32>
    %123 = vector.shape_cast %122 : vector<1x1x32xf32> to vector<1x32xf32>
    %124 = vector.broadcast %123 : vector<1x32xf32> to vector<8x32xf32>
    %125 = arith.addf %121, %124 : vector<8x32xf32>
    %126 = arith.addf %3, %125 : vector<8x32xf32>
    %c0_47 = arith.constant 0 : index
    %c0_48 = arith.constant 0 : index
    %c0_49 = arith.constant 0 : index
    %127 = vector.load %arg10[%c0_47, %c0_48, %c0_49] : memref<1x1x32xf32, #tpu.memory_space<vmem>>, vector<1x1x32xf32>
    %128 = vector.shape_cast %127 : vector<1x1x32xf32> to vector<1x32xf32>
    %c0_50 = arith.constant 0 : index
    %c0_51 = arith.constant 0 : index
    %c0_52 = arith.constant 0 : index
    %129 = vector.load %arg11[%c0_50, %c0_51, %c0_52] : memref<1x1x32xf32, #tpu.memory_space<vmem>>, vector<1x1x32xf32>
    %130 = vector.shape_cast %129 : vector<1x1x32xf32> to vector<1x32xf32>
    %cst_53 = arith.constant dense<0.000000e+00> : vector<8xf32>
    %131 = vector.multi_reduction <add>, %126, %cst_53 [1] : vector<8x32xf32> to vector<8xf32>
    %132 = vector.shape_cast %131 : vector<8xf32> to vector<8x1xf32>
    %cst_54 = arith.constant 3.200000e+01 : f32
    %133 = vector.broadcast %cst_54 : f32 to vector<8x1xf32>
    %134 = arith.divf %132, %133 : vector<8x1xf32>
    %135 = vector.broadcast %134 : vector<8x1xf32> to vector<8x32xf32>
    %136 = arith.subf %126, %135 : vector<8x32xf32>
    %137 = arith.mulf %136, %136 : vector<8x32xf32>
    %cst_55 = arith.constant dense<0.000000e+00> : vector<8xf32>
    %138 = vector.multi_reduction <add>, %137, %cst_55 [1] : vector<8x32xf32> to vector<8xf32>
    %139 = vector.shape_cast %138 : vector<8xf32> to vector<8x1xf32>
    %cst_56 = arith.constant 3.200000e+01 : f32
    %140 = vector.broadcast %cst_56 : f32 to vector<8x1xf32>
    %141 = arith.divf %139, %140 : vector<8x1xf32>
    %cst_57 = arith.constant 9.99999996E-13 : f32
    %142 = vector.broadcast %cst_57 : f32 to vector<8x1xf32>
    %143 = arith.addf %141, %142 : vector<8x1xf32>
    %144 = math.rsqrt %143 : vector<8x1xf32>
    %145 = vector.broadcast %144 : vector<8x1xf32> to vector<8x32xf32>
    %146 = arith.mulf %136, %145 : vector<8x32xf32>
    %147 = vector.broadcast %128 : vector<1x32xf32> to vector<8x32xf32>
    %148 = arith.mulf %146, %147 : vector<8x32xf32>
    %149 = vector.broadcast %130 : vector<1x32xf32> to vector<8x32xf32>
    %150 = arith.addf %148, %149 : vector<8x32xf32>
    %151 = arith.truncf %150 : vector<8x32xf32> to vector<8x32xbf16>
    %c0_58 = arith.constant 0 : index
    %c0_59 = arith.constant 0 : index
    %c0_60 = arith.constant 0 : index
    %152 = vector.load %arg12[%c0_58, %c0_59, %c0_60] : memref<1x32x64xbf16, #tpu.memory_space<vmem>>, vector<1x32x64xbf16>
    %153 = vector.shape_cast %152 : vector<1x32x64xbf16> to vector<32x64xbf16>
    %cst_61 = arith.constant dense<0.000000e+00> : vector<8x64xf32>
    %154 = tpu.matmul %151, %153, %cst_61 {dimension_numbers = #tpu.dot_dimension_numbers<[1], [0], [0], [1], [0, 0, 1, 1], [], []>} : vector<8x32xbf16>, vector<32x64xbf16>, vector<8x64xf32> -> vector<8x64xf32>
    %c0_62 = arith.constant 0 : index
    %c0_63 = arith.constant 0 : index
    %c0_64 = arith.constant 0 : index
    %155 = vector.load %arg13[%c0_62, %c0_63, %c0_64] : memref<1x1x64xf32, #tpu.memory_space<vmem>>, vector<1x1x64xf32>
    %156 = vector.shape_cast %155 : vector<1x1x64xf32> to vector<1x64xf32>
    %157 = vector.broadcast %156 : vector<1x64xf32> to vector<8x64xf32>
    %158 = arith.addf %154, %157 : vector<8x64xf32>
    %159 = arith.mulf %158, %158 : vector<8x64xf32>
    %160 = arith.mulf %158, %159 : vector<8x64xf32>
    %cst_65 = arith.constant 4.471500e-02 : f32
    %161 = vector.broadcast %cst_65 : f32 to vector<8x64xf32>
    %162 = arith.mulf %161, %160 : vector<8x64xf32>
    %163 = arith.addf %158, %162 : vector<8x64xf32>
    %cst_66 = arith.constant 0.797884583 : f32
    %164 = vector.broadcast %cst_66 : f32 to vector<8x64xf32>
    %165 = arith.mulf %164, %163 : vector<8x64xf32>
    %166 = math.tanh %165 : vector<8x64xf32>
    %cst_67 = arith.constant 1.000000e+00 : f32
    %167 = vector.broadcast %cst_67 : f32 to vector<8x64xf32>
    %168 = arith.addf %167, %166 : vector<8x64xf32>
    %cst_68 = arith.constant 5.000000e-01 : f32
    %169 = vector.broadcast %cst_68 : f32 to vector<8x64xf32>
    %170 = arith.mulf %169, %168 : vector<8x64xf32>
    %171 = arith.mulf %158, %170 : vector<8x64xf32>
    %172 = arith.truncf %171 : vector<8x64xf32> to vector<8x64xbf16>
    %c0_69 = arith.constant 0 : index
    %c0_70 = arith.constant 0 : index
    %c0_71 = arith.constant 0 : index
    %173 = vector.load %arg14[%c0_69, %c0_70, %c0_71] : memref<1x64x32xbf16, #tpu.memory_space<vmem>>, vector<1x64x32xbf16>
    %174 = vector.shape_cast %173 : vector<1x64x32xbf16> to vector<64x32xbf16>
    %cst_72 = arith.constant dense<0.000000e+00> : vector<8x32xf32>
    %175 = tpu.matmul %172, %174, %cst_72 {dimension_numbers = #tpu.dot_dimension_numbers<[1], [0], [0], [1], [0, 0, 1, 1], [], []>} : vector<8x64xbf16>, vector<64x32xbf16>, vector<8x32xf32> -> vector<8x32xf32>
    %c0_73 = arith.constant 0 : index
    %c0_74 = arith.constant 0 : index
    %c0_75 = arith.constant 0 : index
    %176 = vector.load %arg15[%c0_73, %c0_74, %c0_75] : memref<1x1x32xf32, #tpu.memory_space<vmem>>, vector<1x1x32xf32>
    %177 = vector.shape_cast %176 : vector<1x1x32xf32> to vector<1x32xf32>
    %178 = vector.broadcast %177 : vector<1x32xf32> to vector<8x32xf32>
    %179 = arith.addf %175, %178 : vector<8x32xf32>
    %180 = arith.addf %150, %179 : vector<8x32xf32>
    %c0_76 = arith.constant 0 : index
    %c0_77 = arith.constant 0 : index
    %c0_78 = arith.constant 0 : index
    %181 = vector.load %arg16[%c0_76, %c0_77, %c0_78] : memref<1x1x32xf32, #tpu.memory_space<vmem>>, vector<1x1x32xf32>
    %182 = vector.shape_cast %181 : vector<1x1x32xf32> to vector<1x32xf32>
    %c0_79 = arith.constant 0 : index
    %c0_80 = arith.constant 0 : index
    %c0_81 = arith.constant 0 : index
    %183 = vector.load %arg17[%c0_79, %c0_80, %c0_81] : memref<1x1x32xf32, #tpu.memory_space<vmem>>, vector<1x1x32xf32>
    %184 = vector.shape_cast %183 : vector<1x1x32xf32> to vector<1x32xf32>
    %cst_82 = arith.constant dense<0.000000e+00> : vector<8xf32>
    %185 = vector.multi_reduction <add>, %180, %cst_82 [1] : vector<8x32xf32> to vector<8xf32>
    %186 = vector.shape_cast %185 : vector<8xf32> to vector<8x1xf32>
    %cst_83 = arith.constant 3.200000e+01 : f32
    %187 = vector.broadcast %cst_83 : f32 to vector<8x1xf32>
    %188 = arith.divf %186, %187 : vector<8x1xf32>
    %189 = vector.broadcast %188 : vector<8x1xf32> to vector<8x32xf32>
    %190 = arith.subf %180, %189 : vector<8x32xf32>
    %191 = arith.mulf %190, %190 : vector<8x32xf32>
    %cst_84 = arith.constant dense<0.000000e+00> : vector<8xf32>
    %192 = vector.multi_reduction <add>, %191, %cst_84 [1] : vector<8x32xf32> to vector<8xf32>
    %193 = vector.shape_cast %192 : vector<8xf32> to vector<8x1xf32>
    %cst_85 = arith.constant 3.200000e+01 : f32
    %194 = vector.broadcast %cst_85 : f32 to vector<8x1xf32>
    %195 = arith.divf %193, %194 : vector<8x1xf32>
    %cst_86 = arith.constant 9.99999996E-13 : f32
    %196 = vector.broadcast %cst_86 : f32 to vector<8x1xf32>
    %197 = arith.addf %195, %196 : vector<8x1xf32>
    %198 = math.rsqrt %197 : vector<8x1xf32>
    %199 = vector.broadcast %198 : vector<8x1xf32> to vector<8x32xf32>
    %200 = arith.mulf %190, %199 : vector<8x32xf32>
    %201 = vector.broadcast %182 : vector<1x32xf32> to vector<8x32xf32>
    %202 = arith.mulf %200, %201 : vector<8x32xf32>
    %203 = vector.broadcast %184 : vector<1x32xf32> to vector<8x32xf32>
    %204 = arith.addf %202, %203 : vector<8x32xf32>
    %c0_87 = arith.constant 0 : index
    %c0_88 = arith.constant 0 : index
    %205 = vector.load %arg21[%c0_87, %c0_88] : memref<8x32xf32, #tpu.memory_space<vmem>>, vector<8x32xf32>
    tpu.vector_store %arg21[%c0_87, %c0_88], %204 {strides = array<i32>} : memref<8x32xf32, #tpu.memory_space<vmem>>, vector<8x32xf32>,
    %c1_i32 = arith.constant 1 : i32
    %206 = arith.cmpi eq, %arg1, %c1_i32 : i32
    %207 = arith.extui %206 : i1 to i32
    %c0_i32_89 = arith.constant 0 : i32
    %208 = arith.cmpi ne, %207, %c0_i32_89 : i32
    scf.if %208 {
      %209 = vector.extract_strided_slice %204 {offsets = [0, 0], sizes = [1, 32], strides = [1, 1]} : vector<8x32xf32> to vector<1x32xf32>
      %210 = arith.truncf %209 : vector<1x32xf32> to vector<1x32xbf16>
      %c0_90 = arith.constant 0 : index
      %c0_91 = arith.constant 0 : index
      %211 = vector.load %arg18[%c0_90, %c0_91] : memref<32x24xbf16, #tpu.memory_space<vmem>>, vector<32x24xbf16>
      %cst_92 = arith.constant dense<0.000000e+00> : vector<1x24xf32>
      %212 = tpu.matmul %210, %211, %cst_92 {dimension_numbers = #tpu.dot_dimension_numbers<[1], [0], [0], [1], [0, 0, 1, 1], [], []>} : vector<1x32xbf16>, vector<32x24xbf16>, vector<1x24xf32> -> vector<1x24xf32>
      %213 = arith.mulf %212, %212 : vector<1x24xf32>
      %214 = arith.mulf %212, %213 : vector<1x24xf32>
      %cst_93 = arith.constant 4.471500e-02 : f32
      %215 = vector.broadcast %cst_93 : f32 to vector<1x24xf32>
      %216 = arith.mulf %215, %214 : vector<1x24xf32>
      %217 = arith.addf %212, %216 : vector<1x24xf32>
      %cst_94 = arith.constant 0.797884583 : f32
      %218 = vector.broadcast %cst_94 : f32 to vector<1x24xf32>
      %219 = arith.mulf %218, %217 : vector<1x24xf32>
      %220 = math.tanh %219 : vector<1x24xf32>
      %cst_95 = arith.constant 1.000000e+00 : f32
      %221 = vector.broadcast %cst_95 : f32 to vector<1x24xf32>
      %222 = arith.addf %221, %220 : vector<1x24xf32>
      %cst_96 = arith.constant 5.000000e-01 : f32
      %223 = vector.broadcast %cst_96 : f32 to vector<1x24xf32>
      %224 = arith.mulf %223, %222 : vector<1x24xf32>
      %225 = arith.mulf %212, %224 : vector<1x24xf32>
      %226 = arith.truncf %225 : vector<1x24xf32> to vector<1x24xbf16>
      %c0_97 = arith.constant 0 : index
      %c0_98 = arith.constant 0 : index
      %227 = vector.load %arg19[%c0_97, %c0_98] : memref<24x16xbf16, #tpu.memory_space<vmem>>, vector<24x16xbf16>
      %cst_99 = arith.constant dense<0.000000e+00> : vector<1x16xf32>
      %228 = tpu.matmul %226, %227, %cst_99 {dimension_numbers = #tpu.dot_dimension_numbers<[1], [0], [0], [1], [0, 0, 1, 1], [], []>} : vector<1x24xbf16>, vector<24x16xbf16>, vector<1x16xf32> -> vector<1x16xf32>
      %c0_100 = arith.constant 0 : index
      %c0_101 = arith.constant 0 : index
      %c0_102 = arith.constant 0 : index
      %229 = vector.load %arg20[%c0_100, %c0_101, %c0_102] : memref<1x1x16xf32, #tpu.memory_space<vmem>>, vector<1x1x16xf32>
      %230 = vector.shape_cast %229 : vector<1x1x16xf32> to vector<1x16xf32>
      %231 = vector.shape_cast %228 : vector<1x16xf32> to vector<1x1x16xf32>
      tpu.vector_store %arg20[%c0_100, %c0_101, %c0_102], %231 {strides = array<i32>} : memref<1x1x16xf32, #tpu.memory_space<vmem>>, vector<1x1x16xf32>,
    } else {
    }
    return
  }
  func.func @transform_0(%arg0: i32, %arg1: i32) -> (i32, i32, i32) {
    %c0_i32 = arith.constant 0 : i32
    %c0_i32_0 = arith.constant 0 : i32
    %c0_i32_1 = arith.constant 0 : i32
    return %arg0, %c0_i32, %c0_i32_0 : i32, i32, i32
  }
  func.func @transform_1(%arg0: i32, %arg1: i32) -> (i32, i32, i32) {
    %c0_i32 = arith.constant 0 : i32
    %c0_i32_0 = arith.constant 0 : i32
    %c0_i32_1 = arith.constant 0 : i32
    return %arg0, %c0_i32, %c0_i32_0 : i32, i32, i32
  }
  func.func @transform_2(%arg0: i32, %arg1: i32) -> (i32, i32) {
    %c0_i32 = arith.constant 0 : i32
    %c0_i32_0 = arith.constant 0 : i32
    %c0_i32_1 = arith.constant 0 : i32
    return %c0_i32, %c0_i32_0 : i32, i32
  }
  func.func @transform_3(%arg0: i32, %arg1: i32) -> (i32, i32) {
    %c0_i32 = arith.constant 0 : i32
    %c0_i32_0 = arith.constant 0 : i32
    %c0_i32_1 = arith.constant 0 : i32
    return %c0_i32, %c0_i32_0 : i32, i32
  }
  func.func @transform_4(%arg0: i32, %arg1: i32) -> (i32, i32, i32) {
    %c0_i32 = arith.constant 0 : i32
    %c0_i32_0 = arith.constant 0 : i32
    %c0_i32_1 = arith.constant 0 : i32
    return %arg1, %c0_i32, %c0_i32_0 : i32, i32, i32
  }
  func.func @transform_5(%arg0: i32, %arg1: i32) -> (i32, i32, i32) {
    %c0_i32 = arith.constant 0 : i32
    %c0_i32_0 = arith.constant 0 : i32
    %c0_i32_1 = arith.constant 0 : i32
    return %arg1, %c0_i32, %c0_i32_0 : i32, i32, i32
  }
  func.func @transform_6(%arg0: i32, %arg1: i32) -> (i32, i32, i32) {
    %c0_i32 = arith.constant 0 : i32
    %c0_i32_0 = arith.constant 0 : i32
    %c0_i32_1 = arith.constant 0 : i32
    return %arg1, %c0_i32, %c0_i32_0 : i32, i32, i32
  }
  func.func @transform_7(%arg0: i32, %arg1: i32) -> (i32, i32, i32) {
    %c0_i32 = arith.constant 0 : i32
    %c0_i32_0 = arith.constant 0 : i32
    %c0_i32_1 = arith.constant 0 : i32
    return %arg1, %c0_i32, %c0_i32_0 : i32, i32, i32
  }
  func.func @transform_8(%arg0: i32, %arg1: i32) -> (i32, i32, i32) {
    %c0_i32 = arith.constant 0 : i32
    %c0_i32_0 = arith.constant 0 : i32
    %c0_i32_1 = arith.constant 0 : i32
    return %arg1, %c0_i32, %c0_i32_0 : i32, i32, i32
  }
  func.func @transform_9(%arg0: i32, %arg1: i32) -> (i32, i32, i32) {
    %c0_i32 = arith.constant 0 : i32
    %c0_i32_0 = arith.constant 0 : i32
    %c0_i32_1 = arith.constant 0 : i32
    return %arg1, %c0_i32, %c0_i32_0 : i32, i32, i32
  }
  func.func @transform_10(%arg0: i32, %arg1: i32) -> (i32, i32, i32) {
    %c0_i32 = arith.constant 0 : i32
    %c0_i32_0 = arith.constant 0 : i32
    %c0_i32_1 = arith.constant 0 : i32
    return %arg1, %c0_i32, %c0_i32_0 : i32, i32, i32
  }
  func.func @transform_11(%arg0: i32, %arg1: i32) -> (i32, i32, i32) {
    %c0_i32 = arith.constant 0 : i32
    %c0_i32_0 = arith.constant 0 : i32
    %c0_i32_1 = arith.constant 0 : i32
    return %arg1, %c0_i32, %c0_i32_0 : i32, i32, i32
  }
  func.func @transform_12(%arg0: i32, %arg1: i32) -> (i32, i32, i32) {
    %c0_i32 = arith.constant 0 : i32
    %c0_i32_0 = arith.constant 0 : i32
    %c0_i32_1 = arith.constant 0 : i32
    return %arg1, %c0_i32, %c0_i32_0 : i32, i32, i32
  }
  func.func @transform_13(%arg0: i32, %arg1: i32) -> (i32, i32, i32) {
    %c0_i32 = arith.constant 0 : i32
    %c0_i32_0 = arith.constant 0 : i32
    %c0_i32_1 = arith.constant 0 : i32
    return %arg1, %c0_i32, %c0_i32_0 : i32, i32, i32
  }
  func.func @transform_14(%arg0: i32, %arg1: i32) -> (i32, i32, i32) {
    %c0_i32 = arith.constant 0 : i32
    %c0_i32_0 = arith.constant 0 : i32
    %c0_i32_1 = arith.constant 0 : i32
    return %arg1, %c0_i32, %c0_i32_0 : i32, i32, i32
  }
  func.func @transform_15(%arg0: i32, %arg1: i32) -> (i32, i32, i32) {
    %c0_i32 = arith.constant 0 : i32
    %c0_i32_0 = arith.constant 0 : i32
    %c0_i32_1 = arith.constant 0 : i32
    return %arg1, %c0_i32, %c0_i32_0 : i32, i32, i32
  }
  func.func @transform_16(%arg0: i32, %arg1: i32) -> (i32, i32) {
    %c0_i32 = arith.constant 0 : i32
    %c0_i32_0 = arith.constant 0 : i32
    %c0_i32_1 = arith.constant 0 : i32
    return %c0_i32, %c0_i32_0 : i32, i32
  }
  func.func @transform_17(%arg0: i32, %arg1: i32) -> (i32, i32) {
    %c0_i32 = arith.constant 0 : i32
    %c0_i32_0 = arith.constant 0 : i32
    %c0_i32_1 = arith.constant 0 : i32
    return %c0_i32, %c0_i32_0 : i32, i32
  }
  func.func @transform_18(%arg0: i32, %arg1: i32) -> (i32, i32, i32) {
    %c0_i32 = arith.constant 0 : i32
    %c0_i32_0 = arith.constant 0 : i32
    %c0_i32_1 = arith.constant 0 : i32
    return %arg0, %c0_i32, %c0_i32_0 : i32, i32, i32
  }
}

module attributes {stable_mosaic.version = 11 : i64} {
  func.func @_decoder_kernel(%arg0: i32, %arg1: i32, %arg2: memref<1x1x17x32xbf16, #tpu.memory_space<vmem>>, %arg3: memref<1x32x16xbf16, #tpu.memory_space<vmem>>, %arg4: memref<1x1x16xf32, #tpu.memory_space<vmem>>, %arg5: memref<1x1x16xf32, #tpu.memory_space<vmem>>, %arg6: memref<16x32xbf16, #tpu.memory_space<vmem>>, %arg7: memref<1x32xf32, #tpu.memory_space<vmem>>, %arg8: memref<1x16x48xbf16, #tpu.memory_space<vmem>>, %arg9: memref<1x1x48xf32, #tpu.memory_space<vmem>>, %arg10: memref<1x16x16xbf16, #tpu.memory_space<vmem>>, %arg11: memref<1x1x16xf32, #tpu.memory_space<vmem>>, %arg12: memref<1x1x16xf32, #tpu.memory_space<vmem>>, %arg13: memref<1x1x16xf32, #tpu.memory_space<vmem>>, %arg14: memref<1x16x32xbf16, #tpu.memory_space<vmem>>, %arg15: memref<1x1x32xf32, #tpu.memory_space<vmem>>, %arg16: memref<1x32x16xbf16, #tpu.memory_space<vmem>>, %arg17: memref<1x1x16xf32, #tpu.memory_space<vmem>>, %arg18: memref<1x1x16xf32, #tpu.memory_space<vmem>>, %arg19: memref<1x1x16xf32, #tpu.memory_space<vmem>>, %arg20: memref<16x16xbf16, #tpu.memory_space<vmem>>, %arg21: memref<1x16xf32, #tpu.memory_space<vmem>>, %arg22: memref<1x16x16xf32, #tpu.memory_space<vmem>>, %arg23: memref<17x16xf32, #tpu.memory_space<vmem>>, %arg24: memref<17x16xbf16, #tpu.memory_space<vmem>>) attributes {dimension_semantics = [#tpu.dimension_semantics<parallel>, #tpu.dimension_semantics<arbitrary>], iteration_bounds = array<i64: 2, 3>, scalar_prefetch = 0 : i64, scratch_operands = 2 : i64, tpu.core_type = #tpu.core_type<tc>, window_params = [{transform_indices = @transform_0, window_bounds = array<i64: 1, 1, 17, 32>}, {transform_indices = @transform_1, window_bounds = array<i64: 1, 32, 16>}, {transform_indices = @transform_2, window_bounds = array<i64: 1, 1, 16>}, {transform_indices = @transform_3, window_bounds = array<i64: 1, 1, 16>}, {pipeline_mode = #tpu.pipeline_mode<synchronous>, transform_indices = @transform_4, window_bounds = array<i64: 16, 32>}, {pipeline_mode = #tpu.pipeline_mode<synchronous>, transform_indices = @transform_5, window_bounds = array<i64: 1, 32>}, {transform_indices = @transform_6, window_bounds = array<i64: 1, 16, 48>}, {transform_indices = @transform_7, window_bounds = array<i64: 1, 1, 48>}, {transform_indices = @transform_8, window_bounds = array<i64: 1, 16, 16>}, {transform_indices = @transform_9, window_bounds = array<i64: 1, 1, 16>}, {transform_indices = @transform_10, window_bounds = array<i64: 1, 1, 16>}, {transform_indices = @transform_11, window_bounds = array<i64: 1, 1, 16>}, {transform_indices = @transform_12, window_bounds = array<i64: 1, 16, 32>}, {transform_indices = @transform_13, window_bounds = array<i64: 1, 1, 32>}, {transform_indices = @transform_14, window_bounds = array<i64: 1, 32, 16>}, {transform_indices = @transform_15, window_bounds = array<i64: 1, 1, 16>}, {transform_indices = @transform_16, window_bounds = array<i64: 1, 1, 16>}, {transform_indices = @transform_17, window_bounds = array<i64: 1, 1, 16>}, {pipeline_mode = #tpu.pipeline_mode<synchronous>, transform_indices = @transform_18, window_bounds = array<i64: 16, 16>}, {pipeline_mode = #tpu.pipeline_mode<synchronous>, transform_indices = @transform_19, window_bounds = array<i64: 1, 16>}, {transform_indices = @transform_20, window_bounds = array<i64: 1, 16, 16>}]} {
    %c0 = arith.constant 0 : index
    %c0_0 = arith.constant 0 : index
    %c0_1 = arith.constant 0 : index
    %c0_2 = arith.constant 0 : index
    %0 = vector.load %arg2[%c0, %c0_0, %c0_1, %c0_2] : memref<1x1x17x32xbf16, #tpu.memory_space<vmem>>, vector<1x1x17x32xbf16>
    %1 = vector.shape_cast %0 : vector<1x1x17x32xbf16> to vector<17x32xbf16>
    %c0_3 = arith.constant 0 : index
    %c0_4 = arith.constant 0 : index
    %c0_5 = arith.constant 0 : index
    %2 = vector.load %arg3[%c0_3, %c0_4, %c0_5] : memref<1x32x16xbf16, #tpu.memory_space<vmem>>, vector<1x32x16xbf16>
    %3 = vector.shape_cast %2 : vector<1x32x16xbf16> to vector<32x16xbf16>
    %cst = arith.constant dense<0.000000e+00> : vector<17x16xf32>
    %4 = tpu.matmul %1, %3, %cst {dimension_numbers = #tpu.dot_dimension_numbers<[1], [0], [0], [1], [0, 0, 1, 1], [], []>} : vector<17x32xbf16>, vector<32x16xbf16>, vector<17x16xf32> -> vector<17x16xf32>
    %c0_6 = arith.constant 0 : index
    %c0_7 = arith.constant 0 : index
    %c0_8 = arith.constant 0 : index
    %5 = vector.load %arg4[%c0_6, %c0_7, %c0_8] : memref<1x1x16xf32, #tpu.memory_space<vmem>>, vector<1x1x16xf32>
    %6 = vector.shape_cast %5 : vector<1x1x16xf32> to vector<1x16xf32>
    %7 = vector.broadcast %6 : vector<1x16xf32> to vector<17x16xf32>
    %8 = arith.addf %4, %7 : vector<17x16xf32>
    %c0_i32 = arith.constant 0 : i32
    %9 = arith.cmpi eq, %arg1, %c0_i32 : i32
    %10 = arith.extui %9 : i1 to i32
    %c0_i32_9 = arith.constant 0 : i32
    %11 = arith.cmpi ne, %10, %c0_i32_9 : i32
    scf.if %11 {
      %c0_85 = arith.constant 0 : index
      %c0_86 = arith.constant 0 : index
      %153 = vector.load %arg23[%c0_85, %c0_86] : memref<17x16xf32, #tpu.memory_space<vmem>>, vector<17x16xf32>
      tpu.vector_store %arg23[%c0_85, %c0_86], %8 {strides = array<i32>} : memref<17x16xf32, #tpu.memory_space<vmem>>, vector<17x16xf32>,
    } else {
    }
    %c0_i32_10 = arith.constant 0 : i32
    %12 = arith.cmpi ne, %arg1, %c0_i32_10 : i32
    %13 = arith.extui %12 : i1 to i32
    %c0_i32_11 = arith.constant 0 : i32
    %14 = arith.cmpi ne, %13, %c0_i32_11 : i32
    scf.if %14 {
      %c0_85 = arith.constant 0 : index
      %c0_86 = arith.constant 0 : index
      %153 = vector.load %arg23[%c0_85, %c0_86] : memref<17x16xf32, #tpu.memory_space<vmem>>, vector<17x16xf32>
      %154 = arith.addf %153, %8 : vector<17x16xf32>
      %c0_87 = arith.constant 0 : index
      %c0_88 = arith.constant 0 : index
      %155 = vector.load %arg23[%c0_87, %c0_88] : memref<17x16xf32, #tpu.memory_space<vmem>>, vector<17x16xf32>
      tpu.vector_store %arg23[%c0_87, %c0_88], %154 {strides = array<i32>} : memref<17x16xf32, #tpu.memory_space<vmem>>, vector<17x16xf32>,
    } else {
    }
    %c0_i32_12 = arith.constant 0 : i32
    %15 = arith.cmpi eq, %arg1, %c0_i32_12 : i32
    %16 = arith.extui %15 : i1 to i32
    %c0_i32_13 = arith.constant 0 : i32
    %17 = arith.cmpi ne, %16, %c0_i32_13 : i32
    scf.if %17 {
      %c0_85 = arith.constant 0 : index
      %c0_86 = arith.constant 0 : index
      %c0_87 = arith.constant 0 : index
      %153 = vector.load %arg5[%c0_85, %c0_86, %c0_87] : memref<1x1x16xf32, #tpu.memory_space<vmem>>, vector<1x1x16xf32>
      %154 = vector.shape_cast %153 : vector<1x1x16xf32> to vector<1x16xf32>
      %155 = arith.truncf %154 : vector<1x16xf32> to vector<1x16xbf16>
      %c0_88 = arith.constant 0 : index
      %c0_89 = arith.constant 0 : index
      %156 = vector.load %arg6[%c0_88, %c0_89] : memref<16x32xbf16, #tpu.memory_space<vmem>>, vector<16x32xbf16>
      %cst_90 = arith.constant dense<0.000000e+00> : vector<1x32xf32>
      %157 = tpu.matmul %155, %156, %cst_90 {dimension_numbers = #tpu.dot_dimension_numbers<[1], [0], [0], [1], [0, 0, 1, 1], [], []>} : vector<1x16xbf16>, vector<16x32xbf16>, vector<1x32xf32> -> vector<1x32xf32>
      %c0_91 = arith.constant 0 : index
      %c0_92 = arith.constant 0 : index
      %158 = vector.load %arg7[%c0_91, %c0_92] : memref<1x32xf32, #tpu.memory_space<vmem>>, vector<1x32xf32>
      %159 = arith.addf %157, %158 : vector<1x32xf32>
      %160 = vector.extract_strided_slice %159 {offsets = [0, 0], sizes = [1, 16], strides = [1, 1]} : vector<1x32xf32> to vector<1x16xf32>
      %c0_93 = arith.constant 0 : index
      %c0_94 = arith.constant 0 : index
      %161 = vector.load %arg23[%c0_93, %c0_94] : memref<17x16xf32, #tpu.memory_space<vmem>>, vector<17x16xf32>
      %162 = vector.broadcast %160 : vector<1x16xf32> to vector<17x16xf32>
      %163 = arith.mulf %162, %161 : vector<17x16xf32>
      %164 = vector.extract_strided_slice %159 {offsets = [0, 16], sizes = [1, 16], strides = [1, 1]} : vector<1x32xf32> to vector<1x16xf32>
      %165 = vector.broadcast %164 : vector<1x16xf32> to vector<17x16xf32>
      %166 = arith.addf %163, %165 : vector<17x16xf32>
      %c0_95 = arith.constant 0 : index
      %c0_96 = arith.constant 0 : index
      %167 = vector.load %arg23[%c0_95, %c0_96] : memref<17x16xf32, #tpu.memory_space<vmem>>, vector<17x16xf32>
      tpu.vector_store %arg23[%c0_95, %c0_96], %166 {strides = array<i32>} : memref<17x16xf32, #tpu.memory_space<vmem>>, vector<17x16xf32>,
    } else {
    }
    %c0_14 = arith.constant 0 : index
    %c0_15 = arith.constant 0 : index
    %18 = vector.load %arg23[%c0_14, %c0_15] : memref<17x16xf32, #tpu.memory_space<vmem>>, vector<17x16xf32>
    %19 = arith.truncf %18 : vector<17x16xf32> to vector<17x16xbf16>
    %c0_16 = arith.constant 0 : index
    %c0_17 = arith.constant 0 : index
    %c0_18 = arith.constant 0 : index
    %20 = vector.load %arg8[%c0_16, %c0_17, %c0_18] : memref<1x16x48xbf16, #tpu.memory_space<vmem>>, vector<1x16x48xbf16>
    %21 = vector.shape_cast %20 : vector<1x16x48xbf16> to vector<16x48xbf16>
    %cst_19 = arith.constant dense<0.000000e+00> : vector<17x48xf32>
    %22 = tpu.matmul %19, %21, %cst_19 {dimension_numbers = #tpu.dot_dimension_numbers<[1], [0], [0], [1], [0, 0, 1, 1], [], []>} : vector<17x16xbf16>, vector<16x48xbf16>, vector<17x48xf32> -> vector<17x48xf32>
    %c0_20 = arith.constant 0 : index
    %c0_21 = arith.constant 0 : index
    %c0_22 = arith.constant 0 : index
    %23 = vector.load %arg9[%c0_20, %c0_21, %c0_22] : memref<1x1x48xf32, #tpu.memory_space<vmem>>, vector<1x1x48xf32>
    %24 = vector.shape_cast %23 : vector<1x1x48xf32> to vector<1x48xf32>
    %25 = vector.broadcast %24 : vector<1x48xf32> to vector<17x48xf32>
    %26 = arith.addf %22, %25 : vector<17x48xf32>
    %27 = vector.extract_strided_slice %26 {offsets = [0, 0], sizes = [17, 8], strides = [1, 1]} : vector<17x48xf32> to vector<17x8xf32>
    %cst_23 = arith.constant 0.353553385 : f32
    %28 = vector.broadcast %cst_23 : f32 to vector<17x8xf32>
    %29 = arith.mulf %27, %28 : vector<17x8xf32>
    %30 = vector.extract_strided_slice %26 {offsets = [0, 16], sizes = [17, 8], strides = [1, 1]} : vector<17x48xf32> to vector<17x8xf32>
    %31 = vector.extract_strided_slice %26 {offsets = [0, 32], sizes = [17, 8], strides = [1, 1]} : vector<17x48xf32> to vector<17x8xf32>
    %32 = arith.truncf %29 : vector<17x8xf32> to vector<17x8xbf16>
    %33 = arith.truncf %30 : vector<17x8xf32> to vector<17x8xbf16>
    %cst_24 = arith.constant dense<0.000000e+00> : vector<17x17xf32>
    %34 = tpu.matmul %32, %33, %cst_24 {dimension_numbers = #tpu.dot_dimension_numbers<[1], [1], [0], [0], [0, 0, 1, 0], [], []>} : vector<17x8xbf16>, vector<17x8xbf16>, vector<17x17xf32> -> vector<17x17xf32>
    %cst_25 = arith.constant dense<0xFF800000> : vector<17xf32>
    %35 = vector.multi_reduction <maximumf>, %34, %cst_25 [1] : vector<17x17xf32> to vector<17xf32>
    %36 = vector.shape_cast %35 : vector<17xf32> to vector<17x1xf32>
    %37 = vector.broadcast %36 : vector<17x1xf32> to vector<17x17xf32>
    %38 = arith.subf %34, %37 : vector<17x17xf32>
    %39 = math.exp %38 : vector<17x17xf32>
    %cst_26 = arith.constant dense<0.000000e+00> : vector<17xf32>
    %40 = vector.multi_reduction <add>, %39, %cst_26 [1] : vector<17x17xf32> to vector<17xf32>
    %41 = vector.shape_cast %40 : vector<17xf32> to vector<17x1xf32>
    %42 = arith.truncf %39 : vector<17x17xf32> to vector<17x17xbf16>
    %43 = arith.truncf %31 : vector<17x8xf32> to vector<17x8xbf16>
    %cst_27 = arith.constant dense<0.000000e+00> : vector<17x8xf32>
    %44 = tpu.matmul %42, %43, %cst_27 {dimension_numbers = #tpu.dot_dimension_numbers<[1], [0], [0], [1], [0, 0, 1, 1], [], []>} : vector<17x17xbf16>, vector<17x8xbf16>, vector<17x8xf32> -> vector<17x8xf32>
    %45 = tpu.reciprocal %41 {approx = true} : vector<17x1xf32> -> vector<17x1xf32>
    %46 = vector.broadcast %45 : vector<17x1xf32> to vector<17x8xf32>
    %47 = arith.mulf %44, %46 : vector<17x8xf32>
    %48 = arith.truncf %47 : vector<17x8xf32> to vector<17x8xbf16>
    %c0_28 = arith.constant 0 : index
    %c0_29 = arith.constant 0 : index
    %49 = vector.load %arg24[%c0_28, %c0_29] : memref<17x16xbf16, #tpu.memory_space<vmem>>, vector<17x8xbf16>
    tpu.vector_store %arg24[%c0_28, %c0_29], %48 {strides = array<i32>} : memref<17x16xbf16, #tpu.memory_space<vmem>>, vector<17x8xbf16>,
    %50 = vector.extract_strided_slice %26 {offsets = [0, 8], sizes = [17, 8], strides = [1, 1]} : vector<17x48xf32> to vector<17x8xf32>
    %cst_30 = arith.constant 0.353553385 : f32
    %51 = vector.broadcast %cst_30 : f32 to vector<17x8xf32>
    %52 = arith.mulf %50, %51 : vector<17x8xf32>
    %53 = vector.extract_strided_slice %26 {offsets = [0, 24], sizes = [17, 8], strides = [1, 1]} : vector<17x48xf32> to vector<17x8xf32>
    %54 = vector.extract_strided_slice %26 {offsets = [0, 40], sizes = [17, 8], strides = [1, 1]} : vector<17x48xf32> to vector<17x8xf32>
    %55 = arith.truncf %52 : vector<17x8xf32> to vector<17x8xbf16>
    %56 = arith.truncf %53 : vector<17x8xf32> to vector<17x8xbf16>
    %cst_31 = arith.constant dense<0.000000e+00> : vector<17x17xf32>
    %57 = tpu.matmul %55, %56, %cst_31 {dimension_numbers = #tpu.dot_dimension_numbers<[1], [1], [0], [0], [0, 0, 1, 0], [], []>} : vector<17x8xbf16>, vector<17x8xbf16>, vector<17x17xf32> -> vector<17x17xf32>
    %cst_32 = arith.constant dense<0xFF800000> : vector<17xf32>
    %58 = vector.multi_reduction <maximumf>, %57, %cst_32 [1] : vector<17x17xf32> to vector<17xf32>
    %59 = vector.shape_cast %58 : vector<17xf32> to vector<17x1xf32>
    %60 = vector.broadcast %59 : vector<17x1xf32> to vector<17x17xf32>
    %61 = arith.subf %57, %60 : vector<17x17xf32>
    %62 = math.exp %61 : vector<17x17xf32>
    %cst_33 = arith.constant dense<0.000000e+00> : vector<17xf32>
    %63 = vector.multi_reduction <add>, %62, %cst_33 [1] : vector<17x17xf32> to vector<17xf32>
    %64 = vector.shape_cast %63 : vector<17xf32> to vector<17x1xf32>
    %65 = arith.truncf %62 : vector<17x17xf32> to vector<17x17xbf16>
    %66 = arith.truncf %54 : vector<17x8xf32> to vector<17x8xbf16>
    %cst_34 = arith.constant dense<0.000000e+00> : vector<17x8xf32>
    %67 = tpu.matmul %65, %66, %cst_34 {dimension_numbers = #tpu.dot_dimension_numbers<[1], [0], [0], [1], [0, 0, 1, 1], [], []>} : vector<17x17xbf16>, vector<17x8xbf16>, vector<17x8xf32> -> vector<17x8xf32>
    %68 = tpu.reciprocal %64 {approx = true} : vector<17x1xf32> -> vector<17x1xf32>
    %69 = vector.broadcast %68 : vector<17x1xf32> to vector<17x8xf32>
    %70 = arith.mulf %67, %69 : vector<17x8xf32>
    %71 = arith.truncf %70 : vector<17x8xf32> to vector<17x8xbf16>
    %c0_35 = arith.constant 0 : index
    %c8 = arith.constant 8 : index
    %72 = vector.load %arg24[%c0_35, %c8] : memref<17x16xbf16, #tpu.memory_space<vmem>>, vector<17x8xbf16>
    tpu.vector_store %arg24[%c0_35, %c8], %71 {strides = array<i32>} : memref<17x16xbf16, #tpu.memory_space<vmem>>, vector<17x8xbf16>,
    %c0_36 = arith.constant 0 : index
    %c0_37 = arith.constant 0 : index
    %73 = vector.load %arg24[%c0_36, %c0_37] : memref<17x16xbf16, #tpu.memory_space<vmem>>, vector<17x16xbf16>
    %c0_38 = arith.constant 0 : index
    %c0_39 = arith.constant 0 : index
    %c0_40 = arith.constant 0 : index
    %74 = vector.load %arg10[%c0_38, %c0_39, %c0_40] : memref<1x16x16xbf16, #tpu.memory_space<vmem>>, vector<1x16x16xbf16>
    %75 = vector.shape_cast %74 : vector<1x16x16xbf16> to vector<16x16xbf16>
    %cst_41 = arith.constant dense<0.000000e+00> : vector<17x16xf32>
    %76 = tpu.matmul %73, %75, %cst_41 {dimension_numbers = #tpu.dot_dimension_numbers<[1], [0], [0], [1], [0, 0, 1, 1], [], []>} : vector<17x16xbf16>, vector<16x16xbf16>, vector<17x16xf32> -> vector<17x16xf32>
    %c0_42 = arith.constant 0 : index
    %c0_43 = arith.constant 0 : index
    %c0_44 = arith.constant 0 : index
    %77 = vector.load %arg11[%c0_42, %c0_43, %c0_44] : memref<1x1x16xf32, #tpu.memory_space<vmem>>, vector<1x1x16xf32>
    %78 = vector.shape_cast %77 : vector<1x1x16xf32> to vector<1x16xf32>
    %79 = vector.broadcast %78 : vector<1x16xf32> to vector<17x16xf32>
    %80 = arith.addf %76, %79 : vector<17x16xf32>
    %81 = arith.addf %18, %80 : vector<17x16xf32>
    %c0_45 = arith.constant 0 : index
    %c0_46 = arith.constant 0 : index
    %c0_47 = arith.constant 0 : index
    %82 = vector.load %arg12[%c0_45, %c0_46, %c0_47] : memref<1x1x16xf32, #tpu.memory_space<vmem>>, vector<1x1x16xf32>
    %83 = vector.shape_cast %82 : vector<1x1x16xf32> to vector<1x16xf32>
    %c0_48 = arith.constant 0 : index
    %c0_49 = arith.constant 0 : index
    %c0_50 = arith.constant 0 : index
    %84 = vector.load %arg13[%c0_48, %c0_49, %c0_50] : memref<1x1x16xf32, #tpu.memory_space<vmem>>, vector<1x1x16xf32>
    %85 = vector.shape_cast %84 : vector<1x1x16xf32> to vector<1x16xf32>
    %cst_51 = arith.constant dense<0.000000e+00> : vector<17xf32>
    %86 = vector.multi_reduction <add>, %81, %cst_51 [1] : vector<17x16xf32> to vector<17xf32>
    %87 = vector.shape_cast %86 : vector<17xf32> to vector<17x1xf32>
    %cst_52 = arith.constant 1.600000e+01 : f32
    %88 = vector.broadcast %cst_52 : f32 to vector<17x1xf32>
    %89 = arith.divf %87, %88 : vector<17x1xf32>
    %90 = vector.broadcast %89 : vector<17x1xf32> to vector<17x16xf32>
    %91 = arith.subf %81, %90 : vector<17x16xf32>
    %92 = arith.mulf %91, %91 : vector<17x16xf32>
    %cst_53 = arith.constant dense<0.000000e+00> : vector<17xf32>
    %93 = vector.multi_reduction <add>, %92, %cst_53 [1] : vector<17x16xf32> to vector<17xf32>
    %94 = vector.shape_cast %93 : vector<17xf32> to vector<17x1xf32>
    %cst_54 = arith.constant 1.600000e+01 : f32
    %95 = vector.broadcast %cst_54 : f32 to vector<17x1xf32>
    %96 = arith.divf %94, %95 : vector<17x1xf32>
    %cst_55 = arith.constant 9.99999974E-6 : f32
    %97 = vector.broadcast %cst_55 : f32 to vector<17x1xf32>
    %98 = arith.addf %96, %97 : vector<17x1xf32>
    %99 = math.rsqrt %98 : vector<17x1xf32>
    %100 = vector.broadcast %99 : vector<17x1xf32> to vector<17x16xf32>
    %101 = arith.mulf %91, %100 : vector<17x16xf32>
    %102 = vector.broadcast %83 : vector<1x16xf32> to vector<17x16xf32>
    %103 = arith.mulf %101, %102 : vector<17x16xf32>
    %104 = vector.broadcast %85 : vector<1x16xf32> to vector<17x16xf32>
    %105 = arith.addf %103, %104 : vector<17x16xf32>
    %106 = arith.truncf %105 : vector<17x16xf32> to vector<17x16xbf16>
    %c0_56 = arith.constant 0 : index
    %c0_57 = arith.constant 0 : index
    %c0_58 = arith.constant 0 : index
    %107 = vector.load %arg14[%c0_56, %c0_57, %c0_58] : memref<1x16x32xbf16, #tpu.memory_space<vmem>>, vector<1x16x32xbf16>
    %108 = vector.shape_cast %107 : vector<1x16x32xbf16> to vector<16x32xbf16>
    %cst_59 = arith.constant dense<0.000000e+00> : vector<17x32xf32>
    %109 = tpu.matmul %106, %108, %cst_59 {dimension_numbers = #tpu.dot_dimension_numbers<[1], [0], [0], [1], [0, 0, 1, 1], [], []>} : vector<17x16xbf16>, vector<16x32xbf16>, vector<17x32xf32> -> vector<17x32xf32>
    %c0_60 = arith.constant 0 : index
    %c0_61 = arith.constant 0 : index
    %c0_62 = arith.constant 0 : index
    %110 = vector.load %arg15[%c0_60, %c0_61, %c0_62] : memref<1x1x32xf32, #tpu.memory_space<vmem>>, vector<1x1x32xf32>
    %111 = vector.shape_cast %110 : vector<1x1x32xf32> to vector<1x32xf32>
    %112 = vector.broadcast %111 : vector<1x32xf32> to vector<17x32xf32>
    %113 = arith.addf %109, %112 : vector<17x32xf32>
    %cst_63 = arith.constant 0.000000e+00 : f32
    %114 = vector.broadcast %cst_63 : f32 to vector<17x32xf32>
    %115 = arith.maximumf %113, %114 : vector<17x32xf32>
    %116 = arith.truncf %115 : vector<17x32xf32> to vector<17x32xbf16>
    %c0_64 = arith.constant 0 : index
    %c0_65 = arith.constant 0 : index
    %c0_66 = arith.constant 0 : index
    %117 = vector.load %arg16[%c0_64, %c0_65, %c0_66] : memref<1x32x16xbf16, #tpu.memory_space<vmem>>, vector<1x32x16xbf16>
    %118 = vector.shape_cast %117 : vector<1x32x16xbf16> to vector<32x16xbf16>
    %cst_67 = arith.constant dense<0.000000e+00> : vector<17x16xf32>
    %119 = tpu.matmul %116, %118, %cst_67 {dimension_numbers = #tpu.dot_dimension_numbers<[1], [0], [0], [1], [0, 0, 1, 1], [], []>} : vector<17x32xbf16>, vector<32x16xbf16>, vector<17x16xf32> -> vector<17x16xf32>
    %c0_68 = arith.constant 0 : index
    %c0_69 = arith.constant 0 : index
    %c0_70 = arith.constant 0 : index
    %120 = vector.load %arg17[%c0_68, %c0_69, %c0_70] : memref<1x1x16xf32, #tpu.memory_space<vmem>>, vector<1x1x16xf32>
    %121 = vector.shape_cast %120 : vector<1x1x16xf32> to vector<1x16xf32>
    %122 = vector.broadcast %121 : vector<1x16xf32> to vector<17x16xf32>
    %123 = arith.addf %119, %122 : vector<17x16xf32>
    %124 = arith.addf %105, %123 : vector<17x16xf32>
    %c0_71 = arith.constant 0 : index
    %c0_72 = arith.constant 0 : index
    %c0_73 = arith.constant 0 : index
    %125 = vector.load %arg18[%c0_71, %c0_72, %c0_73] : memref<1x1x16xf32, #tpu.memory_space<vmem>>, vector<1x1x16xf32>
    %126 = vector.shape_cast %125 : vector<1x1x16xf32> to vector<1x16xf32>
    %c0_74 = arith.constant 0 : index
    %c0_75 = arith.constant 0 : index
    %c0_76 = arith.constant 0 : index
    %127 = vector.load %arg19[%c0_74, %c0_75, %c0_76] : memref<1x1x16xf32, #tpu.memory_space<vmem>>, vector<1x1x16xf32>
    %128 = vector.shape_cast %127 : vector<1x1x16xf32> to vector<1x16xf32>
    %cst_77 = arith.constant dense<0.000000e+00> : vector<17xf32>
    %129 = vector.multi_reduction <add>, %124, %cst_77 [1] : vector<17x16xf32> to vector<17xf32>
    %130 = vector.shape_cast %129 : vector<17xf32> to vector<17x1xf32>
    %cst_78 = arith.constant 1.600000e+01 : f32
    %131 = vector.broadcast %cst_78 : f32 to vector<17x1xf32>
    %132 = arith.divf %130, %131 : vector<17x1xf32>
    %133 = vector.broadcast %132 : vector<17x1xf32> to vector<17x16xf32>
    %134 = arith.subf %124, %133 : vector<17x16xf32>
    %135 = arith.mulf %134, %134 : vector<17x16xf32>
    %cst_79 = arith.constant dense<0.000000e+00> : vector<17xf32>
    %136 = vector.multi_reduction <add>, %135, %cst_79 [1] : vector<17x16xf32> to vector<17xf32>
    %137 = vector.shape_cast %136 : vector<17xf32> to vector<17x1xf32>
    %cst_80 = arith.constant 1.600000e+01 : f32
    %138 = vector.broadcast %cst_80 : f32 to vector<17x1xf32>
    %139 = arith.divf %137, %138 : vector<17x1xf32>
    %cst_81 = arith.constant 9.99999974E-6 : f32
    %140 = vector.broadcast %cst_81 : f32 to vector<17x1xf32>
    %141 = arith.addf %139, %140 : vector<17x1xf32>
    %142 = math.rsqrt %141 : vector<17x1xf32>
    %143 = vector.broadcast %142 : vector<17x1xf32> to vector<17x16xf32>
    %144 = arith.mulf %134, %143 : vector<17x16xf32>
    %145 = vector.broadcast %126 : vector<1x16xf32> to vector<17x16xf32>
    %146 = arith.mulf %144, %145 : vector<17x16xf32>
    %147 = vector.broadcast %128 : vector<1x16xf32> to vector<17x16xf32>
    %148 = arith.addf %146, %147 : vector<17x16xf32>
    %c0_82 = arith.constant 0 : index
    %c0_83 = arith.constant 0 : index
    %149 = vector.load %arg23[%c0_82, %c0_83] : memref<17x16xf32, #tpu.memory_space<vmem>>, vector<17x16xf32>
    tpu.vector_store %arg23[%c0_82, %c0_83], %148 {strides = array<i32>} : memref<17x16xf32, #tpu.memory_space<vmem>>, vector<17x16xf32>,
    %c2_i32 = arith.constant 2 : i32
    %150 = arith.cmpi eq, %arg1, %c2_i32 : i32
    %151 = arith.extui %150 : i1 to i32
    %c0_i32_84 = arith.constant 0 : i32
    %152 = arith.cmpi ne, %151, %c0_i32_84 : i32
    scf.if %152 {
      %153 = vector.extract_strided_slice %148 {offsets = [1, 0], sizes = [16, 16], strides = [1, 1]} : vector<17x16xf32> to vector<16x16xf32>
      %154 = arith.truncf %153 : vector<16x16xf32> to vector<16x16xbf16>
      %c0_85 = arith.constant 0 : index
      %c0_86 = arith.constant 0 : index
      %155 = vector.load %arg20[%c0_85, %c0_86] : memref<16x16xbf16, #tpu.memory_space<vmem>>, vector<16x16xbf16>
      %cst_87 = arith.constant dense<0.000000e+00> : vector<16x16xf32>
      %156 = tpu.matmul %154, %155, %cst_87 {dimension_numbers = #tpu.dot_dimension_numbers<[1], [0], [0], [1], [0, 0, 1, 1], [], []>} : vector<16x16xbf16>, vector<16x16xbf16>, vector<16x16xf32> -> vector<16x16xf32>
      %c0_88 = arith.constant 0 : index
      %c0_89 = arith.constant 0 : index
      %157 = vector.load %arg21[%c0_88, %c0_89] : memref<1x16xf32, #tpu.memory_space<vmem>>, vector<1x16xf32>
      %158 = vector.broadcast %157 : vector<1x16xf32> to vector<16x16xf32>
      %159 = arith.addf %156, %158 : vector<16x16xf32>
      %c0_90 = arith.constant 0 : index
      %c0_91 = arith.constant 0 : index
      %c0_92 = arith.constant 0 : index
      %160 = vector.load %arg22[%c0_90, %c0_91, %c0_92] : memref<1x16x16xf32, #tpu.memory_space<vmem>>, vector<1x16x16xf32>
      %161 = vector.shape_cast %160 : vector<1x16x16xf32> to vector<16x16xf32>
      %162 = vector.shape_cast %159 : vector<16x16xf32> to vector<1x16x16xf32>
      tpu.vector_store %arg22[%c0_90, %c0_91, %c0_92], %162 {strides = array<i32>} : memref<1x16x16xf32, #tpu.memory_space<vmem>>, vector<1x16x16xf32>,
    } else {
    }
    return
  }
  func.func @transform_0(%arg0: i32, %arg1: i32) -> (i32, i32, i32, i32) {
    %c0_i32 = arith.constant 0 : i32
    %c0_i32_0 = arith.constant 0 : i32
    %c0_i32_1 = arith.constant 0 : i32
    return %arg1, %arg0, %c0_i32, %c0_i32_0 : i32, i32, i32, i32
  }
  func.func @transform_1(%arg0: i32, %arg1: i32) -> (i32, i32, i32) {
    %c0_i32 = arith.constant 0 : i32
    %c0_i32_0 = arith.constant 0 : i32
    %c0_i32_1 = arith.constant 0 : i32
    return %arg1, %c0_i32, %c0_i32_0 : i32, i32, i32
  }
  func.func @transform_2(%arg0: i32, %arg1: i32) -> (i32, i32, i32) {
    %c0_i32 = arith.constant 0 : i32
    %c0_i32_0 = arith.constant 0 : i32
    %c0_i32_1 = arith.constant 0 : i32
    return %arg1, %c0_i32, %c0_i32_0 : i32, i32, i32
  }
  func.func @transform_3(%arg0: i32, %arg1: i32) -> (i32, i32, i32) {
    %c0_i32 = arith.constant 0 : i32
    %c0_i32_0 = arith.constant 0 : i32
    %c0_i32_1 = arith.constant 0 : i32
    return %arg0, %c0_i32, %c0_i32_0 : i32, i32, i32
  }
  func.func @transform_4(%arg0: i32, %arg1: i32) -> (i32, i32) {
    %c0_i32 = arith.constant 0 : i32
    %c0_i32_0 = arith.constant 0 : i32
    %c0_i32_1 = arith.constant 0 : i32
    return %c0_i32, %c0_i32_0 : i32, i32
  }
  func.func @transform_5(%arg0: i32, %arg1: i32) -> (i32, i32) {
    %c0_i32 = arith.constant 0 : i32
    %c0_i32_0 = arith.constant 0 : i32
    %c0_i32_1 = arith.constant 0 : i32
    return %c0_i32, %c0_i32_0 : i32, i32
  }
  func.func @transform_6(%arg0: i32, %arg1: i32) -> (i32, i32, i32) {
    %c0_i32 = arith.constant 0 : i32
    %c0_i32_0 = arith.constant 0 : i32
    %c0_i32_1 = arith.constant 0 : i32
    return %arg1, %c0_i32, %c0_i32_0 : i32, i32, i32
  }
  func.func @transform_7(%arg0: i32, %arg1: i32) -> (i32, i32, i32) {
    %c0_i32 = arith.constant 0 : i32
    %c0_i32_0 = arith.constant 0 : i32
    %c0_i32_1 = arith.constant 0 : i32
    return %arg1, %c0_i32, %c0_i32_0 : i32, i32, i32
  }
  func.func @transform_8(%arg0: i32, %arg1: i32) -> (i32, i32, i32) {
    %c0_i32 = arith.constant 0 : i32
    %c0_i32_0 = arith.constant 0 : i32
    %c0_i32_1 = arith.constant 0 : i32
    return %arg1, %c0_i32, %c0_i32_0 : i32, i32, i32
  }
  func.func @transform_9(%arg0: i32, %arg1: i32) -> (i32, i32, i32) {
    %c0_i32 = arith.constant 0 : i32
    %c0_i32_0 = arith.constant 0 : i32
    %c0_i32_1 = arith.constant 0 : i32
    return %arg1, %c0_i32, %c0_i32_0 : i32, i32, i32
  }
  func.func @transform_10(%arg0: i32, %arg1: i32) -> (i32, i32, i32) {
    %c0_i32 = arith.constant 0 : i32
    %c0_i32_0 = arith.constant 0 : i32
    %c0_i32_1 = arith.constant 0 : i32
    return %arg1, %c0_i32, %c0_i32_0 : i32, i32, i32
  }
  func.func @transform_11(%arg0: i32, %arg1: i32) -> (i32, i32, i32) {
    %c0_i32 = arith.constant 0 : i32
    %c0_i32_0 = arith.constant 0 : i32
    %c0_i32_1 = arith.constant 0 : i32
    return %arg1, %c0_i32, %c0_i32_0 : i32, i32, i32
  }
  func.func @transform_12(%arg0: i32, %arg1: i32) -> (i32, i32, i32) {
    %c0_i32 = arith.constant 0 : i32
    %c0_i32_0 = arith.constant 0 : i32
    %c0_i32_1 = arith.constant 0 : i32
    return %arg1, %c0_i32, %c0_i32_0 : i32, i32, i32
  }
  func.func @transform_13(%arg0: i32, %arg1: i32) -> (i32, i32, i32) {
    %c0_i32 = arith.constant 0 : i32
    %c0_i32_0 = arith.constant 0 : i32
    %c0_i32_1 = arith.constant 0 : i32
    return %arg1, %c0_i32, %c0_i32_0 : i32, i32, i32
  }
  func.func @transform_14(%arg0: i32, %arg1: i32) -> (i32, i32, i32) {
    %c0_i32 = arith.constant 0 : i32
    %c0_i32_0 = arith.constant 0 : i32
    %c0_i32_1 = arith.constant 0 : i32
    return %arg1, %c0_i32, %c0_i32_0 : i32, i32, i32
  }
  func.func @transform_15(%arg0: i32, %arg1: i32) -> (i32, i32, i32) {
    %c0_i32 = arith.constant 0 : i32
    %c0_i32_0 = arith.constant 0 : i32
    %c0_i32_1 = arith.constant 0 : i32
    return %arg1, %c0_i32, %c0_i32_0 : i32, i32, i32
  }
  func.func @transform_16(%arg0: i32, %arg1: i32) -> (i32, i32, i32) {
    %c0_i32 = arith.constant 0 : i32
    %c0_i32_0 = arith.constant 0 : i32
    %c0_i32_1 = arith.constant 0 : i32
    return %arg1, %c0_i32, %c0_i32_0 : i32, i32, i32
  }
  func.func @transform_17(%arg0: i32, %arg1: i32) -> (i32, i32, i32) {
    %c0_i32 = arith.constant 0 : i32
    %c0_i32_0 = arith.constant 0 : i32
    %c0_i32_1 = arith.constant 0 : i32
    return %arg1, %c0_i32, %c0_i32_0 : i32, i32, i32
  }
  func.func @transform_18(%arg0: i32, %arg1: i32) -> (i32, i32) {
    %c0_i32 = arith.constant 0 : i32
    %c0_i32_0 = arith.constant 0 : i32
    %c0_i32_1 = arith.constant 0 : i32
    return %c0_i32, %c0_i32_0 : i32, i32
  }
  func.func @transform_19(%arg0: i32, %arg1: i32) -> (i32, i32) {
    %c0_i32 = arith.constant 0 : i32
    %c0_i32_0 = arith.constant 0 : i32
    %c0_i32_1 = arith.constant 0 : i32
    return %c0_i32, %c0_i32_0 : i32, i32
  }
  func.func @transform_20(%arg0: i32, %arg1: i32) -> (i32, i32, i32) {
    %c0_i32 = arith.constant 0 : i32
    %c0_i32_0 = arith.constant 0 : i32
    %c0_i32_1 = arith.constant 0 : i32
    return %arg0, %c0_i32, %c0_i32_0 : i32, i32, i32
  }
}

</mosaic_0001>

<bundles_post_ra>
// kernel: biomedclipseg_forward.5
= control target key start
LH: loop header
LB: loop body
LE: loop exit
PB: predicated region body
PF: predicated region fallthrough
CT: control target
= control target key end

     0   :  { %s2689_s22 = smov 0   ;;  %s2691_s23 = smov 0   ;;  %s3010_s0 = inlined_call_operand.vmem [shape: bf16[3,2,17,32], index: 0, kind: input, shape index: {}]   ;;  %s3011_s1 = inlined_call_operand.vmem [shape: bf16[3,32,16], index: 1, kind: input, shape index: {}]   ;;  %s3012_s2 = inlined_call_operand.vmem [shape: f32[3,1,16], index: 2, kind: input, shape index: {}]   ;;  %s3013_s3 = inlined_call_operand.vmem [shape: f32[2,1,16], index: 3, kind: input, shape index: {}]   ;;  %s3014_s4 = inlined_call_operand.vmem [shape: bf16[16,32], index: 4, kind: input, shape index: {}]   ;;  %s3015_s5 = inlined_call_operand.vmem [shape: f32[1,32], index: 5, kind: input, shape index: {}]   ;;  %s3016_s6 = inlined_call_operand.vmem [shape: bf16[3,16,48], index: 6, kind: input, shape index: {}]   ;;  %s3017_s7 = inlined_call_operand.vmem [shape: f32[3,1,48], index: 7, kind: input, shape index: {}]   ;;  %s3018_s8 = inlined_call_operand.vmem [shape: bf16[3,16,16], index: 8, kind: input, shape index: {}]   ;;  %s3019_s9 = inlined_call_operand.vmem [shape: f32[3,1,16], index: 9, kind: input, shape index: {}]   ;;  %s3020_s10 = inlined_call_operand.vmem [shape: f32[3,1,16], index: 10, kind: input, shape index: {}]   ;;  %s3021_s11 = inlined_call_operand.vmem [shape: f32[3,1,16], index: 11, kind: input, shape index: {}]   ;;  %s3022_s12 = inlined_call_operand.vmem [shape: bf16[3,16,32], index: 12, kind: input, shape index: {}]   ;;  %s3023_s13 = inlined_call_operand.vmem [shape: f32[3,1,32], index: 13, kind: input, shape index: {}]   ;;  %s3024_s14 = inlined_call_operand.vmem [shape: bf16[3,32,16], index: 14, kind: input, shape index: {}]   ;;  %s3025_s15 = inlined_call_operand.vmem [shape: f32[3,1,16], index: 15, kind: input, shape index: {}]   ;;  %s3026_s16 = inlined_call_operand.vmem [shape: f32[3,1,16], index: 16, kind: input, shape index: {}]   ;;  %s3027_s17 = inlined_call_operand.vmem [shape: f32[3,1,16], index: 17, kind: input, shape index: {}]   ;;  %s3028_s18 = inlined_call_operand.vmem [shape: bf16[16,16], index: 18, kind: input, shape index: {}]   ;;  %s3029_s19 = inlined_call_operand.vmem [shape: f32[1,16], index: 19, kind: input, shape index: {}]   ;;  %s3030_s20 = inlined_call_operand.vmem [shape: f32[2,16,16], index: 20, kind: output, shape index: {}]  }
   0x1   :  { %3036 = sst [smem:[#allocation10_spill]] %s3010_s0  ;;  %s2693_s24 = smov 0  }
   0x2   :  { %3037 = sst [smem:[#allocation11_spill]] %s3011_s1  ;;  %s2687_s1 = smov 0  }
   0x3   :  { %3038 = sst [smem:[#allocation12_spill]] %s3012_s2  ;;  %s2695_s2 = smov 0  }
   0x4   :  { %3039 = sst [smem:[#allocation13_spill]] %s3013_s3 }
   0x5   :  { %3040 = sst [smem:[#allocation14_spill]] %s3014_s4 }
   0x6   :  { %3041 = sst [smem:[#allocation15_spill]] %s3015_s5 }
   0x7   :  { %3042 = sst [smem:[#allocation16_spill]] %s3018_s8 }
   0x8   :  { %3043 = sst [smem:[#allocation17_spill]] %s3024_s14 }
   0x9   :  { %3044 = sst [smem:[#allocation18_spill]] %s3026_s16 }
   0xa   :  { %3045 = sst [smem:[#allocation19_spill]] %s3028_s18 }
   0xb   :  { %3046 = sst [smem:[#allocation20_spill]] %s3029_s19 }
   0xc LB: > { %3047 = sst [smem:[#allocation4_spill]] %s2552_s1  ;;  %s39_s25 = sadd.s32 1, %s2560_s23  ;;  %s2568_s2 = sphi %s2695_s2, %s30_s2   ;;  %s2564_s24 = sphi %s2693_s24, %s3085_s24   ;;  %s2560_s23 = sphi %s2691_s23, %s3084_s23   ;;  %s2556_s22 = sphi %s2689_s22, %s3083_s22   ;;  %s2552_s1 = sphi %s2687_s1, %s3082_s1  }
   0xd   : > { %3048 = sst [smem:[#allocation5_spill]] %s2560_s23  ;;  %s42_s3 = sadd.s32 1, %s2564_s24 }
   0xe   : > { %3049 = sst [smem:[#allocation6_spill]] %s2564_s24  ;;  %p40_p0 = scmp.ge.s32.totalorder %s39_s25, 3 }
   0xf   : > { %3050 = sst [smem:[#allocation7_spill]] %s2568_s2  ;;  %p2227_p1 = scmp.ge.s32.totalorder %s2568_s2, 1 }
  0x10   : > { %p710_p2 = scmp.lt.s32.totalorder %s2568_s2, 7  ;;  %s3087_s25 = smov (%p40_p0, %s39_s25), 0 }
  0x11   : > { %3051 = sst [smem:[#allocation8_spill]] %s3087_s25  ;;  %s3089_s3 = smov (!%p40_p0, %s42_s3), %s2564_s24 }
  0x12   : > { %p711_p3 = pnand %p2227_p1, %p710_p2  ;;  %p44_p4 = scmp.ge.s32.totalorder %s3089_s3, 2 }
  0x13   : > { %p827_p5 = scmp.lt.s32.totalorder (!%p711_p3), %s2552_s1, 2  ;;  %p829_p6 = scmp.lt.s32.totalorder (!%p711_p3), %s2556_s22, 1 }
  0x14   : > { %s3091_s3 = smov (%p44_p4, %s3089_s3), 0  ;;  %714 = sbr.rel (%p711_p3) target bundleno = 3428 (0xd64), region = 100 }
  0x15   : > { %3052 = sst [smem:[#allocation9_spill]] %s3091_s3 }
  0x16   : > { %s3053_s30 = sld [smem:[#allocation11_spill]] (!%p711_p3) }
  0x17   : > { %s3055_s14 = sld [smem:[#allocation17_spill]] (!%p711_p3) }
  0x18   : > { %s3057_s29 = sld [smem:[#allocation13_spill]] (!%p711_p3) }
  0x19   : > { %s2721_s26 = scalar_select %p827_p5, %s2552_s1, 2  ;;  %vm931_vm0 = vcmask 261120  }
  0x1a   : > { %s3093_s22 = smov (!%p829_p6, %s2556_s22), 1  ;;  %s3058_s21 = sld [smem:[#allocation10_spill]] }
  0x1b   : > { %s2296_s27 = sshll.u32 %s2721_s26, 4  ;;  %s2727_s28 = sshll.u32 %s2721_s26, 3 }
  0x1c   : > { %s840_s0 = scalar_lea.vmem %s3053_s30, %s2296_s27  ;;  %s890_s8 = scalar_lea.vmem %s3027_s17, %s2721_s26 }
  0x1d   : > { %v2481_v0 = vld [vmem:[%s840_s0 + $0x8] sm:$0xff]   ;;  %v2482_v1 = vld [vmem:[%s840_s0] sm:$0xff]   ;;  %s2767_s1 = scalar_lea.vmem %s3055_s14, %s2296_s27  ;;  %s2427_s25 = smul.u32 3, %s3093_s22 }
  0x1e   : > { %2345 = vmatprep.subr.bf16.mxu0 %v2481_v0  ;;  %s2428_s4 = smul.u32 6, %s2721_s26  ;;  %s846_s5 = scalar_lea.vmem %s3057_s29, %s3093_s22 }
  0x1f   : > { %2346 = vmatpush3.bf16.msra.mxu0 %v2481_v0  ;;  %s2301_s14 = sshll.u32 %s3093_s22, 4 }
  0x20   : > { %2347 = vmatprep.subr.bf16.mxu0 %v2482_v1  ;;  %s833_s0 = sadd.s32 %s2428_s4, %s2427_s25  ;;  %s2791_s2 = scalar_lea.vmem %s3030_s20, %s2301_s14 }
  0x21   : > { %s2228_s24 = sshll.u32 %s833_s0, 2  ;;  %s3059_s4 = sld [smem:[#allocation12_spill]] }
  0x22   : > { %s835_s19 = scalar_lea.vmem %s3058_s21, %s2228_s24  ;;  %s3060_s14 = sld [smem:[#allocation4_spill]] }
  0x23   : > { %2348 = vmatpush3.bf16.msra.mxu0 %v2482_v1  ;;  %v2483_v2 = vld [vmem:[%s835_s19] sm:$0xff]   ;;  %v2484_v3 = vld [vmem:[%s835_s19 + $0x8] ss:$0 sps:$4 sm:$0x11]  }
  0x24   : > { %2349 = vmatprep.mubr.msk.bf16.mxu0 %vm931_vm0, %v2483_v2 }
  0x26   : > { %2350 = vmatmul.mubr.msk.bf16.vlgmr.msra.gmra.mxu0 %vm931_vm0, %v2484_v3 }
  0x27   : > { %s843_s25 = scalar_lea.vmem %s3059_s4, %s2721_s26 }
  0x28   : > { %v2241_v4 = vld [vmem:[%s843_s25] ss:$0 sm:$0xff]  ;;  %p2248_p7 = scmp.ne.s32.totalorder %s3060_s14, 0 }
  0xe6   : > { %v2351_v5 = vpop.f32.mrf.mxu0 }
  0xe7   : > { %v981_v6 = vadd.f32 %v2351_v5, %v2241_v4 }
  0xe8   : > { %v972_v7 = vpop.f32.mrf.mxu0 }
  0xe9   : > { %v973_v8 = vadd.f32 %v2241_v4, %v972_v7  ;;  %989 = sbr.rel (%p2248_p7) target bundleno = 241 (0xf1), region = 104 }
  0xea   : > { %v2352_v9 = vpop.f32.mrf.mxu0 }
  0xec   : > { %v975_v10 = vpop.f32.mrf.mxu0 }
  0xed   : > { %v976_v11 = vadd.f32 %v2241_v4, %v975_v10 }
  0xee   : > { %vm990_vm1 = vcmask 130048   ;;  %vm993_vm2 = vcmask 122880  }
  0xef   : > { %991 = vst.msk [vmem:[#allocation2] sm:$0xff] %vm990_vm1, %v973_v8  ;;  %992 = vst.msk [vmem:[#allocation2 + $0x8] sm:$0xff] %vm990_vm1, %v976_v11 }
  0xf0   : > { %994 = vst.msk [vmem:[#allocation2 + $0x10] sm:$0x1] %vm993_vm2, %v981_v6 }
  0xf1 PF: > { %s3061_s16 = sld [smem:[#allocation4_spill]] }
  0xf7   : > { %p2249_p8 = scmp.eq.s32.totalorder %s3061_s16, 0 }
  0xf9   : > { %998 = sbr.rel (%p2249_p8) target bundleno = 259 (0x103), region = 108 }
  0xfe   : > { %v999_v12 = vld [vmem:[#allocation2] sm:$0xff]  ;;  %vm1005_vm3 = vcmask 130048   ;;  %v1000_v13 = vld [vmem:[#allocation2 + $0x8] sm:$0xff]  ;;  %v1001_v14 = vld [vmem:[#allocation2 + $0x10] sm:$0x1]  ;;  %vm1008_vm4 = vcmask 122880  }
  0xff   : > { %v1002_v15 = vadd.f32 %v999_v12, %v973_v8  ;;  %v1003_v16 = vadd.f32 %v1000_v13, %v976_v11  ;;  %v1004_v17 = vadd.f32 %v1001_v14, %v981_v6 }
 0x101   : > { %1006 = vst.msk [vmem:[#allocation2] sm:$0xff] %vm1005_vm3, %v1002_v15  ;;  %1007 = vst.msk [vmem:[#allocation2 + $0x8] sm:$0xff] %vm1005_vm3, %v1003_v16 }
 0x102   : > { %1009 = vst.msk [vmem:[#allocation2 + $0x10] sm:$0x1] %vm1008_vm4, %v1004_v17 }
 0x103 PF: > { %1012 = sbr.rel (%p2248_p7) target bundleno = 585 (0x249), region = 112  ;;  %s3063_s0 = sld [smem:[#allocation14_spill]] (!%p2248_p7) }
 0x104   : > { %s3065_s27 = sld [smem:[#allocation15_spill]] (!%p2248_p7) }
 0x108   : > { %v2570_v19 = vmov 0.0   ;;  %v1013_v20 = vld [vmem:[%s846_s5] sm:$0x1]  ;;  %vm2571_vm5 = vmmov 0   ;;  %vm1024_vm6 = vcmask 130048   ;;  %v1071_v22 = vlaneseq  ;;  %s2572_s5 = smov 112  }
 0x109   : > { %v2485_v18 = vld [vmem:[%s3063_s0] sm:$0xff]   ;;  %2353 = vmatprep.subr.bf16.mxu0 %v2570_v19  ;;  %2355 = vmatprep.mubr.msk.bf16.mxu0 %vm2571_vm5, %v2570_v19  ;;  %v1014_v21 = vpack.c.bf16 %v1013_v20, %v1013_v20  ;;  %v1069_v33 = vld [vmem:[#allocation2 + $0x8] sm:$0xff]  ;;  %v1070_v34 = vld [vmem:[#allocation2 + $0x10] sm:$0x1]  ;;  %vm1087_vm7 = vcmask 122880  }
 0x10a   : > { %2354 = vmatpush3.bf16.msra.mxu0 %v2485_v18  ;;  %v1072_v23 = vshrl.u32 %v1071_v22, 7  ;;  %v1017_v24 = vld [vmem:[%s3065_s27] sm:$0x1] }
 0x10b   : > { %v1068_v32 = vld [vmem:[#allocation2] sm:$0xff] }
 0x10c   : > { %v1073_v25 = vsub.s32 0, %v1072_v23 }
 0x10d   : > { %2356 = vmatmul.mubr.msk.bf16.vlgmr.msra.gmra.mxu0 %vm1024_vm6, %v1014_v21 }
 0x1cd   : > { %v1062_v26 = vpop.f32.mrf.mxu0 }
 0x1ce   : > { %v1063_v27 = vadd.f32 %v1062_v26, %v1017_v24 }
 0x1cf   : > { %v2357_v28 = vpop.f32.mrf.mxu0 }
 0x1d0   : > { %v1074_v29 = vrot.slane %v1063_v27, %v1073_v25 }
 0x1d1   : > { %v1065_v30 = vpop.f32.mrf.mxu0 }
 0x1d2   : > { %1079 = vrot.lane.b32.xlu0 %v1074_v29, %s2572_s5  ;;  %v1075_v35 = vmul.f32 %v1074_v29, %v1068_v32  ;;  %v1076_v36 = vmul.f32 %v1074_v29, %v1069_v33  ;;  %v1077_v37 = vmul.f32 %v1074_v29, %v1070_v34 }
 0x1d3   : > { %v2358_v31 = vpop.f32.mrf.mxu0 }
 0x244   : > { %v1080_v38 = vpop.permute.xlu0 %1079 }
 0x245   : > { %v1082_v39 = vadd.f32 %v1080_v38, %v1075_v35  ;;  %v1083_v40 = vadd.f32 %v1080_v38, %v1076_v36  ;;  %v1084_v41 = vadd.f32 %v1080_v38, %v1077_v37 }
 0x247   : > { %1085 = vst.msk [vmem:[#allocation2] sm:$0xff] %vm1024_vm6, %v1082_v39  ;;  %1086 = vst.msk [vmem:[#allocation2 + $0x8] sm:$0xff] %vm1024_vm6, %v1083_v40 }
 0x248   : > { %1088 = vst.msk [vmem:[#allocation2 + $0x10] sm:$0x1] %vm1087_vm7, %v1084_v41 }
 0x249 PF: > { %s3066_s25 = scalar_lea.vmem %s3016_s6, %s2727_s28  ;;  %vm1109_vm8 = vcmask 130048   ;;  %s3067_s23 = scalar_lea.vmem %s3017_s7, %s2721_s26  ;;  %vm1177_vm9 = vcmask 64512   ;;  %vm1280_vm10 = vcmask 1040384   ;;  %v2575_v61 = vmov 0  }
 0x24a   : > { %v2486_v42 = vld [vmem:[%s3066_s25] sm:$0xff]   ;;  %s2573_s18 = smov 96   ;;  %s2574_s29 = smov 112   ;;  %v2853_v62 = vsel %vm1280_vm10, 65535, %v2575_v61  ;;  %vm1245_vm11 = vcmask 131072   ;;  %vm1238_vm12 = vcmask 138240  }
 0x24b   : > { %2359 = vmatprep.subr.bf16.mxu0 %v2486_v42  ;;  %v2253_v48 = vld [vmem:[%s3067_s23] ss:$0 sm:$0xff]  ;;  %s2576_s0 = smov 120   ;;  %s2577_s3 = smov 104   ;;  %vm1356_vm13 = vcmask 57344   ;;  %vm1353_vm15 = vcmask 60416  }
 0x24c   : > { %2360 = vmatpush3.bf16.msra.mxu0 %v2486_v42  ;;  %s2578_s24 = smov 88   ;;  %vm1357_vm14 = vsmask.f32 256  ;;  %s3068_s30 = sld [smem:[#allocation16_spill]]  ;;  %vm1548_vm2 = vcmask 126016   ;;  %vm1551_vm3 = vcmask 122944  }
 0x24d   : > { %vm1358_vm1 = vmand %vm1356_vm13, %vm1357_vm14  ;;  %s2579_s5 = smov 8   ;;  %s3070_s25 = scalar_lea.vmem %s3019_s9, %s2721_s26  ;;  %vm1647_vm5 = vcmask 122880  }
 0x24e   : > { %v2827_v43 = vld [vmem:[#allocation2] sm:$0xff]  ;;  %v2829_v44 = vld [vmem:[#allocation2 + $0x8] sm:$0xff]  ;;  %vm1552_vm4 = vmand %vm1551_vm3, %vm1357_vm14  ;;  %s3071_s23 = scalar_lea.vmem %s3022_s12, %s2727_s28 }
 0x24f   : > { %v2831_v45 = vld [vmem:[#allocation2 + $0x10] sm:$0x1]  ;;  %v1092_v46 = vpack.c.bf16 %v2829_v44, %v2827_v43 }
 0x250   : > { %v1093_v47 = vpack.c.bf16 %v2831_v45, %v2831_v45 }
 0x251   : > { %2361 = vmatprep.mubr.msk.bf16.mxu0 %vm1109_vm8, %v1092_v46 }
 0x252   : > { %2362 = vmatmul.mubr.msk.bf16.vlgmr.msra.gmra.mxu0 %vm1109_vm8, %v1093_v47  ;;  %s3069_s27 = scalar_lea.vmem %s3068_s30, %s2727_s28  ;;  %s3074_s30 = scalar_lea.vmem %s3023_s13, %s2721_s26 }
 0x253   : > { %s3078_s28 = sld [smem:[#allocation4_spill]] }
 0x259   : > { %p2290_p9 = scmp.ne.s32.totalorder %s3078_s28, 2 }
 0x312   : > { %v2363_v49 = vpop.f32.mrf.mxu0 }
 0x313   : > { %v1159_v50 = vadd.f32 %v2363_v49, %v2253_v48 }
 0x314   : > { %v1150_v51 = vpop.f32.mrf.mxu0 }
 0x315   : > { %v2844_v52 = vpack.c.bf16 %v1159_v50, %v1159_v50  ;;  %v1151_v54 = vadd.f32 %v2253_v48, %v1150_v51  ;;  %v1166_v6 = vmul.f32 0.35355338, %v1159_v50 }
 0x316   : > { %v2364_v53 = vpop.f32.mrf.mxu0 }
 0x317   : > { %1271 = vrot.lane.b32.xlu1 %v2844_v52, %s2573_s18  ;;  %1175 = vrot.lane.b32.xlu0 %v2844_v52, %s2574_s29  ;;  %v1164_v57 = vmul.f32 0.35355338, %v1151_v54  ;;  %v1168_v7 = vpack.c.bf16 %v1166_v6, %v1166_v6 }
 0x318   : > { %v1153_v55 = vpop.f32.mrf.mxu0 }
 0x319   : > { %v1154_v56 = vadd.f32 %v2253_v48, %v1153_v55 }
 0x31b   : > { %v1165_v58 = vmul.f32 0.35355338, %v1154_v56  ;;  %v2848_v59 = vpack.c.bf16 %v1154_v56, %v1151_v54 }
 0x31d   : > { %1269 = vrot.lane.b32.xlu1 %v2848_v59, %s2573_s18  ;;  %1173 = vrot.lane.b32.xlu0 %v2848_v59, %s2574_s29  ;;  %v1167_v60 = vpack.c.bf16 %v1165_v58, %v1164_v57  ;;  %s3072_s29 = scalar_lea.vmem %s3020_s10, %s2721_s26  ;;  %s3079_s18 = sld [smem:[#allocation19_spill]] (!%p2290_p9) }
 0x31f   : > { %2369 = vmatprep.mubr.msk.bf16.mxu1 %vm1177_vm9, %v1167_v60 }
 0x389   : > { %v1272_v63 = vpop.permute.xlu1 %1271  ;;  %v1176_v0 = vpop.permute.xlu0 %1175 }
 0x38a   : > { %v1284_v1 = vand.u32 %v2853_v62, %v1272_v63  ;;  %2423 = vmatprep.subr.msk.bf16.mxu1 %vm1177_vm9, %v1176_v0  ;;  %v1188_v2 = vsel %vm1177_vm9, %v1176_v0, 0 }
 0x38b   : > { %2366 = vmatpush3.bf16.xpose.msra.mxu1 %v1188_v2 }
 0x38c   : > { %2373 = vmatprep.subr.bf16.mxu0 %v1284_v1 }
 0x38d   : > { %2374 = vmatpush3.bf16.msra.mxu0 %v1284_v1 }
 0x38f   : > { %v1270_v3 = vpop.permute.xlu1 %1269  ;;  %v1174_v4 = vpop.permute.xlu0 %1173 }
 0x390   : > { %2424 = vmatprep.subr.msk.bf16.mxu1 %vm1177_vm9, %v1174_v4  ;;  %2375 = vmatprep.subr.bf16.mxu0 %v1270_v3  ;;  %v1185_v5 = vsel %vm1177_vm9, %v1174_v4, 0 }
 0x391   : > { %2376 = vmatpush3.bf16.msra.mxu0 %v1270_v3 }
 0x393   : > { %2368 = vmatpush3.bf16.xpose.msra.mxu1 %v1185_v5 }
 0x39a   : > { %2370 = vmatmul.mubr.msk.bf16.vlgmr.msra.gmra.mxu1 %vm1177_vm9, %v1168_v7 }
 0x45a   : > { %v2371_v8 = vpop.f32.mrf.mxu1 }
 0x45b   : > { %v1246_v9 = vsel %vm1245_vm11, %v2371_v8, -inf }
 0x45c   : > { %1247 = vmax.xlane.f32.xlu0 %v1246_v9  ;;  %v1224_v10 = vpop.f32.mrf.mxu1 }
 0x45d   : > { %v1239_v11 = vsel %vm1238_vm12, %v1224_v10, -inf }
 0x45e   : > { %1240 = vmax.xlane.f32.xlu1 %v1239_v11  ;;  %v2372_v12 = vpop.f32.mrf.mxu1 }
 0x460   : > { %v1227_v13 = vpop.f32.mrf.mxu1 }
 0x461   : > { %v1242_v14 = vsel %vm1238_vm12, %v1227_v13, -inf }
 0x462   : > { %1243 = vmax.xlane.f32.xlu1 %v1242_v14 }
 0x472   : > { %1366 = vrot.lane.b32.xlu0 %v1168_v7, %s2576_s0 }
 0x473   : > { %1370 = vrot.lane.b32.xlu1 %v2844_v52, %s2577_s3 }
 0x477   : > { %1368 = vrot.lane.b32.xlu1 %v2848_v59, %s2577_s3  ;;  %s3080_s3 = sld [smem:[#allocation20_spill]] (!%p2290_p9) }
 0x47b   : > { %1364 = vrot.lane.b32.xlu1 %v1167_v60, %s2576_s0 }
 0x4e5   : > { %v1248_v15 = vpop.xlane.xlu0 %1247 }
 0x4e6   : > { %v1251_v16 = vsub.f32 %v2371_v8, %v1248_v15 }
 0x4e7   : > { %v1241_v17 = vpop.xlane.xlu1 %1240 }
 0x4e8   : > { %v1249_v18 = vsub.f32 %v1224_v10, %v1241_v17  ;;  %v1256_v19 = vmul.f32 1.442695, %v1251_v16 }
 0x4e9   : > { %v1367_v34 = vpop.permute.xlu0 %1366 }
 0x4ea   : > { %v1252_v20 = vmul.f32 1.442695, %v1249_v18  ;;  %2493 = vpow2.f32 %v1256_v19  ;;  %v1359_v19 = vld [vmem:[#allocation3 + $0x8] sm:$0x1] }
 0x4eb   : > { %v1244_v21 = vpop.xlane.xlu1 %1243 }
 0x4ec   : > { %v1250_v22 = vsub.f32 %v1227_v13, %v1244_v21  ;;  %2495 = vpow2.f32 %v1252_v20 }
 0x4ee   : > { %v1254_v23 = vmul.f32 1.442695, %v1250_v22 }
 0x4ef   : > { %v1371_v24 = vpop.permute.xlu1 %1370 }
 0x4f0   : > { %2497 = vpow2.f32 %v1254_v23  ;;  %2425 = vmatprep.subr.msk.bf16.mxu0 %vm1177_vm9, %v1371_v24  ;;  %v1382_v31 = vsel %vm1177_vm9, %v1371_v24, 0 }
 0x4f3   : > { %v1369_v26 = vpop.permute.xlu1 %1368 }
 0x4f4   : > { %v1379_v33 = vsel %vm1177_vm9, %v1369_v26, 0 }
 0x4f7   : > { %v2867_v25 = vpop.eup %2493  ;;  %v1365_v32 = vpop.permute.xlu1 %1364 }
 0x4f8   : > { %v1268_v30 = vpack.c.bf16 %v2867_v25, %v2867_v25  ;;  %v1264_v6 = vsel %vm1245_vm11, %v2867_v25, 0.0  ;;  %v2487_v25 = vld [vmem:[%s3069_s27] sm:$0xff]  }
 0x4f9   : > { %v2869_v27 = vpop.eup %2495 }
 0x4fa   : > { %v1258_v7 = vsel %vm1238_vm12, %v2869_v27, 0.0 }
 0x4fd   : > { %v2871_v28 = vpop.eup %2497 }
 0x4fe   : > { %v1267_v29 = vpack.c.bf16 %v2871_v28, %v2869_v27  ;;  %v1261_v5 = vsel %vm1238_vm12, %v2871_v28, 0.0 }
 0x500   : > { %2377 = vmatprep.mubr.msk.bf16.mxu0 %vm1238_vm12, %v1267_v29 }
 0x501   : > { %2378 = vmatmul.mubr.msk.bf16.vlgmr.msra.gmra.mxu0 %vm1238_vm12, %v1268_v30 }
 0x502   : > { %2382 = vmatpush3.bf16.xpose.msra.mxu0 %v1382_v31  ;;  %2385 = vmatprep.mubr.msk.bf16.mxu0 %vm1177_vm9, %v1365_v32 }
 0x503   : > { %2426 = vmatprep.subr.msk.bf16.mxu0 %vm1177_vm9, %v1369_v26 }
 0x50a   : > { %2384 = vmatpush3.bf16.xpose.msra.mxu0 %v1379_v33 }
 0x511   : > { %2386 = vmatmul.mubr.msk.bf16.vlgmr.msra.gmra.mxu0 %vm1177_vm9, %v1367_v34 }
 0x5c1   : > { %v2884_v35 = vpop.f32.mrf.mxu0 }
 0x5c3   : > { %v2886_v36 = vpop.f32.mrf.mxu0 }
 0x5c5   : > { %v2380_v37 = vpop.f32.mrf.mxu0 }
 0x5c7   : > { %v2888_v38 = vpop.f32.mrf.mxu0 }
 0x5d1   : > { %v2387_v39 = vpop.f32.mrf.mxu0 }
 0x5d2   : > { %v1438_v40 = vsel %vm1245_vm11, %v2387_v39, -inf }
 0x5d3   : > { %1439 = vmax.xlane.f32.xlu1 %v1438_v40  ;;  %v1418_v41 = vpop.f32.mrf.mxu0 }
 0x5d4   : > { %v1432_v46 = vsel %vm1238_vm12, %v1418_v41, -inf }
 0x5d5   : > { %v2388_v42 = vpop.f32.mrf.mxu0 }
 0x5d7   : > { %1433 = vmax.xlane.f32.xlu1 %v1432_v46  ;;  %v1421_v47 = vpop.f32.mrf.mxu0 }
 0x5d8   : > { %v1435_v48 = vsel %vm1238_vm12, %v1421_v47, -inf }
 0x5d9   : > { %1436 = vmax.xlane.f32.xlu0 %v1435_v48 }
 0x5e8   : > { %1463 = vrot.lane.b32.xlu1 %v2844_v52, %s2578_s24 }
 0x5ef   : > { %1461 = vrot.lane.b32.xlu0 %v2848_v59, %s2578_s24  ;;  %s3073_s24 = scalar_lea.vmem %s3021_s11, %s2721_s26 }
 0x65c   : > { %v1440_v49 = vpop.xlane.xlu1 %1439 }
 0x65d   : > { %v1443_v50 = vsub.f32 %v2387_v39, %v1440_v49 }
 0x65f   : > { %v1448_v54 = vmul.f32 1.442695, %v1443_v50  ;;  %v2271_v50 = vld [vmem:[%s3070_s25] ss:$0 sm:$0xff]  ;;  %s3076_s25 = sld [smem:[#allocation18_spill]] }
 0x660   : > { %v1434_v51 = vpop.xlane.xlu1 %1433 }
 0x661   : > { %v1441_v53 = vsub.f32 %v1418_v41, %v1434_v51 }
 0x662   : > { %v1437_v55 = vpop.xlane.xlu0 %1436 }
 0x663   : > { %v1444_v56 = vmul.f32 1.442695, %v1441_v53  ;;  %v1442_v57 = vsub.f32 %v1421_v47, %v1437_v55 }
 0x664   : > { %v1464_v58 = vpop.permute.xlu1 %1463 }
 0x665   : > { %2499 = vpow2.f32 %v1444_v56  ;;  %v1446_v60 = vmul.f32 1.442695, %v1442_v57  ;;  %v1473_v61 = vand.u32 %v1464_v58, %v2853_v62  ;;  %s3077_s14 = scalar_lea.vmem %s3076_s25, %s2721_s26 }
 0x666   : > { %2501 = vpow2.f32 %v1448_v54  ;;  %v1462_v63 = vpop.permute.xlu0 %1461 }
 0x667   : > { %2503 = vpow2.f32 %v1446_v60  ;;  %2389 = vmatprep.subr.bf16.mxu1 %v1473_v61 }
 0x668   : > { %2390 = vmatpush3.bf16.msra.mxu1 %v1473_v61 }
 0x669   : > { %2391 = vmatprep.subr.bf16.mxu1 %v1462_v63 }
 0x66c   : > { %2392 = vmatpush3.bf16.msra.mxu1 %v1462_v63 }
 0x66d   : > { %2397 = vmatprep.subr.bf16.mxu1 %v2487_v25 }
 0x672   : > { %v2500_v52 = vpop.eup %2499 }
 0x673   : > { %v2502_v59 = vpop.eup %2501  ;;  %v1450_v0 = vsel %vm1238_vm12, %v2500_v52, 0.0 }
 0x674   : > { %v2504_v1 = vpop.eup %2503  ;;  %1451 = vadd.xlane.f32.xlu1 %v1450_v0  ;;  %v1460_v4 = vpack.c.bf16 %v2502_v59, %v2502_v59  ;;  %v1456_v62 = vsel %vm1245_vm11, %v2502_v59, 0.0 }
 0x675   : > { %v1453_v2 = vsel %vm1238_vm12, %v2504_v1, 0.0  ;;  %v1459_v3 = vpack.c.bf16 %v2504_v1, %v2500_v52 }
 0x676   : > { %1454 = vadd.xlane.f32.xlu0 %v1453_v2 }
 0x677   : > { %2393 = vmatprep.mubr.msk.bf16.mxu1 %vm1238_vm12, %v1459_v3 }
 0x678   : > { %1457 = vadd.xlane.f32.xlu1 %v1456_v62  ;;  %2394 = vmatmul.mubr.msk.bf16.vlgmr.msra.gmra.mxu1 %vm1238_vm12, %v1460_v4 }
 0x679   : > { %2398 = vmatpush3.bf16.msra.mxu1 %v2487_v25 }
 0x67a   : > { %1262 = vadd.xlane.f32.xlu0 %v1261_v5 }
 0x67c   : > { %1265 = vadd.xlane.f32.xlu1 %v1264_v6 }
 0x680   : > { %1259 = vadd.xlane.f32.xlu1 %v1258_v7 }
 0x6fd   : > { %v1452_v8 = vpop.xlane.xlu1 %1451 }
 0x6ff   : > { %v1455_v9 = vpop.xlane.xlu0 %1454 }
 0x701   : > { %v1458_v10 = vpop.xlane.xlu1 %1457 }
 0x703   : > { %v1263_v11 = vpop.xlane.xlu0 %1262 }
 0x704   : > { %2505 = vrcp.f32 %v1263_v11  ;;  %v2490_v11 = vld [vmem:[%s3071_s23] sm:$0xff]  }
 0x705   : > { %v1266_v12 = vpop.xlane.xlu1 %1265  ;;  %2403 = vmatprep.subr.bf16.mxu0 %v2490_v11 }
 0x706   : > { %2507 = vrcp.f32 %v1266_v12  ;;  %2404 = vmatpush3.bf16.msra.mxu0 %v2490_v11 }
 0x709   : > { %v1260_v13 = vpop.xlane.xlu1 %1259 }
 0x70a   : > { %2509 = vrcp.f32 %v1260_v13 }
 0x70b   : > { %2511 = vrcp.f32 %v1452_v8 }
 0x70c   : > { %2513 = vrcp.f32 %v1458_v10 }
 0x70d   : > { %2515 = vrcp.f32 %v1455_v9 }
 0x711   : > { %v2506_v14 = vpop.eup %2505 }
 0x712   : > { %v1338_v15 = vmul.f32 %v2506_v14, %v2888_v38 }
 0x713   : > { %v2508_v16 = vpop.eup %2507 }
 0x714   : > { %v1339_v17 = vmul.f32 %v2508_v16, %v2884_v35  ;;  %v2303_v18 = vpack.c.bf16 %v1338_v15, %v1338_v15 }
 0x716   : > { %v2304_v20 = vpack.c.bf16 %v1339_v17, %v1339_v17  ;;  %1355 = vst.msk [vmem:[#allocation3 + $0x4] sm:$0xf] %vm1353_vm15, %v2303_v18 }
 0x717   : > { %v2510_v21 = vpop.eup %2509 }
 0x718   : > { %v1337_v22 = vmul.f32 %v2510_v21, %v2886_v36  ;;  %v1360_v23 = vsel %vm1358_vm1, %v2304_v20, %v1359_v19  ;;  %v2512_v27 = vpop.eup %2511 }
 0x719   : > { %1361 = vst [vmem:[#allocation3 + $0x8] sm:$0x1] %v1360_v23  ;;  %v2514_v30 = vpop.eup %2513  ;;  %v2277_v23 = vld [vmem:[%s3072_s29] ss:$0 sm:$0xff] }
 0x71a   : > { %v2302_v24 = vpack.c.bf16 %v1337_v22, %v1337_v22  ;;  %v2516_v34 = vpop.eup %2515 }
 0x71c   : > { %1354 = vst.msk [vmem:[#allocation3] sm:$0xf] %vm1353_vm15, %v2302_v24 }
 0x720   : > { %v1553_v40 = vld [vmem:[#allocation3 + $0x8] sm:$0x1] }
 0x738   : > { %v2395_v26 = vpop.f32.mrf.mxu1 }
 0x739   : > { %v1528_v32 = vmul.f32 %v2514_v30, %v2395_v26 }
 0x73a   : > { %v1509_v28 = vpop.f32.mrf.mxu1 }
 0x73b   : > { %v1526_v29 = vmul.f32 %v2512_v27, %v1509_v28  ;;  %v2307_v37 = vpack.c.bf16 %v1528_v32, %v1528_v32  ;;  %v2278_v27 = vld [vmem:[%s3073_s24] ss:$0 sm:$0xff] }
 0x73c   : > { %v2396_v31 = vpop.f32.mrf.mxu1 }
 0x73d   : > { %v2305_v33 = vpack.c.bf16 %v1526_v29, %v1526_v29 }
 0x73e   : > { %v1512_v35 = vpop.f32.mrf.mxu1 }
 0x73f   : > { %v1527_v36 = vmul.f32 %v2516_v34, %v1512_v35  ;;  %1539 = vrot.lane.b32.xlu1 %v2305_v33, %s2579_s5 }
 0x741   : > { %v2306_v38 = vpack.c.bf16 %v1527_v36, %v1527_v36 }
 0x743   : > { %1543 = vrot.lane.b32.xlu1 %v2307_v37, %s2579_s5  ;;  %1541 = vrot.lane.b32.xlu0 %v2306_v38, %s2579_s5  ;;  %v2491_v37 = vld [vmem:[%s2767_s1 + $0x8] sm:$0xff]   ;;  %v2492_v38 = vld [vmem:[%s2767_s1] sm:$0xff]   ;;  %s3075_s5 = scalar_lea.vmem %s3025_s15, %s2721_s26 }
 0x744   : > { %2409 = vmatprep.subr.bf16.mxu1 %v2491_v37 }
 0x7b1   : > { %v1540_v39 = vpop.permute.xlu1 %1539 }
 0x7b2   : > { %1549 = vst.msk [vmem:[#allocation3] sm:$0xf] %vm1548_vm2, %v1540_v39 }
 0x7b5   : > { %v1544_v41 = vpop.permute.xlu1 %1543  ;;  %v1542_v42 = vpop.permute.xlu0 %1541 }
 0x7b6   : > { %v1554_v46 = vsel %vm1552_vm4, %v1544_v41, %v1553_v40  ;;  %1550 = vst.msk [vmem:[#allocation3 + $0x4] sm:$0xf] %vm1548_vm2, %v1542_v42  ;;  %v2279_v40 = vld [vmem:[%s3074_s30] ss:$0 sm:$0xff] }
 0x7b7   : > { %1555 = vst [vmem:[#allocation3 + $0x8] sm:$0x1] %v1554_v46 }
 0x7bd   : > { %v2488_v47 = vld [vmem:[#allocation3] sm:$0xff]  }
 0x7be   : > { %v2489_v48 = vld [vmem:[#allocation3 + $0x8] ss:$0 sps:$4 sm:$0x11]   ;;  %2399 = vmatprep.mubr.msk.bf16.mxu1 %vm1109_vm8, %v2488_v47 }
 0x7bf   : > { %2400 = vmatmul.mubr.msk.bf16.vlgmr.msra.gmra.mxu1 %vm1109_vm8, %v2489_v48 }
 0x7c0   : > { %2410 = vmatpush3.bf16.msra.mxu1 %v2491_v37 }
 0x7c1   : > { %2411 = vmatprep.subr.bf16.mxu1 %v2492_v38 }
 0x7c4   : > { %2412 = vmatpush3.bf16.msra.mxu1 %v2492_v38 }
 0x87f   : > { %v2401_v49 = vpop.f32.mrf.mxu1 }
 0x880   : > { %v1631_v57 = vadd.f32 %v2401_v49, %v2271_v50 }
 0x881   : > { %v1622_v51 = vpop.f32.mrf.mxu1 }
 0x882   : > { %v1623_v53 = vadd.f32 %v2271_v50, %v1622_v51  ;;  %v1638_v52 = vadd.f32 %v1631_v57, %v2831_v45  ;;  %v2283_v57 = vld [vmem:[%s3075_s5] ss:$0 sm:$0xff] }
 0x883   : > { %v2402_v54 = vpop.f32.mrf.mxu1 }
 0x884   : > { %v1636_v55 = vadd.f32 %v1623_v53, %v2827_v43  ;;  %v1648_v59 = vsel %vm1647_vm5, %v1638_v52, 0.0 }
 0x885   : > { %v1625_v56 = vpop.f32.mrf.mxu1 }
 0x886   : > { %v1626_v58 = vadd.f32 %v2271_v50, %v1625_v56  ;;  %v1641_v60 = vsel %vm1109_vm8, %v1636_v55, 0.0 }
 0x887   : > { %1642 = vadd.xlane.f32.xlu1 %v1641_v60 }
 0x888   : > { %v1637_v61 = vadd.f32 %v1626_v58, %v2829_v44 }
 0x88a   : > { %v1644_v63 = vsel %vm1109_vm8, %v1637_v61, 0.0 }
 0x88b   : > { %1645 = vadd.xlane.f32.xlu0 %v1644_v63 }
 0x88f   : > { %1649 = vadd.xlane.f32.xlu0 %v1648_v59 }
 0x910   : > { %v1643_v0 = vpop.xlane.xlu1 %1642 }
 0x911   : > { %v1652_v1 = vmul.f32 0.0625, %v1643_v0 }
 0x913   : > { %v1655_v43 = vsub.f32 %v1636_v55, %v1652_v1 }
 0x914   : > { %v1646_v2 = vpop.xlane.xlu0 %1645 }
 0x915   : > { %v1653_v3 = vmul.f32 0.0625, %v1646_v2  ;;  %v1658_v4 = vmul.f32 %v1655_v43, %v1655_v43 }
 0x917   : > { %v1656_v62 = vsub.f32 %v1637_v61, %v1653_v3  ;;  %v1661_v5 = vsel %vm1109_vm8, %v1658_v4, 0.0 }
 0x918   : > { %v1650_v44 = vpop.xlane.xlu0 %1649  ;;  %1662 = vadd.xlane.f32.xlu1 %v1661_v5 }
 0x919   : > { %v1654_v6 = vmul.f32 0.0625, %v1650_v44  ;;  %v1659_v7 = vmul.f32 %v1656_v62, %v1656_v62 }
 0x91b   : > { %v1657_v45 = vsub.f32 %v1638_v52, %v1654_v6  ;;  %v1664_v8 = vsel %vm1109_vm8, %v1659_v7, 0.0 }
 0x91c   : > { %1665 = vadd.xlane.f32.xlu0 %v1664_v8 }
 0x91d   : > { %v1660_v9 = vmul.f32 %v1657_v45, %v1657_v45 }
 0x91f   : > { %v1667_v10 = vsel %vm1647_vm5, %v1660_v9, 0.0 }
 0x920   : > { %1668 = vadd.xlane.f32.xlu1 %v1667_v10 }
 0x9a1   : > { %v1663_v12 = vpop.xlane.xlu1 %1662 }
 0x9a2   : > { %v1670_v13 = vmul.f32 0.0625, %v1663_v12 }
 0x9a4   : > { %v1673_v14 = vadd.f32 1e-05, %v1670_v13 }
 0x9a5   : > { %v1666_v15 = vpop.xlane.xlu0 %1665 }
 0x9a6   : > { %2517 = vrsqrt.f32 %v1673_v14  ;;  %v1671_v16 = vmul.f32 0.0625, %v1666_v15 }
 0x9a8   : > { %v1674_v17 = vadd.f32 1e-05, %v1671_v16 }
 0x9a9   : > { %v1669_v18 = vpop.xlane.xlu1 %1668 }
 0x9aa   : > { %2519 = vrsqrt.f32 %v1674_v17  ;;  %v1672_v19 = vmul.f32 0.0625, %v1669_v18 }
 0x9ac   : > { %v1675_v20 = vadd.f32 1e-05, %v1672_v19 }
 0x9ae   : > { %2521 = vrsqrt.f32 %v1675_v20 }
 0x9b3   : > { %v2518_v21 = vpop.eup %2517 }
 0x9b4   : > { %v1679_v22 = vmul.f32 %v2518_v21, %v1655_v43 }
 0x9b6   : > { %v1688_v26 = vmul.f32 %v2277_v23, %v1679_v22 }
 0x9b7   : > { %v2520_v24 = vpop.eup %2519 }
 0x9b8   : > { %v1680_v25 = vmul.f32 %v2520_v24, %v1656_v62  ;;  %v1697_v31 = vadd.f32 %v2278_v27, %v1688_v26 }
 0x9ba   : > { %v1689_v28 = vmul.f32 %v2277_v23, %v1680_v25 }
 0x9bb   : > { %v2522_v29 = vpop.eup %2521 }
 0x9bc   : > { %v1681_v30 = vmul.f32 %v2522_v29, %v1657_v45  ;;  %v1698_v32 = vadd.f32 %v2278_v27, %v1689_v28  ;;  %v2289_v29 = vld [vmem:[%s890_s8] ss:$0 sm:$0xff] }
 0x9be   : > { %v1700_v33 = vpack.c.bf16 %v1698_v32, %v1697_v31  ;;  %v1690_v34 = vmul.f32 %v2277_v23, %v1681_v30 }
 0x9c0   : > { %2405 = vmatprep.mubr.msk.bf16.mxu0 %vm1109_vm8, %v1700_v33  ;;  %v1699_v35 = vadd.f32 %v2278_v27, %v1690_v34  ;;  %v2288_v27 = vld [vmem:[%s3077_s14] ss:$0 sm:$0xff] }
 0x9c2   : > { %v1701_v36 = vpack.c.bf16 %v1699_v35, %v1699_v35 }
 0x9c4   : > { %2406 = vmatmul.mubr.msk.bf16.vlgmr.msra.gmra.mxu0 %vm1109_vm8, %v1701_v36 }
 0xa84   : > { %v2407_v39 = vpop.f32.mrf.mxu0 }
 0xa85   : > { %v1766_v42 = vadd.f32 %v2407_v39, %v2279_v40 }
 0xa86   : > { %v1757_v41 = vpop.f32.mrf.mxu0 }
 0xa87   : > { %v1758_v47 = vadd.f32 %v2279_v40, %v1757_v41  ;;  %v1773_v50 = vmax.f32 %v1766_v42, 0.0 }
 0xa88   : > { %v2408_v46 = vpop.f32.mrf.mxu0 }
 0xa89   : > { %v1771_v51 = vmax.f32 %v1758_v47, 0.0  ;;  %v1775_v55 = vpack.c.bf16 %v1773_v50, %v1773_v50 }
 0xa8a   : > { %v1760_v48 = vpop.f32.mrf.mxu0 }
 0xa8b   : > { %v1761_v49 = vadd.f32 %v2279_v40, %v1760_v48 }
 0xa8d   : > { %v1772_v53 = vmax.f32 %v1761_v49, 0.0 }
 0xa8f   : > { %v1774_v54 = vpack.c.bf16 %v1772_v53, %v1771_v51 }
 0xa91   : > { %2413 = vmatprep.mubr.msk.bf16.mxu1 %vm931_vm0, %v1774_v54 }
 0xa92   : > { %2414 = vmatmul.mubr.msk.bf16.vlgmr.msra.gmra.mxu1 %vm931_vm0, %v1775_v55 }
 0xb52   : > { %v2415_v56 = vpop.f32.mrf.mxu1 }
 0xb53   : > { %v1848_v60 = vadd.f32 %v2415_v56, %v2283_v57 }
 0xb54   : > { %v1839_v58 = vpop.f32.mrf.mxu1 }
 0xb55   : > { %v1840_v61 = vadd.f32 %v2283_v57, %v1839_v58  ;;  %v1855_v43 = vadd.f32 %v1848_v60, %v1699_v35 }
 0xb56   : > { %v2416_v63 = vpop.f32.mrf.mxu1 }
 0xb57   : > { %v1853_v52 = vadd.f32 %v1840_v61, %v1697_v31  ;;  %v1864_v4 = vsel %vm1647_vm5, %v1855_v43, 0.0 }
 0xb58   : > { %v1842_v59 = vpop.f32.mrf.mxu1 }
 0xb59   : > { %v1843_v0 = vadd.f32 %v2283_v57, %v1842_v59  ;;  %v1858_v1 = vsel %vm1109_vm8, %v1853_v52, 0.0 }
 0xb5a   : > { %1859 = vadd.xlane.f32.xlu0 %v1858_v1 }
 0xb5b   : > { %v1854_v2 = vadd.f32 %v1843_v0, %v1698_v32 }
 0xb5d   : > { %v1861_v3 = vsel %vm1109_vm8, %v1854_v2, 0.0 }
 0xb5e   : > { %1862 = vadd.xlane.f32.xlu1 %v1861_v3  ;;  %1865 = vadd.xlane.f32.xlu0 %v1864_v4 }
 0xbe3   : > { %v1860_v62 = vpop.xlane.xlu0 %1859 }
 0xbe4   : > { %v1867_v5 = vmul.f32 0.0625, %v1860_v62 }
 0xbe6   : > { %v1870_v44 = vsub.f32 %v1853_v52, %v1867_v5 }
 0xbe7   : > { %v1863_v6 = vpop.xlane.xlu1 %1862  ;;  %v1866_v7 = vpop.xlane.xlu0 %1865 }
 0xbe8   : > { %v1868_v45 = vmul.f32 0.0625, %v1863_v6  ;;  %v1869_v8 = vmul.f32 0.0625, %v1866_v7  ;;  %v1873_v9 = vmul.f32 %v1870_v44, %v1870_v44 }
 0xbea   : > { %v1871_v10 = vsub.f32 %v1854_v2, %v1868_v45  ;;  %v1872_v11 = vsub.f32 %v1855_v43, %v1869_v8  ;;  %v1876_v12 = vsel %vm1109_vm8, %v1873_v9, 0.0 }
 0xbeb   : > { %1877 = vadd.xlane.f32.xlu1 %v1876_v12 }
 0xbec   : > { %v1874_v13 = vmul.f32 %v1871_v10, %v1871_v10  ;;  %v1875_v14 = vmul.f32 %v1872_v11, %v1872_v11 }
 0xbee   : > { %v1879_v15 = vsel %vm1109_vm8, %v1874_v13, 0.0  ;;  %v1882_v16 = vsel %vm1647_vm5, %v1875_v14, 0.0 }
 0xbef   : > { %1880 = vadd.xlane.f32.xlu0 %v1879_v15  ;;  %1883 = vadd.xlane.f32.xlu1 %v1882_v16 }
 0xc74   : > { %v1878_v17 = vpop.xlane.xlu1 %1877 }
 0xc75   : > { %v1885_v18 = vmul.f32 0.0625, %v1878_v17 }
 0xc77   : > { %v1888_v19 = vadd.f32 1e-05, %v1885_v18 }
 0xc78   : > { %v1884_v20 = vpop.xlane.xlu1 %1883  ;;  %v1881_v21 = vpop.xlane.xlu0 %1880 }
 0xc79   : > { %2523 = vrsqrt.f32 %v1888_v19  ;;  %v1887_v22 = vmul.f32 0.0625, %v1884_v20  ;;  %v1886_v23 = vmul.f32 0.0625, %v1881_v21 }
 0xc7b   : > { %v1890_v24 = vadd.f32 1e-05, %v1887_v22  ;;  %v1889_v25 = vadd.f32 1e-05, %v1886_v23 }
 0xc7d   : > { %2525 = vrsqrt.f32 %v1890_v24 }
 0xc7e   : > { %2527 = vrsqrt.f32 %v1889_v25 }
 0xc86   : > { %v2524_v26 = vpop.eup %2523 }
 0xc87   : > { %v1894_v28 = vmul.f32 %v2524_v26, %v1870_v44 }
 0xc89   : > { %v1903_v30 = vmul.f32 %v2288_v27, %v1894_v28 }
 0xc8a   : > { %v2526_v31 = vpop.eup %2525 }
 0xc8b   : > { %v2528_v32 = vpop.eup %2527  ;;  %v1912_v33 = vadd.f32 %v2289_v29, %v1903_v30  ;;  %v1896_v34 = vmul.f32 %v2526_v31, %v1872_v11 }
 0xc8c   : > { %v1895_v35 = vmul.f32 %v2528_v32, %v1871_v10 }
 0xc8d   : > { %1915 = vst.msk [vmem:[#allocation2] sm:$0xff] %vm1109_vm8, %v1912_v33  ;;  %v1905_v36 = vmul.f32 %v2288_v27, %v1896_v34 }
 0xc8e   : > { %v1904_v37 = vmul.f32 %v2288_v27, %v1895_v35  ;;  %1921 = sbr.rel (%p2290_p9) target bundleno = 3428 (0xd64), region = 116 }
 0xc8f   : > { %v1914_v38 = vadd.f32 %v2289_v29, %v1905_v36 }
 0xc90   : > { %v1913_v39 = vadd.f32 %v2289_v29, %v1904_v37 }
 0xc91   : > { %1917 = vst.msk [vmem:[#allocation2 + $0x10] sm:$0x1] %vm1647_vm5, %v1914_v38 }
 0xc92   : > { %1916 = vst.msk [vmem:[#allocation2 + $0x8] sm:$0xff] %vm1109_vm8, %v1913_v39 }
 0xc93   : > { %v2529_v40 = vld [vmem:[%s3079_s18] sm:$0xff]   ;;  %v1922_v41 = vpack.c.bf16 %v1913_v39, %v1912_v33  ;;  %v1923_v42 = vpack.c.bf16 %v1914_v38, %v1914_v38  ;;  %v2580_v46 = vmov 0.0   ;;  %vm2581_vm0 = vmmov 0  }
 0xc94   : > { %2417 = vmatprep.subr.bf16.mxu0 %v2580_v46  ;;  %2419 = vmatprep.mubr.msk.bf16.mxu0 %vm2581_vm0, %v2580_v46  ;;  %vm1933_vm6 = vsmask.f32 7424  ;;  %v2291_v55 = vld [vmem:[%s3080_s3] ss:$0 sm:$0xff] }
 0xc95   : > { %2418 = vmatpush3.bf16.msra.mxu0 %v2529_v40  ;;  %v1935_v47 = vshrl.u32 %v1922_v41, 16  ;;  %v1937_v48 = vshll.u32 %v1922_v41, 16  ;;  %v1942_v49 = vshll.u32 %v1923_v42, 16 }
 0xc97   : > { %v1939_v50 = vrot.slane %v1937_v48, 1  ;;  %v1944_v51 = vrot.slane %v1942_v49, 1 }
 0xc99   : > { %v1940_v53 = vor.u32 %v1939_v50, %v1935_v47 }
 0xc9b   : > { %v1945_v54 = vsel %vm1933_vm6, %v1940_v53, %v1944_v51 }
 0xc9c   : > { %2420 = vmatmul.mubr.msk.bf16.vlgmr.msra.gmra.mxu0 %vm1109_vm8, %v1945_v54 }
 0xd5c   : > { %v1989_v56 = vpop.f32.mrf.mxu0 }
 0xd5d   : > { %v1990_v57 = vadd.f32 %v2291_v55, %v1989_v56 }
 0xd5e   : > { %v2421_v58 = vpop.f32.mrf.mxu0 }
 0xd5f   : > { %1996 = vst.msk [vmem:[%s2791_s2] sm:$0xff] %vm1109_vm8, %v1990_v57 }
 0xd60   : > { %v1992_v60 = vpop.f32.mrf.mxu0 }
 0xd61   : > { %v1993_v61 = vadd.f32 %v2291_v55, %v1992_v60 }
 0xd62   : > { %v2422_v63 = vpop.f32.mrf.mxu0 }
 0xd63   : > { %1997 = vst.msk [vmem:[%s2791_s2 + $0x8] sm:$0xff] %vm1109_vm8, %v1993_v61 }
 0xd64 PF: > { %s3081_s24 = sld [smem:[#allocation7_spill]] }
 0xd65   : > { %s3082_s1 = sld [smem:[#allocation5_spill]] }
 0xd66   : > { %s3083_s22 = sld [smem:[#allocation6_spill]] }
 0xd67   : > { %s3084_s23 = sld [smem:[#allocation8_spill]] }
 0xd6a   : > { %s30_s2 = sadd.s32 1, %s3081_s24   ;;  %s3085_s24 = sld [smem:[#allocation9_spill]] }
 0xd6b   : > { %p27_p10 = scmp.ge.s32.totalorder %s30_s2, 8  }
 0xd6d   :  { %29 = sbr.rel (!%p27_p10) target bundleno = 12 (0xc), region = 191 }

// kernel: biomedclipseg_forward.4
= control target key start
LH: loop header
LB: loop body
LE: loop exit
PB: predicated region body
PF: predicated region fallthrough
CT: control target
= control target key end

     0   :  { %s2443_s27 = smov 0   ;;  %s2445_s28 = smov 0   ;;  %s2736_s0 = inlined_call_operand.vmem [shape: f32[2,8,32], index: 0, kind: input, shape index: {}]   ;;  %s2737_s1 = inlined_call_operand.vmem [shape: f32[2,1,8], index: 1, kind: input, shape index: {}]   ;;  %s2738_s2 = inlined_call_operand.vmem [shape: f32[1,32], index: 2, kind: input, shape index: {}]   ;;  %s2739_s3 = inlined_call_operand.vmem [shape: f32[1,32], index: 3, kind: input, shape index: {}]   ;;  %s2740_s4 = inlined_call_operand.vmem [shape: bf16[2,32,96], index: 4, kind: input, shape index: {}]   ;;  %s2741_s5 = inlined_call_operand.vmem [shape: f32[2,1,96], index: 5, kind: input, shape index: {}]   ;;  %s2742_s6 = inlined_call_operand.vmem [shape: bf16[2,32,32], index: 6, kind: input, shape index: {}]   ;;  %s2743_s7 = inlined_call_operand.vmem [shape: f32[2,1,32], index: 7, kind: input, shape index: {}]   ;;  %s2744_s8 = inlined_call_operand.vmem [shape: f32[2,1,32], index: 8, kind: input, shape index: {}]   ;;  %s2745_s9 = inlined_call_operand.vmem [shape: f32[2,1,32], index: 9, kind: input, shape index: {}]   ;;  %s2746_s10 = inlined_call_operand.vmem [shape: bf16[2,32,64], index: 10, kind: input, shape index: {}]   ;;  %s2747_s11 = inlined_call_operand.vmem [shape: f32[2,1,64], index: 11, kind: input, shape index: {}]   ;;  %s2748_s12 = inlined_call_operand.vmem [shape: bf16[2,64,32], index: 12, kind: input, shape index: {}]   ;;  %s2749_s13 = inlined_call_operand.vmem [shape: f32[2,1,32], index: 13, kind: input, shape index: {}]   ;;  %s2750_s14 = inlined_call_operand.vmem [shape: f32[2,1,32], index: 14, kind: input, shape index: {}]   ;;  %s2751_s15 = inlined_call_operand.vmem [shape: f32[2,1,32], index: 15, kind: input, shape index: {}]   ;;  %s2752_s16 = inlined_call_operand.vmem [shape: bf16[32,24], index: 16, kind: input, shape index: {}]   ;;  %s2753_s17 = inlined_call_operand.vmem [shape: bf16[24,16], index: 17, kind: input, shape index: {}]   ;;  %s2754_s18 = inlined_call_operand.vmem [shape: f32[2,1,16], index: 18, kind: output, shape index: {}]  }
   0x1   :  { %2761 = sst [smem:[#allocation10_spill]] %s2736_s0  ;;  %s2447_s29 = smov 0  }
   0x2   :  { %2762 = sst [smem:[#allocation11_spill]] %s2737_s1  ;;  %s2449_s30 = smov 0  }
   0x3   :  { %2763 = sst [smem:[#allocation12_spill]] %s2738_s2  ;;  %s2451_s0 = smov 0  }
   0x4   :  { %2764 = sst [smem:[#allocation13_spill]] %s2739_s3 }
   0x5   :  { %2765 = sst [smem:[#allocation14_spill]] %s2740_s4 }
   0x6   :  { %2766 = sst [smem:[#allocation15_spill]] %s2742_s6 }
   0x7   :  { %2767 = sst [smem:[#allocation16_spill]] %s2745_s9 }
   0x8   :  { %2768 = sst [smem:[#allocation17_spill]] %s2746_s10 }
   0x9   :  { %2769 = sst [smem:[#allocation18_spill]] %s2747_s11 }
   0xa   :  { %2770 = sst [smem:[#allocation19_spill]] %s2751_s15 }
   0xb   :  { %2771 = sst [smem:[#allocation20_spill]] %s2752_s16 }
   0xc   :  { %2772 = sst [smem:[#allocation21_spill]] %s2753_s17 }
   0xd   :  { %2773 = sst [smem:[#allocation22_spill]] %s2754_s18 }
   0xe LB: > { %2774 = sst [smem:[#allocation4_spill]] %s2312_s27  ;;  %s37_s19 = sadd.s32 1, %s2320_s29  ;;  %s2328_s0 = sphi %s2451_s0, %s28_s0   ;;  %s2324_s30 = sphi %s2449_s30, %s2810_s30   ;;  %s2320_s29 = sphi %s2447_s29, %s2809_s29   ;;  %s2316_s28 = sphi %s2445_s28, %s2808_s28   ;;  %s2312_s27 = sphi %s2443_s27, %s2807_s27  }
   0xf   : > { %2775 = sst [smem:[#allocation5_spill]] %s2320_s29  ;;  %s40_s1 = sadd.s32 1, %s2324_s30 }
  0x10   : > { %2776 = sst [smem:[#allocation6_spill]] %s2324_s30  ;;  %p38_p0 = scmp.ge.s32.totalorder %s37_s19, 2 }
  0x11   : > { %2777 = sst [smem:[#allocation7_spill]] %s2328_s0  ;;  %p1993_p1 = scmp.ge.s32.totalorder %s2328_s0, 1 }
  0x12   : > { %p635_p2 = scmp.lt.s32.totalorder %s2328_s0, 5  ;;  %s2812_s19 = smov (%p38_p0, %s37_s19), 0 }
  0x13   : > { %2778 = sst [smem:[#allocation8_spill]] %s2812_s19  ;;  %s2814_s1 = smov (!%p38_p0, %s40_s1), %s2324_s30 }
  0x14   : > { %p636_p3 = pnand %p1993_p1, %p635_p2  ;;  %p42_p4 = scmp.ge.s32.totalorder %s2814_s1, 2 }
  0x15   : > { %p733_p5 = scmp.lt.s32.totalorder (!%p636_p3), %s2316_s28, 1  ;;  %p740_p6 = scmp.lt.s32.totalorder (!%p636_p3), %s2312_s27, 1 }
  0x16   : > { %s2816_s1 = smov (%p42_p4, %s2814_s1), 0  ;;  %639 = sbr.rel (%p636_p3) target bundleno = 3087 (0xc0f), region = 92 }
  0x17   : > { %2779 = sst [smem:[#allocation9_spill]] %s2816_s1 }
  0x18   : > { %s2781_s1 = sld [smem:[#allocation10_spill]] (!%p636_p3) }
  0x19   : > { %s2782_s4 = sld [smem:[#allocation14_spill]] (!%p636_p3) }
  0x1a   : > { %s2783_s6 = sld [smem:[#allocation15_spill]] (!%p636_p3) }
  0x1b   : > { %s2818_s28 = smov (!%p733_p5, %s2316_s28), 1  ;;  %s2785_s10 = sld [smem:[#allocation17_spill]] }
  0x1c   : > { %s2479_s20 = scalar_select %p740_p6, %s2312_s27, 1 }
  0x1d   : > { %s1994_s21 = sshll.u32 %s2818_s28, 3  ;;  %s2787_s24 = sld [smem:[#allocation19_spill]] }
  0x1e   : > { %s736_s19 = scalar_lea.vmem %s2781_s1, %s1994_s21  ;;  %s2049_s30 = sshll.u32 %s2479_s20, 4 }
  0x1f   : > { %s2493_s17 = scalar_lea.vmem %s2782_s4, %s2049_s30  ;;  %s777_s25 = scalar_lea.vmem %s2749_s13, %s2479_s20 }
  0x20   : > { %s2502_s22 = scalar_lea.vmem %s2783_s6, %s2049_s30  ;;  %s2052_s6 = sshll.u32 %s2479_s20, 5 }
  0x21   : > { %s2519_s16 = scalar_lea.vmem %s2785_s10, %s2049_s30  ;;  %s2533_s26 = scalar_lea.vmem %s2748_s12, %s2052_s6 }
  0x22   : > { %s780_s4 = scalar_lea.vmem %s2750_s14, %s2479_s20  ;;  %s2788_s27 = sld [smem:[#allocation22_spill]] }
  0x23   : > { %s783_s10 = scalar_lea.vmem %s2787_s24, %s2479_s20  ;;  %s2789_s9 = sld [smem:[#allocation4_spill]] }
  0x28   : > { %s786_s11 = scalar_lea.vmem %s2788_s27, %s2818_s28 }
  0x29   : > { %p2003_p7 = scmp.ne.s32.totalorder %s2789_s9, 0 }
  0x2a   : > { %s2790_s27 = sld [smem:[#allocation12_spill]] (!%p2003_p7) }
  0x2b   : > { %791 = sbr.rel (%p2003_p7) target bundleno = 358 (0x166), region = 96  ;;  %s2791_s2 = sld [smem:[#allocation13_spill]] (!%p2003_p7) }
  0x30   : > { %v792_v0 = vld [vmem:[%s736_s19] sm:$0xff]  ;;  %vm795_vm0 = vcmask 261120  }
  0x31   : > { %v796_v1 = vsel %vm795_vm0, %v792_v0, 0.0  ;;  %v2004_v11 = vld [vmem:[%s2790_s27] ss:$0 sm:$0xff] }
  0x32   : > { %797 = vadd.xlane.f32.xlu0 %v796_v1  ;;  %v2005_v13 = vld [vmem:[%s2791_s2] ss:$0 sm:$0xff] }
  0xbb   : > { %v798_v2 = vpop.xlane.xlu0 %797 }
  0xbc   : > { %v800_v3 = vmul.f32 0.03125, %v798_v2 }
  0xbe   : > { %v801_v4 = vsub.f32 %v792_v0, %v800_v3 }
  0xc0   : > { %v802_v5 = vmul.f32 %v801_v4, %v801_v4 }
  0xc2   : > { %v803_v6 = vsel %vm795_vm0, %v802_v5, 0.0 }
  0xc3   : > { %804 = vadd.xlane.f32.xlu0 %v803_v6 }
 0x14c   : > { %v805_v7 = vpop.xlane.xlu0 %804 }
 0x14d   : > { %v806_v8 = vmul.f32 0.03125, %v805_v7 }
 0x14f   : > { %v807_v9 = vadd.f32 1e-12, %v806_v8 }
 0x151   : > { %2250 = vrsqrt.f32 %v807_v9 }
 0x15e   : > { %v2251_v10 = vpop.eup %2250 }
 0x15f   : > { %v809_v12 = vmul.f32 %v2251_v10, %v801_v4 }
 0x161   : > { %v816_v14 = vmul.f32 %v2004_v11, %v809_v12 }
 0x163   : > { %v823_v15 = vadd.f32 %v2005_v13, %v816_v14 }
 0x165   : > { %824 = vst.msk [vmem:[#allocation2] sm:$0xff] %vm795_vm0, %v823_v15 }
 0x166 PF: > { %v2252_v16 = vld [vmem:[%s2493_s17 + $0x8] sm:$0xff]   ;;  %v2330_v17 = vmov 0.0   ;;  %v2253_v18 = vld [vmem:[%s2493_s17] sm:$0xff]   ;;  %vm2331_vm1 = vmmov 0   ;;  %vm853_vm2 = vcmask 261120   ;;  %s2792_s1 = scalar_lea.vmem %s2741_s5, %s2479_s20  ;;  %s2332_s21 = smov 96   ;;  %v901_v41 = vlaneseq }
 0x167   : > { %2092 = vmatprep.subr.bf16.mxu0 %v2330_v17  ;;  %2100 = vmatprep.subr.bf16.mxu1 %v2330_v17  ;;  %v2007_v21 = vld [vmem:[%s2792_s1] ss:$0 sm:$0xff]  ;;  %s2333_s29 = smov 120   ;;  %s2334_s0 = smov 88   ;;  %vm909_vm3 = vcmask 64512   ;;  %vm971_vm4 = vcmask 1043456  }
 0x168   : > { %2093 = vmatpush3.bf16.msra.mxu0 %v2252_v16  ;;  %2096 = vmatprep.mubr.msk.bf16.mxu0 %vm2331_vm1, %v2330_v17  ;;  %s2335_s30 = smov 80   ;;  %s2336_s3 = smov 112   ;;  %v902_v44 = vshrl.u32 %v901_v41, 7  ;;  %vm1018_vm5 = vcmask 60416   ;;  %vm1138_vm6 = vcmask 126016   ;;  %vm1257_vm7 = vcmask 191616  }
 0x169   : > { %2094 = vmatprep.subr.bf16.mxu0 %v2330_v17  ;;  %2102 = vmatprep.mubr.msk.bf16.mxu1 %vm2331_vm1, %v2330_v17  ;;  %s2337_s15 = smov 72   ;;  %s2338_s18 = smov 104   ;;  %vm1376_vm8 = vcmask 257216   ;;  %vm1592_vm9 = vcmask 523264  }
 0x16a   : > { %s2793_s27 = sld [smem:[#allocation11_spill]]  ;;  %v903_v46 = vsub.s32 0, %v902_v44  ;;  %s2339_s24 = smov 56  }
 0x16b   : > { %s2340_s2 = smov 64   ;;  %s2341_s17 = smov 40  }
 0x16c   : > { %v2563_v19 = vld [vmem:[#allocation2] sm:$0xff]  ;;  %2095 = vmatpush3.bf16.msra.mxu0 %v2253_v18  ;;  %s2342_s23 = smov 48   ;;  %s2343_s1 = smov 8  }
 0x16d   : > { %v829_v20 = vpack.c.bf16 %v2563_v19, %v2563_v19  ;;  %2106 = vmatprep.subr.bf16.mxu0 %v2330_v17 }
 0x16f   : > { %2097 = vmatmul.mubr.msk.bf16.vlgmr.msra.gmra.mxu0 %vm853_vm2, %v829_v20 }
 0x170   : > { %2108 = vmatprep.mubr.msk.bf16.mxu0 %vm2331_vm1, %v2330_v17  ;;  %s2794_s19 = scalar_lea.vmem %s2793_s27, %s2818_s28 }
 0x171   : > { %v826_v42 = vld [vmem:[%s2794_s19] sm:$0x1] }
 0x172   : > { %v2006_v43 = vadd.f32 -1.0, %v826_v42 }
 0x174   : > { %v828_v45 = vmul.f32 1e+09, %v2006_v43 }
 0x176   : > { %v904_v47 = vrot.slane %v828_v45, %v903_v46 }
 0x22f   : > { %v891_v22 = vpop.f32.mrf.mxu0 }
 0x230   : > { %v892_v23 = vadd.f32 %v2007_v21, %v891_v22 }
 0x231   : > { %v2098_v24 = vpop.f32.mrf.mxu0 }
 0x232   : > { %v897_v25 = vmul.f32 0.35355338, %v892_v23  ;;  %v2579_v26 = vpack.c.bf16 %v892_v23, %v892_v23 }
 0x233   : > { %v894_v27 = vpop.f32.mrf.mxu0 }
 0x234   : > { %v898_v28 = vpack.c.bf16 %v897_v25, %v897_v25  ;;  %907 = vrot.lane.b32.xlu0 %v2579_v26, %s2332_s21  ;;  %s2344_s21 = smov 16  }
 0x235   : > { %v2099_v29 = vpop.f32.mrf.mxu0 }
 0x236   : > { %1021 = vrot.lane.b32.xlu1 %v898_v28, %s2333_s29  ;;  %s2345_s29 = smov 24  }
 0x238   : > { %1023 = vrot.lane.b32.xlu0 %v2579_v26, %s2334_s0  ;;  %s2802_s0 = sld [smem:[#allocation4_spill]] }
 0x23a   : > { %1142 = vrot.lane.b32.xlu1 %v2579_v26, %s2335_s30  ;;  %s2795_s30 = scalar_lea.vmem %s2743_s7, %s2479_s20 }
 0x23c   : > { %1140 = vrot.lane.b32.xlu0 %v898_v28, %s2336_s3 }
 0x23e   : > { %1261 = vrot.lane.b32.xlu1 %v2579_v26, %s2337_s15  ;;  %p2040_p8 = scmp.ne.s32.totalorder %s2802_s0, 1 }
 0x23f   : > { %s2803_s15 = sld [smem:[#allocation20_spill]] (!%p2040_p8) }
 0x240   : > { %1259 = vrot.lane.b32.xlu0 %v898_v28, %s2338_s18  ;;  %s2796_s18 = scalar_lea.vmem %s2744_s8, %s2479_s20  ;;  %s2804_s6 = sld [smem:[#allocation21_spill]] (!%p2040_p8) }
 0x2a6   : > { %v908_v30 = vpop.permute.xlu0 %907 }
 0x2a7   : > { %v914_v31 = vsel %vm909_vm3, %v908_v30, 0 }
 0x2a8   : > { %2101 = vmatpush3.bf16.xpose.msra.mxu1 %v914_v31  ;;  %v1022_v33 = vpop.permute.xlu1 %1021 }
 0x2a9   : > { %2112 = vmatprep.subr.bf16.mxu1 %v2330_v17 }
 0x2aa   : > { %v1024_v32 = vpop.permute.xlu0 %1023 }
 0x2ab   : > { %v1029_v34 = vsel %vm909_vm3, %v1024_v32, 0 }
 0x2ac   : > { %v1143_v35 = vpop.permute.xlu1 %1142 }
 0x2ad   : > { %v1148_v36 = vsel %vm909_vm3, %v1143_v35, 0 }
 0x2ae   : > { %v1141_v38 = vpop.permute.xlu0 %1140 }
 0x2af   : > { %2103 = vmatmul.mubr.msk.bf16.vlgmr.msra.gmra.mxu1 %vm909_vm3, %v898_v28 }
 0x2b0   : > { %2113 = vmatpush3.bf16.xpose.msra.mxu1 %v1029_v34  ;;  %2114 = vmatprep.mubr.msk.bf16.mxu1 %vm2331_vm1, %v2330_v17  ;;  %v1262_v37 = vpop.permute.xlu1 %1261 }
 0x2b1   : > { %2124 = vmatprep.subr.bf16.mxu1 %v2330_v17  ;;  %v1267_v39 = vsel %vm909_vm3, %v1262_v37, 0 }
 0x2b2   : > { %v1260_v40 = vpop.permute.xlu0 %1259 }
 0x2b7   : > { %2115 = vmatmul.mubr.msk.bf16.vlgmr.msra.gmra.mxu1 %vm909_vm3, %v1022_v33 }
 0x2b8   : > { %2125 = vmatpush3.bf16.xpose.msra.mxu1 %v1148_v36  ;;  %2126 = vmatprep.mubr.msk.bf16.mxu1 %vm2331_vm1, %v2330_v17 }
 0x2b9   : > { %2136 = vmatprep.subr.bf16.mxu1 %v2330_v17 }
 0x2bf   : > { %2127 = vmatmul.mubr.msk.bf16.vlgmr.msra.gmra.mxu1 %vm909_vm3, %v1141_v38 }
 0x2c0   : > { %2137 = vmatpush3.bf16.xpose.msra.mxu1 %v1267_v39  ;;  %2138 = vmatprep.mubr.msk.bf16.mxu1 %vm2331_vm1, %v2330_v17 }
 0x2c1   : > { %2148 = vmatprep.subr.bf16.mxu1 %v2330_v17 }
 0x2c7   : > { %2139 = vmatmul.mubr.msk.bf16.vlgmr.msra.gmra.mxu1 %vm909_vm3, %v1260_v40 }
 0x2c8   : > { %2152 = vmatprep.mubr.msk.bf16.mxu1 %vm2331_vm1, %v2330_v17 }
 0x36f   : > { %v950_v48 = vpop.f32.mrf.mxu1 }
 0x370   : > { %v951_v49 = vadd.f32 %v950_v48, %v904_v47 }
 0x371   : > { %v2104_v50 = vpop.f32.mrf.mxu1 }
 0x372   : > { %v956_v51 = vsel %vm909_vm3, %v951_v49, -inf }
 0x373   : > { %957 = vmax.xlane.f32.xlu1 %v956_v51  ;;  %v953_v52 = vpop.f32.mrf.mxu1 }
 0x375   : > { %v2105_v53 = vpop.f32.mrf.mxu1 }
 0x377   : > { %v1065_v54 = vpop.f32.mrf.mxu1 }
 0x378   : > { %v1066_v55 = vadd.f32 %v1065_v54, %v904_v47 }
 0x379   : > { %v2116_v56 = vpop.f32.mrf.mxu1 }
 0x37a   : > { %v1071_v57 = vsel %vm909_vm3, %v1066_v55, -inf }
 0x37b   : > { %1072 = vmax.xlane.f32.xlu0 %v1071_v57  ;;  %v1068_v58 = vpop.f32.mrf.mxu1 }
 0x37d   : > { %v2117_v59 = vpop.f32.mrf.mxu1 }
 0x37f   : > { %v1184_v60 = vpop.f32.mrf.mxu1 }
 0x380   : > { %v1185_v61 = vadd.f32 %v1184_v60, %v904_v47 }
 0x381   : > { %v2128_v62 = vpop.f32.mrf.mxu1 }
 0x382   : > { %v1190_v63 = vsel %vm909_vm3, %v1185_v61, -inf }
 0x383   : > { %1191 = vmax.xlane.f32.xlu0 %v1190_v63  ;;  %v1187_v0 = vpop.f32.mrf.mxu1 }
 0x384   : > { %1081 = vrot.lane.b32.xlu1 %v2579_v26, %s2339_s24 }
 0x385   : > { %v2129_v1 = vpop.f32.mrf.mxu1 }
 0x386   : > { %v2254_v1 = vld [vmem:[%s2502_s22 + $0x8] sm:$0xff]  }
 0x387   : > { %v1303_v2 = vpop.f32.mrf.mxu1  ;;  %2149 = vmatpush3.bf16.msra.mxu1 %v2254_v1 }
 0x388   : > { %v1304_v6 = vadd.f32 %v1303_v2, %v904_v47  ;;  %2150 = vmatprep.subr.bf16.mxu1 %v2330_v17 }
 0x389   : > { %v2140_v3 = vpop.f32.mrf.mxu1 }
 0x38a   : > { %v1309_v7 = vsel %vm909_vm3, %v1304_v6, -inf  ;;  %v2255_v3 = vld [vmem:[%s2502_s22] sm:$0xff]  }
 0x38b   : > { %v1306_v4 = vpop.f32.mrf.mxu1  ;;  %2151 = vmatpush3.bf16.msra.mxu1 %v2255_v3 }
 0x38c   : > { %2164 = vmatprep.subr.bf16.mxu1 %v2330_v17 }
 0x38d   : > { %v2141_v5 = vpop.f32.mrf.mxu1 }
 0x399   : > { %966 = vrot.lane.b32.xlu0 %v2579_v26, %s2340_s2  ;;  %s2799_s2 = sld [smem:[#allocation18_spill]] }
 0x39d   : > { %1319 = vrot.lane.b32.xlu0 %v2579_v26, %s2341_s17 }
 0x39f   : > { %s2800_s17 = scalar_lea.vmem %s2799_s2, %s2479_s20 }
 0x3a8   : > { %1310 = vmax.xlane.f32.xlu1 %v1309_v7 }
 0x3b9   : > { %1200 = vrot.lane.b32.xlu1 %v2579_v26, %s2342_s23 }
 0x3fc   : > { %v958_v8 = vpop.xlane.xlu1 %957 }
 0x3fd   : > { %v959_v9 = vsub.f32 %v951_v49, %v958_v8 }
 0x3ff   : > { %v960_v10 = vmul.f32 1.442695, %v959_v9 }
 0x400   : > { %v1082_v22 = vpop.permute.xlu1 %1081 }
 0x401   : > { %2262 = vpow2.f32 %v960_v10  ;;  %v1087_v24 = vsel %vm971_vm4, %v1082_v22, 0 }
 0x404   : > { %v1073_v11 = vpop.xlane.xlu0 %1072 }
 0x405   : > { %v1074_v12 = vsub.f32 %v1066_v55, %v1073_v11 }
 0x407   : > { %v1075_v13 = vmul.f32 1.442695, %v1074_v12 }
 0x409   : > { %2264 = vpow2.f32 %v1075_v13 }
 0x40c   : > { %v1192_v14 = vpop.xlane.xlu0 %1191 }
 0x40d   : > { %v1193_v15 = vsub.f32 %v1185_v61, %v1192_v14 }
 0x40e   : > { %v2263_v18 = vpop.eup %2262 }
 0x40f   : > { %v1194_v16 = vmul.f32 1.442695, %v1193_v15  ;;  %v965_v23 = vpack.c.bf16 %v2263_v18, %v2263_v18  ;;  %v962_v27 = vsel %vm909_vm3, %v2263_v18, 0.0 }
 0x410   : > { %v967_v20 = vpop.permute.xlu0 %966 }
 0x411   : > { %2266 = vpow2.f32 %v1194_v16  ;;  %v973_v21 = vsel %vm971_vm4, %v967_v20, 0  ;;  %v2022_v16 = vld [vmem:[%s2795_s30] ss:$0 sm:$0xff] }
 0x412   : > { %2107 = vmatpush3.bf16.msra.mxu0 %v973_v21 }
 0x413   : > { %2118 = vmatprep.subr.bf16.mxu0 %v2330_v17 }
 0x414   : > { %v1320_v36 = vpop.permute.xlu0 %1319 }
 0x415   : > { %2109 = vmatmul.mubr.msk.bf16.vlgmr.msra.gmra.mxu0 %vm909_vm3, %v965_v23  ;;  %v1325_v38 = vsel %vm971_vm4, %v1320_v36, 0  ;;  %v2026_v36 = vld [vmem:[%s2796_s18] ss:$0 sm:$0xff] }
 0x416   : > { %v2265_v25 = vpop.eup %2264  ;;  %2119 = vmatpush3.bf16.msra.mxu0 %v1087_v24  ;;  %2120 = vmatprep.mubr.msk.bf16.mxu0 %vm2331_vm1, %v2330_v17 }
 0x417   : > { %v1077_v26 = vsel %vm909_vm3, %v2265_v25, 0.0  ;;  %2130 = vmatprep.subr.bf16.mxu0 %v2330_v17  ;;  %v1080_v28 = vpack.c.bf16 %v2265_v25, %v2265_v25 }
 0x418   : > { %1078 = vadd.xlane.f32.xlu1 %v1077_v26 }
 0x41c   : > { %963 = vadd.xlane.f32.xlu1 %v962_v27 }
 0x41d   : > { %2121 = vmatmul.mubr.msk.bf16.vlgmr.msra.gmra.mxu0 %vm909_vm3, %v1080_v28 }
 0x41e   : > { %v2267_v29 = vpop.eup %2266  ;;  %2132 = vmatprep.mubr.msk.bf16.mxu0 %vm2331_vm1, %v2330_v17 }
 0x41f   : > { %v1196_v30 = vsel %vm909_vm3, %v2267_v29, 0.0  ;;  %v1199_v37 = vpack.c.bf16 %v2267_v29, %v2267_v29 }
 0x420   : > { %1197 = vadd.xlane.f32.xlu0 %v1196_v30 }
 0x431   : > { %v1311_v31 = vpop.xlane.xlu1 %1310 }
 0x432   : > { %v1312_v32 = vsub.f32 %v1304_v6, %v1311_v31  ;;  %v2256_v31 = vld [vmem:[%s2519_s16 + $0x8] sm:$0xff]  }
 0x434   : > { %v1313_v33 = vmul.f32 1.442695, %v1312_v32  ;;  %v2257_v32 = vld [vmem:[%s2519_s16] sm:$0xff]   ;;  %s2797_s16 = sld [smem:[#allocation16_spill]] }
 0x435   : > { %v1201_v34 = vpop.permute.xlu1 %1200 }
 0x436   : > { %2268 = vpow2.f32 %v1313_v33  ;;  %v1206_v35 = vsel %vm971_vm4, %v1201_v34, 0 }
 0x437   : > { %2131 = vmatpush3.bf16.msra.mxu0 %v1206_v35 }
 0x438   : > { %2142 = vmatprep.subr.bf16.mxu0 %v2330_v17 }
 0x43a   : > { %2133 = vmatmul.mubr.msk.bf16.vlgmr.msra.gmra.mxu0 %vm909_vm3, %v1199_v37  ;;  %s2798_s27 = scalar_lea.vmem %s2797_s16, %s2479_s20 }
 0x43b   : > { %2143 = vmatpush3.bf16.msra.mxu0 %v1325_v38  ;;  %2144 = vmatprep.mubr.msk.bf16.mxu0 %vm2331_vm1, %v2330_v17  ;;  %v2027_v38 = vld [vmem:[%s2798_s27] ss:$0 sm:$0xff] }
 0x43c   : > { %2156 = vmatprep.subr.bf16.mxu0 %v2330_v17 }
 0x443   : > { %v2269_v39 = vpop.eup %2268 }
 0x444   : > { %v1315_v40 = vsel %vm909_vm3, %v2269_v39, 0.0  ;;  %v1318_v41 = vpack.c.bf16 %v2269_v39, %v2269_v39 }
 0x445   : > { %1316 = vadd.xlane.f32.xlu0 %v1315_v40 }
 0x446   : > { %2145 = vmatmul.mubr.msk.bf16.vlgmr.msra.gmra.mxu0 %vm909_vm3, %v1318_v41 }
 0x447   : > { %2160 = vmatprep.mubr.msk.bf16.mxu0 %vm2331_vm1, %v2330_v17  ;;  %2157 = vmatpush3.bf16.msra.mxu0 %v2256_v31 }
 0x448   : > { %2158 = vmatprep.subr.bf16.mxu0 %v2330_v17 }
 0x44b   : > { %2159 = vmatpush3.bf16.msra.mxu0 %v2257_v32 }
 0x4a1   : > { %v1079_v42 = vpop.xlane.xlu1 %1078 }
 0x4a5   : > { %v964_v43 = vpop.xlane.xlu1 %963 }
 0x4a6   : > { %2270 = vrcp.f32 %v964_v43  ;;  %v2259_v43 = vld [vmem:[%s2533_s26 + $0x10] sm:$0xff]  }
 0x4a7   : > { %2272 = vrcp.f32 %v1079_v42  ;;  %v2258_v42 = vld [vmem:[%s2533_s26 + $0x18] sm:$0xff]  }
 0x4a9   : > { %v1198_v58 = vpop.xlane.xlu0 %1197 }
 0x4aa   : > { %2274 = vrcp.f32 %v1198_v58 }
 0x4b3   : > { %v2271_v44 = vpop.eup %2270 }
 0x4b4   : > { %v2273_v51 = vpop.eup %2272 }
 0x4b7   : > { %v2275_v60 = vpop.eup %2274 }
 0x4ce   : > { %v1317_v59 = vpop.xlane.xlu0 %1316 }
 0x4cf   : > { %2276 = vrcp.f32 %v1317_v59 }
 0x4d5   : > { %v1009_v45 = vpop.f32.mrf.mxu0 }
 0x4d6   : > { %v1016_v46 = vmul.f32 %v2271_v44, %v1009_v45  ;;  %v2260_v44 = vld [vmem:[%s2533_s26 + $0x8] sm:$0xff]   ;;  %v2261_v45 = vld [vmem:[%s2533_s26] sm:$0xff]  }
 0x4d7   : > { %v2110_v47 = vpop.f32.mrf.mxu0 }
 0x4d8   : > { %v1017_v48 = vpack.c.bf16 %v1016_v46, %v1016_v46  ;;  %v2028_v46 = vld [vmem:[%s2800_s17] ss:$0 sm:$0xff] }
 0x4d9   : > { %v1012_v49 = vpop.f32.mrf.mxu0 }
 0x4da   : > { %1019 = vst.msk [vmem:[#allocation3] sm:$0xf] %vm1018_vm5, %v1017_v48 }
 0x4db   : > { %v2111_v50 = vpop.f32.mrf.mxu0 }
 0x4dc   : > { %v2277_v5 = vpop.eup %2276 }
 0x4dd   : > { %v1123_v52 = vpop.f32.mrf.mxu0 }
 0x4de   : > { %v1130_v53 = vmul.f32 %v2273_v51, %v1123_v52 }
 0x4df   : > { %v2122_v54 = vpop.f32.mrf.mxu0 }
 0x4e0   : > { %v2053_v55 = vpack.c.bf16 %v1130_v53, %v1130_v53 }
 0x4e1   : > { %v1126_v56 = vpop.f32.mrf.mxu0 }
 0x4e2   : > { %1135 = vrot.lane.b32.xlu0 %v2053_v55, %s2343_s1 }
 0x4e3   : > { %v2123_v57 = vpop.f32.mrf.mxu0 }
 0x4fa   : > { %v1242_v61 = vpop.f32.mrf.mxu0 }
 0x4fb   : > { %v1249_v62 = vmul.f32 %v2275_v60, %v1242_v61  ;;  %v2032_v61 = vld [vmem:[%s777_s25] ss:$0 sm:$0xff] }
 0x4fc   : > { %v2134_v63 = vpop.f32.mrf.mxu0 }
 0x4fd   : > { %v2054_v0 = vpack.c.bf16 %v1249_v62, %v1249_v62 }
 0x4fe   : > { %v1245_v2 = vpop.f32.mrf.mxu0 }
 0x4ff   : > { %1254 = vrot.lane.b32.xlu1 %v2054_v0, %s2344_s21 }
 0x500   : > { %v2135_v4 = vpop.f32.mrf.mxu0 }
 0x506   : > { %v1361_v6 = vpop.f32.mrf.mxu0 }
 0x507   : > { %v1368_v7 = vmul.f32 %v2277_v5, %v1361_v6 }
 0x508   : > { %v2146_v8 = vpop.f32.mrf.mxu0 }
 0x509   : > { %v2055_v9 = vpack.c.bf16 %v1368_v7, %v1368_v7 }
 0x50a   : > { %v1364_v10 = vpop.f32.mrf.mxu0 }
 0x50b   : > { %1373 = vrot.lane.b32.xlu1 %v2055_v9, %s2345_s29 }
 0x50c   : > { %v2147_v11 = vpop.f32.mrf.mxu0 }
 0x554   : > { %v1136_v12 = vpop.permute.xlu0 %1135 }
 0x555   : > { %1139 = vst.msk [vmem:[#allocation3] sm:$0xf] %vm1138_vm6, %v1136_v12 }
 0x571   : > { %v1255_v13 = vpop.permute.xlu1 %1254 }
 0x572   : > { %1258 = vst.msk [vmem:[#allocation3] sm:$0xf] %vm1257_vm7, %v1255_v13 }
 0x57d   : > { %v1374_v14 = vpop.permute.xlu1 %1373 }
 0x57e   : > { %1377 = vst.msk [vmem:[#allocation3] sm:$0xf] %vm1376_vm8, %v1374_v14  ;;  %v2038_v14 = vld [vmem:[%s780_s4] ss:$0 sm:$0xff] }
 0x585   : > { %v1378_v15 = vld [vmem:[#allocation3] sm:$0xf] }
 0x586   : > { %2153 = vmatmul.mubr.msk.bf16.vlgmr.msra.gmra.mxu1 %vm853_vm2, %v1378_v15 }
 0x587   : > { %2172 = vmatprep.mubr.msk.bf16.mxu1 %vm2331_vm1, %v2330_v17  ;;  %2165 = vmatpush3.bf16.msra.mxu1 %v2258_v42 }
 0x588   : > { %2166 = vmatprep.subr.bf16.mxu1 %v2330_v17 }
 0x58b   : > { %2167 = vmatpush3.bf16.msra.mxu1 %v2259_v43 }
 0x58c   : > { %2168 = vmatprep.subr.bf16.mxu1 %v2330_v17 }
 0x58f   : > { %2169 = vmatpush3.bf16.msra.mxu1 %v2260_v44 }
 0x590   : > { %2170 = vmatprep.subr.bf16.mxu1 %v2330_v17 }
 0x593   : > { %2171 = vmatpush3.bf16.msra.mxu1 %v2261_v45 }
 0x646   : > { %v1439_v18 = vpop.f32.mrf.mxu1 }
 0x647   : > { %v1440_v20 = vadd.f32 %v2022_v16, %v1439_v18  ;;  %v2039_v16 = vld [vmem:[%s783_s10] ss:$0 sm:$0xff] }
 0x648   : > { %v2154_v21 = vpop.f32.mrf.mxu1 }
 0x649   : > { %v1445_v22 = vadd.f32 %v1440_v20, %v2563_v19 }
 0x64a   : > { %v1442_v23 = vpop.f32.mrf.mxu1 }
 0x64b   : > { %v1448_v24 = vsel %vm853_vm2, %v1445_v22, 0.0 }
 0x64c   : > { %1449 = vadd.xlane.f32.xlu0 %v1448_v24  ;;  %v2155_v25 = vpop.f32.mrf.mxu1 }
 0x6d5   : > { %v1450_v26 = vpop.xlane.xlu0 %1449 }
 0x6d6   : > { %v1452_v27 = vmul.f32 0.03125, %v1450_v26 }
 0x6d8   : > { %v1453_v28 = vsub.f32 %v1445_v22, %v1452_v27 }
 0x6da   : > { %v1454_v29 = vmul.f32 %v1453_v28, %v1453_v28 }
 0x6dc   : > { %v1455_v30 = vsel %vm853_vm2, %v1454_v29, 0.0 }
 0x6dd   : > { %1456 = vadd.xlane.f32.xlu1 %v1455_v30 }
 0x766   : > { %v1457_v19 = vpop.xlane.xlu1 %1456 }
 0x767   : > { %v1458_v33 = vmul.f32 0.03125, %v1457_v19 }
 0x769   : > { %v1459_v34 = vadd.f32 1e-12, %v1458_v33 }
 0x76b   : > { %2278 = vrsqrt.f32 %v1459_v34 }
 0x778   : > { %v2279_v35 = vpop.eup %2278 }
 0x779   : > { %v1461_v37 = vmul.f32 %v2279_v35, %v1453_v28 }
 0x77b   : > { %v1468_v39 = vmul.f32 %v2026_v36, %v1461_v37 }
 0x77d   : > { %v1475_v40 = vadd.f32 %v2027_v38, %v1468_v39 }
 0x77f   : > { %v1476_v41 = vpack.c.bf16 %v1475_v40, %v1475_v40 }
 0x781   : > { %2161 = vmatmul.mubr.msk.bf16.vlgmr.msra.gmra.mxu0 %vm853_vm2, %v1476_v41 }
 0x841   : > { %v1537_v47 = vpop.f32.mrf.mxu0 }
 0x842   : > { %v1538_v48 = vadd.f32 %v2028_v46, %v1537_v47 }
 0x843   : > { %v2162_v49 = vpop.f32.mrf.mxu0 }
 0x844   : > { %v1543_v50 = vmul.f32 %v1538_v48, %v1538_v48 }
 0x845   : > { %v1540_v51 = vpop.f32.mrf.mxu0 }
 0x846   : > { %v1544_v52 = vmul.f32 %v1543_v50, %v1538_v48 }
 0x847   : > { %v2163_v53 = vpop.f32.mrf.mxu0 }
 0x848   : > { %v1545_v54 = vmul.f32 0.044715, %v1544_v52 }
 0x84a   : > { %v1546_v55 = vadd.f32 %v1545_v54, %v1538_v48 }
 0x84c   : > { %v1547_v56 = vmul.f32 0.7978846, %v1546_v55 }
 0x84e   : > { %2280 = vtanh.f32 %v1547_v56 }
 0x85b   : > { %v2281_v17 = vpop.eup %2280 }
 0x85c   : > { %v1549_v57 = vadd.f32 1.0, %v2281_v17 }
 0x85e   : > { %v1550_v58 = vmul.f32 0.5, %v1549_v57 }
 0x860   : > { %v1551_v59 = vmul.f32 %v1550_v58, %v1538_v48 }
 0x862   : > { %v1552_v60 = vpack.c.bf16 %v1551_v59, %v1551_v59 }
 0x864   : > { %2173 = vmatmul.mubr.msk.bf16.vlgmr.msra.gmra.mxu1 %vm1592_vm9, %v1552_v60 }
 0x924   : > { %v1630_v62 = vpop.f32.mrf.mxu1 }
 0x925   : > { %v1631_v63 = vadd.f32 %v2032_v61, %v1630_v62 }
 0x926   : > { %v2174_v0 = vpop.f32.mrf.mxu1 }
 0x927   : > { %v1636_v1 = vadd.f32 %v1631_v63, %v1475_v40 }
 0x928   : > { %v1633_v2 = vpop.f32.mrf.mxu1 }
 0x929   : > { %v1639_v3 = vsel %vm853_vm2, %v1636_v1, 0.0 }
 0x92a   : > { %1640 = vadd.xlane.f32.xlu0 %v1639_v3  ;;  %v2175_v4 = vpop.f32.mrf.mxu1 }
 0x9b3   : > { %v1641_v5 = vpop.xlane.xlu0 %1640 }
 0x9b4   : > { %v1642_v6 = vmul.f32 0.03125, %v1641_v5 }
 0x9b6   : > { %v1643_v7 = vsub.f32 %v1636_v1, %v1642_v6 }
 0x9b8   : > { %v1644_v8 = vmul.f32 %v1643_v7, %v1643_v7 }
 0x9ba   : > { %v1645_v9 = vsel %vm853_vm2, %v1644_v8, 0.0 }
 0x9bb   : > { %1646 = vadd.xlane.f32.xlu0 %v1645_v9 }
 0xa44   : > { %v1647_v10 = vpop.xlane.xlu0 %1646 }
 0xa45   : > { %v1648_v11 = vmul.f32 0.03125, %v1647_v10 }
 0xa47   : > { %v1649_v12 = vadd.f32 1e-12, %v1648_v11 }
 0xa49   : > { %2282 = vrsqrt.f32 %v1649_v12 }
 0xa56   : > { %v2283_v13 = vpop.eup %2282 }
 0xa57   : > { %v1651_v15 = vmul.f32 %v2283_v13, %v1643_v7 }
 0xa59   : > { %v1658_v18 = vmul.f32 %v2038_v14, %v1651_v15  ;;  %1670 = sbr.rel (%p2040_p8) target bundleno = 3087 (0xc0f), region = 100 }
 0xa5b   : > { %v1665_v20 = vadd.f32 %v2039_v16, %v1658_v18 }
 0xa5d   : > { %1666 = vst.msk [vmem:[#allocation2] sm:$0xff] %vm853_vm2, %v1665_v20 }
 0xa5e   : > { %v2284_v21 = vld [vmem:[%s2803_s15 + $0x8] sm:$0xff]   ;;  %v2346_v22 = vmov 0.0   ;;  %v2285_v23 = vld [vmem:[%s2803_s15] sm:$0xff]   ;;  %vm2347_vm10 = vmmov 0   ;;  %v1671_v24 = vpack.c.bf16 %v1665_v20, %v1665_v20  ;;  %vm1753_vm11 = vcmask 195584  }
 0xa5f   : > { %2176 = vmatprep.subr.bf16.mxu0 %v2346_v22  ;;  %2184 = vmatprep.subr.bf16.mxu1 %v2346_v22  ;;  %v2286_v25 = vld [vmem:[%s2804_s6 + $0x8] ss:$0 sps:$4 sm:$0xff]   ;;  %v2287_v27 = vld [vmem:[%s2804_s6] sm:$0xff]   ;;  %vm1800_vm12 = vcmask 122880  }
 0xa60   : > { %2177 = vmatpush3.bf16.msra.mxu0 %v2284_v21  ;;  %2180 = vmatprep.mubr.msk.bf16.mxu0 %vm2347_vm10, %v2346_v22  ;;  %v1758_v26 = vsel %vm971_vm4, %v2286_v25, 0 }
 0xa61   : > { %2178 = vmatprep.subr.bf16.mxu0 %v2346_v22  ;;  %2188 = vmatprep.mubr.msk.bf16.mxu1 %vm2347_vm10, %v2346_v22 }
 0xa62   : > { %2185 = vmatpush3.bf16.msra.mxu1 %v1758_v26 }
 0xa63   : > { %2186 = vmatprep.subr.bf16.mxu1 %v2346_v22 }
 0xa64   : > { %2179 = vmatpush3.bf16.msra.mxu0 %v2285_v23 }
 0xa66   : > { %2187 = vmatpush3.bf16.msra.mxu1 %v2287_v27 }
 0xa67   : > { %2181 = vmatmul.mubr.msk.bf16.vlgmr.msra.gmra.mxu0 %vm853_vm2, %v1671_v24 }
 0xb27   : > { %v1725_v28 = vpop.f32.mrf.mxu0 }
 0xb28   : > { %v1731_v29 = vmul.f32 %v1725_v28, %v1725_v28 }
 0xb29   : > { %v2182_v30 = vpop.f32.mrf.mxu0 }
 0xb2a   : > { %v1732_v31 = vmul.f32 %v1731_v29, %v1725_v28 }
 0xb2b   : > { %v1728_v32 = vpop.f32.mrf.mxu0 }
 0xb2c   : > { %v1733_v19 = vmul.f32 0.044715, %v1732_v31 }
 0xb2d   : > { %v2183_v33 = vpop.f32.mrf.mxu0 }
 0xb2e   : > { %v1734_v34 = vadd.f32 %v1733_v19, %v1725_v28 }
 0xb30   : > { %v1735_v35 = vmul.f32 0.7978846, %v1734_v34 }
 0xb32   : > { %2288 = vtanh.f32 %v1735_v35 }
 0xb3f   : > { %v2289_v36 = vpop.eup %2288 }
 0xb40   : > { %v1737_v37 = vadd.f32 1.0, %v2289_v36 }
 0xb42   : > { %v1738_v38 = vmul.f32 0.5, %v1737_v37 }
 0xb44   : > { %v1739_v39 = vmul.f32 %v1738_v38, %v1725_v28 }
 0xb46   : > { %v1740_v40 = vpack.c.bf16 %v1739_v39, %v1739_v39 }
 0xb48   : > { %2189 = vmatmul.mubr.msk.bf16.vlgmr.msra.gmra.mxu1 %vm1753_vm11, %v1740_v40 }
 0xc08   : > { %v1794_v41 = vpop.f32.mrf.mxu1 }
 0xc09   : > { %1801 = vst.msk [vmem:[%s786_s11] sm:$0x1] %vm1800_vm12, %v1794_v41 }
 0xc0a   : > { %v2190_v42 = vpop.f32.mrf.mxu1 }
 0xc0c   : > { %v1797_v43 = vpop.f32.mrf.mxu1 }
 0xc0e   : > { %v2191_v44 = vpop.f32.mrf.mxu1 }
 0xc0f PF: > { %s2806_s2 = sld [smem:[#allocation7_spill]] }
 0xc10   : > { %s2807_s27 = sld [smem:[#allocation5_spill]] }
 0xc11   : > { %s2808_s28 = sld [smem:[#allocation6_spill]] }
 0xc12   : > { %s2809_s29 = sld [smem:[#allocation8_spill]] }
 0xc13   : > { %s2810_s30 = sld [smem:[#allocation9_spill]] }
 0xc15   : > { %s28_s0 = sadd.s32 1, %s2806_s2  }
 0xc16   : > { %p25_p9 = scmp.ge.s32.totalorder %s28_s0, 6  }
 0xc18   :  { %27 = sbr.rel (!%p25_p9) target bundleno = 14 (0xe), region = 169 }

// kernel: biomedclipseg_forward.3
= control target key start
LH: loop header
LB: loop body
LE: loop exit
PB: predicated region body
PF: predicated region fallthrough
CT: control target
= control target key end

     0   :  { %s2902_s21 = smov 0   ;;  %s2904_s22 = smov 0   ;;  %s3307_s0 = inlined_call_operand.vmem [shape: bf16[2,16,48], index: 0, kind: input, shape index: {}]   ;;  %s3308_s1 = inlined_call_operand.vmem [shape: bf16[48,32], index: 1, kind: input, shape index: {}]   ;;  %s3309_s2 = inlined_call_operand.vmem [shape: f32[1,32], index: 2, kind: input, shape index: {}]   ;;  %s3310_s3 = inlined_call_operand.vmem [shape: f32[17,32], index: 3, kind: input, shape index: {}]   ;;  %s3311_s4 = inlined_call_operand.vmem [shape: f32[4,1,32], index: 4, kind: input, shape index: {}]   ;;  %s3312_s5 = inlined_call_operand.vmem [shape: f32[4,1,32], index: 5, kind: input, shape index: {}]   ;;  %s3313_s6 = inlined_call_operand.vmem [shape: bf16[4,32,96], index: 6, kind: input, shape index: {}]   ;;  %s3314_s7 = inlined_call_operand.vmem [shape: f32[4,1,96], index: 7, kind: input, shape index: {}]   ;;  %s3315_s8 = inlined_call_operand.vmem [shape: bf16[4,32,32], index: 8, kind: input, shape index: {}]   ;;  %s3316_s9 = inlined_call_operand.vmem [shape: f32[4,1,32], index: 9, kind: input, shape index: {}]   ;;  %s3317_s10 = inlined_call_operand.vmem [shape: f32[4,1,32], index: 10, kind: input, shape index: {}]   ;;  %s3318_s11 = inlined_call_operand.vmem [shape: f32[4,1,32], index: 11, kind: input, shape index: {}]   ;;  %s3319_s12 = inlined_call_operand.vmem [shape: bf16[4,32,64], index: 12, kind: input, shape index: {}]   ;;  %s3320_s13 = inlined_call_operand.vmem [shape: f32[4,1,64], index: 13, kind: input, shape index: {}]   ;;  %s3321_s14 = inlined_call_operand.vmem [shape: bf16[4,64,32], index: 14, kind: input, shape index: {}]   ;;  %s3322_s15 = inlined_call_operand.vmem [shape: f32[4,1,32], index: 15, kind: input, shape index: {}]   ;;  %s3323_s16 = inlined_call_operand.vmem [shape: bf16[4,2,17,32], index: 16, kind: output, shape index: {}]  }
   0x1   :  { %3330 = sst [smem:[#allocation10_spill]] %s3307_s0  ;;  %s2906_s23 = smov 0  }
   0x2   :  { %3331 = sst [smem:[#allocation11_spill]] %s3308_s1  ;;  %s2908_s24 = smov 0  }
   0x3   :  { %3332 = sst [smem:[#allocation12_spill]] %s3309_s2  ;;  %s2910_s25 = smov 0  }
   0x4   :  { %3333 = sst [smem:[#allocation13_spill]] %s3310_s3 }
   0x5   :  { %3334 = sst [smem:[#allocation14_spill]] %s3312_s5 }
   0x6   :  { %3335 = sst [smem:[#allocation15_spill]] %s3313_s6 }
   0x7   :  { %3336 = sst [smem:[#allocation16_spill]] %s3315_s8 }
   0x8   :  { %3337 = sst [smem:[#allocation17_spill]] %s3319_s12 }
   0x9   :  { %3338 = sst [smem:[#allocation18_spill]] %s3323_s16 }
   0xa LB: > { %3339 = sst [smem:[#allocation4_spill]] %s2782_s21  ;;  %s35_s26 = sadd.s32 1, %s2790_s23  ;;  %s2798_s25 = sphi %s2910_s25, %s26_s25   ;;  %s2794_s24 = sphi %s2908_s24, %s3368_s24   ;;  %s2790_s23 = sphi %s2906_s23, %s3367_s23   ;;  %s2786_s22 = sphi %s2904_s22, %s3366_s22   ;;  %s2782_s21 = sphi %s2902_s21, %s3365_s21  }
   0xb   : > { %3340 = sst [smem:[#allocation5_spill]] %s2790_s23  ;;  %s38_s27 = sadd.s32 1, %s2794_s24 }
   0xc   : > { %3341 = sst [smem:[#allocation6_spill]] %s2794_s24  ;;  %p36_p0 = scmp.ge.s32.totalorder %s35_s26, 4 }
   0xd   : > { %3342 = sst [smem:[#allocation7_spill]] %s2798_s25  ;;  %p2347_p1 = scmp.ge.s32.totalorder %s2798_s25, 1 }
   0xe   : > { %p580_p2 = scmp.lt.s32.totalorder %s2798_s25, 9  ;;  %s3370_s26 = smov (%p36_p0, %s35_s26), 0 }
   0xf   : > { %3343 = sst [smem:[#allocation8_spill]] %s3370_s26  ;;  %s3372_s27 = smov (!%p36_p0, %s38_s27), %s2794_s24 }
  0x10   : > { %p581_p3 = pnand %p2347_p1, %p580_p2  ;;  %p40_p4 = scmp.ge.s32.totalorder %s3372_s27, 2 }
  0x11   : > { %p678_p5 = scmp.lt.s32.totalorder (!%p581_p3), %s2786_s22, 1  ;;  %p683_p6 = scmp.lt.s32.totalorder (!%p581_p3), %s2782_s21, 3 }
  0x12   : > { %s3374_s27 = smov (%p40_p4, %s3372_s27), 0  ;;  %584 = sbr.rel (%p581_p3) target bundleno = 3674 (0xe5a), region = 84 }
  0x13   : > { %3344 = sst [smem:[#allocation9_spill]] %s3374_s27 }
  0x14   : > { %s3345_s18 = sld [smem:[#allocation10_spill]] (!%p581_p3) }
  0x15   : > { %s3347_s6 = sld [smem:[#allocation15_spill]] (!%p581_p3) }
  0x16   : > { %s3348_s8 = sld [smem:[#allocation16_spill]] (!%p581_p3) }
  0x17   : > { %s3376_s22 = smov (!%p678_p5, %s2786_s22), 1  ;;  %s3349_s12 = sld [smem:[#allocation17_spill]] }
  0x18   : > { %s2936_s28 = scalar_select %p683_p6, %s2782_s21, 3 }
  0x19   : > { %s2427_s29 = sshll.u32 %s3376_s22, 3  ;;  %s2619_s30 = smul.u32 3, %s3376_s22 }
  0x1a   : > { %s2941_s19 = scalar_lea.vmem %s3345_s18, %s2427_s29  ;;  %s2428_s2 = sshll.u32 %s2936_s28, 4 }
  0x1b   : > { %s2955_s21 = scalar_lea.vmem %s3347_s6, %s2428_s2  ;;  %s726_s23 = scalar_lea.vmem %s3322_s15, %s2936_s28 }
  0x1c   : > { %s2964_s18 = scalar_lea.vmem %s3348_s8, %s2428_s2  ;;  %s2431_s8 = sshll.u32 %s2936_s28, 5 }
  0x1d   : > { %s2981_s22 = scalar_lea.vmem %s3349_s12, %s2428_s2  ;;  %s2995_s26 = scalar_lea.vmem %s3321_s14, %s2431_s8 }
  0x1e   : > { %s2620_s1 = smul.u32 6, %s2936_s28  ;;  %s3350_s16 = sld [smem:[#allocation18_spill]] }
  0x1f   : > { %s3351_s29 = sld [smem:[#allocation4_spill]] }
  0x20   : > { %s733_s3 = sadd.s32 %s2620_s1, %s2619_s30 }
  0x21   : > { %s2358_s6 = sshll.u32 %s733_s3, 2 }
  0x24   : > { %s3001_s12 = scalar_lea.vmem %s3350_s16, %s2358_s6 }
  0x25   : > { %p2359_p7 = scmp.ne.s32.totalorder %s3351_s29, 0 }
  0x26   : > { %s3352_s27 = sld [smem:[#allocation11_spill]] (!%p2359_p7) }
  0x27   : > { %740 = sbr.rel (%p2359_p7) target bundleno = 259 (0x103), region = 88  ;;  %s3353_s24 = sld [smem:[#allocation13_spill]] (!%p2359_p7) }
  0x28   : > { %s3355_s17 = sld [smem:[#allocation12_spill]] (!%p2359_p7) }
  0x2c   : > { %v2678_v0 = vld [vmem:[%s3352_s27 + $0x10] sm:$0xff]   ;;  %v2800_v1 = vmov 0.0   ;;  %v2679_v2 = vld [vmem:[%s3352_s27 + $0x8] sm:$0xff]   ;;  %vm2801_vm0 = vmmov 0   ;;  %v2680_v3 = vld [vmem:[%s3352_s27] sm:$0xff]   ;;  %vm779_vm1 = vcmask 392192  }
  0x2d   : > { %2501 = vmatprep.subr.bf16.mxu0 %v2800_v1  ;;  %2507 = vmatprep.mubr.msk.bf16.mxu0 %vm2801_vm0, %v2800_v1  ;;  %v2681_v4 = vld [vmem:[%s2941_s19] sm:$0xff]   ;;  %s3354_s1 = smov %s3353_s24  ;;  %vm827_vm2 = vcmask 261120   ;;  %vm830_vm3 = vcmask 253952  }
  0x2e   : > { %2502 = vmatpush3.bf16.msra.mxu0 %v2678_v0  ;;  %v824_v5 = vld [vmem:[%s3353_s24] sm:$0xff]  ;;  %v825_v6 = vld [vmem:[%s3354_s1 + $0x8] sm:$0xff]  ;;  %v826_v7 = vld [vmem:[%s3354_s1 + $0x10] sm:$0x1] }
  0x2f   : > { %2503 = vmatprep.subr.bf16.mxu0 %v2800_v1  ;;  %828 = vst.msk [vmem:[#allocation2] sm:$0xff] %vm827_vm2, %v824_v5  ;;  %829 = vst.msk [vmem:[#allocation2 + $0x8] sm:$0xff] %vm827_vm2, %v825_v6  ;;  %v2360_v8 = vld [vmem:[%s3355_s17] ss:$0 sm:$0xff] }
  0x30   : > { %831 = vst.msk [vmem:[#allocation2 + $0x10] sm:$0x1] %vm830_vm3, %v826_v7 }
  0x32   : > { %2504 = vmatpush3.bf16.msra.mxu0 %v2679_v2 }
  0x33   : > { %2505 = vmatprep.subr.bf16.mxu0 %v2800_v1 }
  0x36   : > { %2506 = vmatpush3.bf16.msra.mxu0 %v2680_v3  ;;  %v832_v10 = vld [vmem:[#allocation2 + $0x1] sm:$0xff] }
  0x37   : > { %v833_v15 = vld [vmem:[#allocation2 + $0x9] sm:$0xff] }
  0x39   : > { %2508 = vmatmul.mubr.msk.bf16.vlgmr.msra.gmra.mxu0 %vm779_vm1, %v2681_v4 }
  0xf9   : > { %v817_v9 = vpop.f32.mrf.mxu0 }
  0xfa   : > { %v818_v11 = vadd.f32 %v2360_v8, %v817_v9 }
  0xfb   : > { %v2509_v12 = vpop.f32.mrf.mxu0 }
  0xfc   : > { %v834_v13 = vadd.f32 %v832_v10, %v818_v11 }
  0xfd   : > { %v820_v14 = vpop.f32.mrf.mxu0 }
  0xfe   : > { %836 = vst.msk [vmem:[#allocation2 + $0x1] sm:$0xff] %vm827_vm2, %v834_v13  ;;  %v821_v16 = vadd.f32 %v2360_v8, %v820_v14 }
  0xff   : > { %v2510_v17 = vpop.f32.mrf.mxu0 }
 0x100   : > { %v835_v18 = vadd.f32 %v833_v15, %v821_v16 }
 0x102   : > { %837 = vst.msk [vmem:[#allocation2 + $0x9] sm:$0xff] %vm827_vm2, %v835_v18 }
 0x103 PF: > { %vm843_vm4 = vcmask 261120   ;;  %vm850_vm5 = vcmask 253952   ;;  %v2682_v40 = vld [vmem:[%s2955_s21 + $0x8] sm:$0xff]   ;;  %v2683_v41 = vld [vmem:[%s2955_s21] sm:$0xff]   ;;  %s3356_s20 = scalar_lea.vmem %s3311_s4, %s2936_s28  ;;  %s3357_s0 = sld [smem:[#allocation14_spill]]  ;;  %vm995_vm6 = vcmask 64512  }
 0x104   : > { %2511 = vmatprep.subr.bf16.mxu0 %v2682_v40  ;;  %v2366_v53 = vld [vmem:[%s3356_s20] ss:$0 sm:$0xff]  ;;  %s3359_s5 = scalar_lea.vmem %s3314_s7, %s2936_s28  ;;  %s2802_s2 = smov 96   ;;  %vm1098_vm7 = vcmask 1040384   ;;  %vm1063_vm8 = vcmask 131072   ;;  %vm1056_vm9 = vcmask 138240  }
 0x105   : > { %v3030_v19 = vld [vmem:[#allocation2] sm:$0xff]  ;;  %2512 = vmatpush3.bf16.msra.mxu0 %v2682_v40  ;;  %s2803_s16 = smov 64   ;;  %s2805_s19 = smov 88   ;;  %vm1174_vm10 = vcmask 57344   ;;  %vm1175_vm11 = vsmask.f32 256 }
 0x106   : > { %v844_v22 = vsel %vm843_vm4, %v3030_v19, 0.0  ;;  %2513 = vmatprep.subr.bf16.mxu0 %v2683_v41  ;;  %v2368_v3 = vld [vmem:[%s3359_s5] ss:$0 sm:$0xff]  ;;  %s2806_s29 = smov 120   ;;  %s2807_s17 = smov 56   ;;  %vm1176_vm12 = vmand %vm1174_vm10, %vm1175_vm11  ;;  %vm1171_vm13 = vcmask 60416  }
 0x107   : > { %845 = vadd.xlane.f32.xlu0 %v844_v22  ;;  %v2804_v22 = vmov 0   ;;  %s2808_s21 = smov 80   ;;  %s2809_s8 = smov 112   ;;  %vm1369_vm14 = vcmask 122944   ;;  %vm1366_vm0 = vcmask 126016   ;;  %vm1561_vm1 = vcmask 188544   ;;  %vm2133_vm10 = vmand %vm850_vm5, %vm1175_vm11 }
 0x108   : > { %s2810_s20 = smov 48   ;;  %s2811_s6 = smov 72   ;;  %vm1370_vm15 = vmand %vm1369_vm14, %vm1175_vm11  ;;  %vm1558_vm2 = vcmask 191616  }
 0x109   : > { %v3032_v20 = vld [vmem:[#allocation2 + $0x10] sm:$0x1]  ;;  %v3034_v21 = vld [vmem:[#allocation2 + $0x8] sm:$0xff]  ;;  %2514 = vmatpush3.bf16.msra.mxu0 %v2683_v41  ;;  %s3358_s25 = scalar_lea.vmem %s3357_s0, %s2936_s28  ;;  %s2812_s30 = smov 104   ;;  %vm1562_vm3 = vmand %vm1561_vm1, %vm1175_vm11 }
 0x10a   : > { %v851_v23 = vsel %vm850_vm5, %v3032_v20, 0.0  ;;  %v847_v24 = vsel %vm843_vm4, %v3034_v21, 0.0  ;;  %v2367_v59 = vld [vmem:[%s3358_s25] ss:$0 sm:$0xff]  ;;  %s2813_s0 = smov 40   ;;  %s2814_s25 = smov 8  }
 0x10b   : > { %852 = vadd.xlane.f32.xlu1 %v851_v23  ;;  %848 = vadd.xlane.f32.xlu0 %v847_v24  ;;  %v3082_v23 = vsel %vm1098_vm7, 65535, %v2804_v22  ;;  %s2815_s24 = smov 16   ;;  %s2816_s3 = smov 24   ;;  %vm1753_vm7 = vcmask 254144  }
 0x190   : > { %v846_v25 = vpop.xlane.xlu0 %845 }
 0x191   : > { %v855_v27 = vmul.f32 0.03125, %v846_v25 }
 0x193   : > { %v858_v29 = vsub.f32 %v3030_v19, %v855_v27 }
 0x194   : > { %v853_v26 = vpop.xlane.xlu1 %852  ;;  %v849_v31 = vpop.xlane.xlu0 %848 }
 0x195   : > { %v857_v28 = vmul.f32 0.03125, %v853_v26  ;;  %v856_v32 = vmul.f32 0.03125, %v849_v31  ;;  %v861_v33 = vmul.f32 %v858_v29, %v858_v29 }
 0x197   : > { %v860_v30 = vsub.f32 %v3032_v20, %v857_v28  ;;  %v859_v35 = vsub.f32 %v3034_v21, %v856_v32  ;;  %v864_v36 = vsel %vm843_vm4, %v861_v33, 0.0 }
 0x198   : > { %865 = vadd.xlane.f32.xlu1 %v864_v36 }
 0x199   : > { %v863_v34 = vmul.f32 %v860_v30, %v860_v30  ;;  %v862_v38 = vmul.f32 %v859_v35, %v859_v35 }
 0x19b   : > { %v870_v37 = vsel %vm850_vm5, %v863_v34, 0.0  ;;  %v867_v39 = vsel %vm843_vm4, %v862_v38, 0.0 }
 0x19c   : > { %871 = vadd.xlane.f32.xlu1 %v870_v37  ;;  %868 = vadd.xlane.f32.xlu0 %v867_v39 }
 0x221   : > { %v866_v42 = vpop.xlane.xlu1 %865 }
 0x222   : > { %v873_v43 = vmul.f32 0.03125, %v866_v42 }
 0x224   : > { %v876_v44 = vadd.f32 1e-06, %v873_v43 }
 0x225   : > { %v872_v45 = vpop.xlane.xlu1 %871  ;;  %v869_v46 = vpop.xlane.xlu0 %868 }
 0x226   : > { %2694 = vrsqrt.f32 %v876_v44  ;;  %v875_v47 = vmul.f32 0.03125, %v872_v45  ;;  %v874_v48 = vmul.f32 0.03125, %v869_v46 }
 0x228   : > { %v878_v49 = vadd.f32 1e-06, %v875_v47  ;;  %v877_v50 = vadd.f32 1e-06, %v874_v48 }
 0x22a   : > { %2696 = vrsqrt.f32 %v878_v49 }
 0x22b   : > { %2698 = vrsqrt.f32 %v877_v50 }
 0x233   : > { %v2695_v51 = vpop.eup %2694 }
 0x234   : > { %v882_v52 = vmul.f32 %v2695_v51, %v858_v29 }
 0x236   : > { %v891_v58 = vmul.f32 %v2366_v53, %v882_v52 }
 0x237   : > { %v2697_v54 = vpop.eup %2696 }
 0x238   : > { %v2699_v55 = vpop.eup %2698  ;;  %v884_v56 = vmul.f32 %v2697_v54, %v860_v30  ;;  %v900_v63 = vadd.f32 %v2367_v59, %v891_v58 }
 0x239   : > { %v883_v57 = vmul.f32 %v2699_v55, %v859_v35 }
 0x23a   : > { %v893_v60 = vmul.f32 %v2366_v53, %v884_v56 }
 0x23b   : > { %v892_v61 = vmul.f32 %v2366_v53, %v883_v57 }
 0x23c   : > { %v902_v62 = vadd.f32 %v2367_v59, %v893_v60 }
 0x23d   : > { %v901_v0 = vadd.f32 %v2367_v59, %v892_v61 }
 0x23e   : > { %v904_v1 = vpack.c.bf16 %v902_v62, %v902_v62 }
 0x23f   : > { %v903_v2 = vpack.c.bf16 %v901_v0, %v900_v63 }
 0x241   : > { %2515 = vmatprep.mubr.msk.bf16.mxu0 %vm843_vm4, %v903_v2 }
 0x242   : > { %2516 = vmatmul.mubr.msk.bf16.vlgmr.msra.gmra.mxu0 %vm843_vm4, %v904_v1 }
 0x302   : > { %v2517_v4 = vpop.f32.mrf.mxu0 }
 0x303   : > { %v977_v5 = vadd.f32 %v2517_v4, %v2368_v3 }
 0x304   : > { %v968_v6 = vpop.f32.mrf.mxu0 }
 0x305   : > { %v3067_v7 = vpack.c.bf16 %v977_v5, %v977_v5  ;;  %v969_v9 = vadd.f32 %v2368_v3, %v968_v6  ;;  %v984_v26 = vmul.f32 0.35355338, %v977_v5 }
 0x306   : > { %v2518_v8 = vpop.f32.mrf.mxu0 }
 0x307   : > { %993 = vrot.lane.b32.xlu0 %v3067_v7, %s2802_s2  ;;  %v982_v12 = vmul.f32 0.35355338, %v969_v9  ;;  %v3086_v28 = vpack.c.bf16 %v984_v26, %v984_v26 }
 0x308   : > { %v971_v10 = vpop.f32.mrf.mxu0 }
 0x309   : > { %v972_v11 = vadd.f32 %v2368_v3, %v971_v10 }
 0x30b   : > { %v983_v13 = vmul.f32 0.35355338, %v972_v11  ;;  %v3070_v14 = vpack.c.bf16 %v972_v11, %v969_v9 }
 0x30d   : > { %v3072_v15 = vpack.c.bf16 %v983_v13, %v982_v12  ;;  %991 = vrot.lane.b32.xlu1 %v3070_v14, %s2802_s2  ;;  %s3360_s2 = scalar_lea.vmem %s3316_s9, %s2936_s28 }
 0x30f   : > { %2523 = vmatprep.mubr.msk.bf16.mxu1 %vm995_vm6, %v3072_v15 }
 0x311   : > { %1089 = vrot.lane.b32.xlu1 %v3067_v7, %s2803_s16 }
 0x379   : > { %v994_v16 = vpop.permute.xlu0 %993 }
 0x37a   : > { %2611 = vmatprep.subr.msk.bf16.mxu1 %vm995_vm6, %v994_v16  ;;  %v1006_v17 = vsel %vm995_vm6, %v994_v16, 0 }
 0x37b   : > { %2520 = vmatpush3.bf16.xpose.msra.mxu1 %v1006_v17 }
 0x37f   : > { %v992_v18 = vpop.permute.xlu1 %991 }
 0x380   : > { %2612 = vmatprep.subr.msk.bf16.mxu1 %vm995_vm6, %v992_v18  ;;  %v1003_v24 = vsel %vm995_vm6, %v992_v18, 0 }
 0x383   : > { %2522 = vmatpush3.bf16.xpose.msra.mxu1 %v1003_v24  ;;  %v1090_v25 = vpop.permute.xlu1 %1089 }
 0x384   : > { %v1102_v27 = vand.u32 %v3082_v23, %v1090_v25 }
 0x386   : > { %2527 = vmatprep.subr.bf16.mxu0 %v1102_v27 }
 0x387   : > { %2528 = vmatpush3.bf16.msra.mxu0 %v1102_v27 }
 0x38a   : > { %2524 = vmatmul.mubr.msk.bf16.vlgmr.msra.gmra.mxu1 %vm995_vm6, %v3086_v28 }
 0x44a   : > { %v2525_v29 = vpop.f32.mrf.mxu1 }
 0x44b   : > { %v1064_v30 = vsel %vm1063_vm8, %v2525_v29, -inf }
 0x44c   : > { %1065 = vmax.xlane.f32.xlu0 %v1064_v30  ;;  %v1042_v31 = vpop.f32.mrf.mxu1 }
 0x44d   : > { %v1057_v32 = vsel %vm1056_vm9, %v1042_v31, -inf }
 0x44e   : > { %1058 = vmax.xlane.f32.xlu1 %v1057_v32  ;;  %v2526_v33 = vpop.f32.mrf.mxu1 }
 0x450   : > { %v1045_v34 = vpop.f32.mrf.mxu1 }
 0x451   : > { %v1060_v35 = vsel %vm1056_vm9, %v1045_v34, -inf }
 0x452   : > { %1061 = vmax.xlane.f32.xlu0 %v1060_v35 }
 0x45f   : > { %1188 = vrot.lane.b32.xlu1 %v3067_v7, %s2805_s19 }
 0x463   : > { %1186 = vrot.lane.b32.xlu1 %v3070_v14, %s2805_s19  ;;  %s3361_s19 = scalar_lea.vmem %s3317_s10, %s2936_s28 }
 0x467   : > { %1182 = vrot.lane.b32.xlu1 %v3072_v15, %s2806_s29 }
 0x468   : > { %1087 = vrot.lane.b32.xlu0 %v3070_v14, %s2803_s16 }
 0x46c   : > { %1184 = vrot.lane.b32.xlu0 %v3086_v28, %s2806_s29 }
 0x4d5   : > { %v1066_v36 = vpop.xlane.xlu0 %1065 }
 0x4d6   : > { %v1069_v37 = vsub.f32 %v2525_v29, %v1066_v36 }
 0x4d7   : > { %v1059_v38 = vpop.xlane.xlu1 %1058 }
 0x4d8   : > { %v1067_v39 = vsub.f32 %v1042_v31, %v1059_v38  ;;  %v1074_v40 = vmul.f32 1.442695, %v1069_v37 }
 0x4da   : > { %v1070_v41 = vmul.f32 1.442695, %v1067_v39  ;;  %2700 = vpow2.f32 %v1074_v40 }
 0x4db   : > { %v1062_v42 = vpop.xlane.xlu0 %1061  ;;  %v1189_v46 = vpop.permute.xlu1 %1188 }
 0x4dc   : > { %v1068_v43 = vsub.f32 %v1045_v34, %v1062_v42  ;;  %2702 = vpow2.f32 %v1070_v41  ;;  %v1200_v53 = vsel %vm995_vm6, %v1189_v46, 0 }
 0x4de   : > { %v1072_v44 = vmul.f32 1.442695, %v1068_v43 }
 0x4df   : > { %v1088_v45 = vpop.permute.xlu0 %1087  ;;  %v1187_v48 = vpop.permute.xlu1 %1186 }
 0x4e0   : > { %2704 = vpow2.f32 %v1072_v44  ;;  %2529 = vmatprep.subr.bf16.mxu0 %v1088_v45  ;;  %v1197_v55 = vsel %vm995_vm6, %v1187_v48, 0 }
 0x4e1   : > { %2530 = vmatpush3.bf16.msra.mxu0 %v1088_v45 }
 0x4e2   : > { %2613 = vmatprep.subr.msk.bf16.mxu0 %vm995_vm6, %v1189_v46 }
 0x4e3   : > { %v1183_v54 = vpop.permute.xlu1 %1182  ;;  %v1185_v56 = vpop.permute.xlu0 %1184 }
 0x4e7   : > { %v3100_v47 = vpop.eup %2700 }
 0x4e8   : > { %v1086_v52 = vpack.c.bf16 %v3100_v47, %v3100_v47 }
 0x4e9   : > { %v3102_v49 = vpop.eup %2702 }
 0x4ed   : > { %v3104_v50 = vpop.eup %2704 }
 0x4ee   : > { %v1085_v51 = vpack.c.bf16 %v3104_v50, %v3102_v49 }
 0x4f0   : > { %2531 = vmatprep.mubr.msk.bf16.mxu0 %vm1056_vm9, %v1085_v51 }
 0x4f1   : > { %2532 = vmatmul.mubr.msk.bf16.vlgmr.msra.gmra.mxu0 %vm1056_vm9, %v1086_v52 }
 0x4f2   : > { %2536 = vmatpush3.bf16.xpose.msra.mxu0 %v1200_v53  ;;  %2539 = vmatprep.mubr.msk.bf16.mxu0 %vm995_vm6, %v1183_v54 }
 0x4f3   : > { %2614 = vmatprep.subr.msk.bf16.mxu0 %vm995_vm6, %v1187_v48 }
 0x4fa   : > { %2538 = vmatpush3.bf16.xpose.msra.mxu0 %v1197_v55 }
 0x501   : > { %2540 = vmatmul.mubr.msk.bf16.vlgmr.msra.gmra.mxu0 %vm995_vm6, %v1185_v56 }
 0x5b1   : > { %v3117_v57 = vpop.f32.mrf.mxu0 }
 0x5b3   : > { %v3119_v58 = vpop.f32.mrf.mxu0 }
 0x5b5   : > { %v2534_v59 = vpop.f32.mrf.mxu0 }
 0x5b7   : > { %v3121_v60 = vpop.f32.mrf.mxu0 }
 0x5c1   : > { %v2541_v61 = vpop.f32.mrf.mxu0 }
 0x5c2   : > { %v1256_v62 = vsel %vm1063_vm8, %v2541_v61, -inf }
 0x5c3   : > { %1257 = vmax.xlane.f32.xlu0 %v1256_v62  ;;  %v1236_v63 = vpop.f32.mrf.mxu0 }
 0x5c4   : > { %v1250_v0 = vsel %vm1056_vm9, %v1236_v63, -inf }
 0x5c5   : > { %1251 = vmax.xlane.f32.xlu1 %v1250_v0  ;;  %v2542_v1 = vpop.f32.mrf.mxu0 }
 0x5c7   : > { %v1239_v2 = vpop.f32.mrf.mxu0 }
 0x5c8   : > { %v1253_v3 = vsel %vm1056_vm9, %v1239_v2, -inf }
 0x5c9   : > { %1254 = vmax.xlane.f32.xlu0 %v1253_v3 }
 0x5d6   : > { %1279 = vrot.lane.b32.xlu1 %v3070_v14, %s2807_s17 }
 0x5da   : > { %1380 = vrot.lane.b32.xlu1 %v3067_v7, %s2808_s21 }
 0x5de   : > { %1378 = vrot.lane.b32.xlu1 %v3070_v14, %s2808_s21  ;;  %s3362_s21 = scalar_lea.vmem %s3318_s11, %s2936_s28 }
 0x5df   : > { %1281 = vrot.lane.b32.xlu0 %v3067_v7, %s2807_s17 }
 0x5e2   : > { %1376 = vrot.lane.b32.xlu1 %v3086_v28, %s2809_s8 }
 0x5e3   : > { %1374 = vrot.lane.b32.xlu0 %v3072_v15, %s2809_s8 }
 0x5e6   : > { %1471 = vrot.lane.b32.xlu1 %v3070_v14, %s2810_s20 }
 0x64c   : > { %v1258_v4 = vpop.xlane.xlu0 %1257 }
 0x64d   : > { %v1261_v5 = vsub.f32 %v2541_v61, %v1258_v4 }
 0x64e   : > { %v1252_v6 = vpop.xlane.xlu1 %1251 }
 0x64f   : > { %v1259_v8 = vsub.f32 %v1236_v63, %v1252_v6  ;;  %v1266_v9 = vmul.f32 1.442695, %v1261_v5 }
 0x651   : > { %v1262_v10 = vmul.f32 1.442695, %v1259_v8  ;;  %2706 = vpow2.f32 %v1266_v9 }
 0x652   : > { %v1255_v11 = vpop.xlane.xlu0 %1254  ;;  %v1280_v18 = vpop.permute.xlu1 %1279 }
 0x653   : > { %v1260_v12 = vsub.f32 %v1239_v2, %v1255_v11  ;;  %2708 = vpow2.f32 %v1262_v10 }
 0x655   : > { %v1264_v13 = vmul.f32 1.442695, %v1260_v12 }
 0x656   : > { %v1282_v16 = vpop.permute.xlu0 %1281  ;;  %v1381_v22 = vpop.permute.xlu1 %1380 }
 0x657   : > { %2710 = vpow2.f32 %v1264_v13  ;;  %v1291_v17 = vand.u32 %v1282_v16, %v3082_v23  ;;  %v1392_v30 = vsel %vm995_vm6, %v1381_v22, 0 }
 0x659   : > { %2543 = vmatprep.subr.bf16.mxu1 %v1291_v17 }
 0x65a   : > { %2544 = vmatpush3.bf16.msra.mxu1 %v1291_v17  ;;  %v1375_v31 = vpop.permute.xlu0 %1374  ;;  %v1379_v32 = vpop.permute.xlu1 %1378 }
 0x65b   : > { %2545 = vmatprep.subr.bf16.mxu1 %v1280_v18  ;;  %v1389_v33 = vsel %vm995_vm6, %v1379_v32, 0 }
 0x65e   : > { %2546 = vmatpush3.bf16.msra.mxu1 %v1280_v18  ;;  %v3136_v24 = vpop.eup %2706  ;;  %v1377_v34 = vpop.permute.xlu1 %1376 }
 0x65f   : > { %2615 = vmatprep.subr.msk.bf16.mxu1 %vm995_vm6, %v1381_v22  ;;  %v1278_v29 = vpack.c.bf16 %v3136_v24, %v3136_v24 }
 0x660   : > { %v3138_v25 = vpop.eup %2708 }
 0x662   : > { %v1472_v51 = vpop.permute.xlu1 %1471 }
 0x664   : > { %v3140_v26 = vpop.eup %2710 }
 0x665   : > { %v1277_v27 = vpack.c.bf16 %v3140_v26, %v3138_v25 }
 0x667   : > { %2547 = vmatprep.mubr.msk.bf16.mxu1 %vm1056_vm9, %v1277_v27 }
 0x668   : > { %2548 = vmatmul.mubr.msk.bf16.vlgmr.msra.gmra.mxu1 %vm1056_vm9, %v1278_v29 }
 0x669   : > { %2552 = vmatpush3.bf16.xpose.msra.mxu1 %v1392_v30  ;;  %2555 = vmatprep.mubr.msk.bf16.mxu1 %vm995_vm6, %v1375_v31  ;;  %v1274_v31 = vsel %vm1063_vm8, %v3136_v24, 0.0 }
 0x66a   : > { %2616 = vmatprep.subr.msk.bf16.mxu1 %vm995_vm6, %v1379_v32  ;;  %v1271_v32 = vsel %vm1056_vm9, %v3140_v26, 0.0 }
 0x671   : > { %2554 = vmatpush3.bf16.xpose.msra.mxu1 %v1389_v33 }
 0x678   : > { %2556 = vmatmul.mubr.msk.bf16.vlgmr.msra.gmra.mxu1 %vm995_vm6, %v1377_v34 }
 0x728   : > { %v3153_v35 = vpop.f32.mrf.mxu1 }
 0x72a   : > { %v3155_v36 = vpop.f32.mrf.mxu1 }
 0x72c   : > { %v2550_v37 = vpop.f32.mrf.mxu1 }
 0x72d   : > { %v1268_v37 = vsel %vm1056_vm9, %v3138_v25, 0.0 }
 0x72e   : > { %v3157_v38 = vpop.f32.mrf.mxu1 }
 0x738   : > { %v2557_v39 = vpop.f32.mrf.mxu1 }
 0x739   : > { %v1448_v40 = vsel %vm1063_vm8, %v2557_v39, -inf }
 0x73a   : > { %1449 = vmax.xlane.f32.xlu0 %v1448_v40  ;;  %v1428_v41 = vpop.f32.mrf.mxu1 }
 0x73b   : > { %v1442_v43 = vsel %vm1056_vm9, %v1428_v41, -inf }
 0x73c   : > { %v2558_v42 = vpop.f32.mrf.mxu1 }
 0x73e   : > { %1443 = vmax.xlane.f32.xlu0 %v1442_v43  ;;  %v1431_v44 = vpop.f32.mrf.mxu1 }
 0x73f   : > { %v1445_v45 = vsel %vm1056_vm9, %v1431_v44, -inf }
 0x740   : > { %1446 = vmax.xlane.f32.xlu1 %v1445_v45 }
 0x751   : > { %1572 = vrot.lane.b32.xlu1 %v3067_v7, %s2811_s6 }
 0x754   : > { %1473 = vrot.lane.b32.xlu0 %v3067_v7, %s2810_s20 }
 0x755   : > { %1566 = vrot.lane.b32.xlu1 %v3072_v15, %s2812_s30 }
 0x758   : > { %1570 = vrot.lane.b32.xlu0 %v3070_v14, %s2811_s6  ;;  %s3363_s6 = scalar_lea.vmem %s3320_s13, %s2936_s28 }
 0x75c   : > { %1568 = vrot.lane.b32.xlu0 %v3086_v28, %s2812_s30 }
 0x7c3   : > { %v1450_v46 = vpop.xlane.xlu0 %1449 }
 0x7c4   : > { %v1453_v48 = vsub.f32 %v2557_v39, %v1450_v46 }
 0x7c6   : > { %v1458_v53 = vmul.f32 1.442695, %v1453_v48 }
 0x7c7   : > { %v1444_v52 = vpop.xlane.xlu0 %1443 }
 0x7c8   : > { %v1451_v54 = vsub.f32 %v1428_v41, %v1444_v52  ;;  %2712 = vpow2.f32 %v1458_v53 }
 0x7c9   : > { %v1447_v55 = vpop.xlane.xlu1 %1446 }
 0x7ca   : > { %v1454_v56 = vmul.f32 1.442695, %v1451_v54  ;;  %v1452_v59 = vsub.f32 %v1431_v44, %v1447_v55 }
 0x7cb   : > { %v1474_v61 = vpop.permute.xlu0 %1473 }
 0x7cc   : > { %v1456_v62 = vmul.f32 1.442695, %v1452_v59  ;;  %v1483_v63 = vand.u32 %v1474_v61, %v3082_v23  ;;  %2714 = vpow2.f32 %v1454_v56  ;;  %v1082_v61 = vsel %vm1063_vm8, %v3100_v47, 0.0 }
 0x7cd   : > { %v1573_v15 = vpop.permute.xlu1 %1572 }
 0x7ce   : > { %2716 = vpow2.f32 %v1456_v62  ;;  %2559 = vmatprep.subr.bf16.mxu0 %v1483_v63  ;;  %v1584_v4 = vsel %vm995_vm6, %v1573_v15, 0  ;;  %v1079_v62 = vsel %vm1056_vm9, %v3104_v50, 0.0 }
 0x7cf   : > { %2560 = vmatpush3.bf16.msra.mxu0 %v1483_v63  ;;  %v1571_v6 = vpop.permute.xlu0 %1570 }
 0x7d0   : > { %2561 = vmatprep.subr.bf16.mxu0 %v1472_v51  ;;  %v1581_v8 = vsel %vm995_vm6, %v1571_v6, 0 }
 0x7d1   : > { %v1567_v5 = vpop.permute.xlu1 %1566 }
 0x7d3   : > { %2562 = vmatpush3.bf16.msra.mxu0 %v1472_v51  ;;  %v1569_v9 = vpop.permute.xlu0 %1568 }
 0x7d4   : > { %2617 = vmatprep.subr.msk.bf16.mxu0 %vm995_vm6, %v1573_v15 }
 0x7d5   : > { %v2713_v28 = vpop.eup %2712 }
 0x7d6   : > { %v1470_v3 = vpack.c.bf16 %v2713_v28, %v2713_v28  ;;  %v1466_v33 = vsel %vm1063_vm8, %v2713_v28, 0.0 }
 0x7d9   : > { %v2715_v0 = vpop.eup %2714 }
 0x7db   : > { %v2717_v1 = vpop.eup %2716 }
 0x7dc   : > { %v1469_v2 = vpack.c.bf16 %v2717_v1, %v2715_v0  ;;  %v1463_v34 = vsel %vm1056_vm9, %v2717_v1, 0.0 }
 0x7de   : > { %2563 = vmatprep.mubr.msk.bf16.mxu0 %vm1056_vm9, %v1469_v2 }
 0x7df   : > { %2564 = vmatmul.mubr.msk.bf16.vlgmr.msra.gmra.mxu0 %vm1056_vm9, %v1470_v3 }
 0x7e0   : > { %2568 = vmatpush3.bf16.xpose.msra.mxu0 %v1584_v4  ;;  %2571 = vmatprep.mubr.msk.bf16.mxu0 %vm995_vm6, %v1567_v5 }
 0x7e1   : > { %2618 = vmatprep.subr.msk.bf16.mxu0 %vm995_vm6, %v1571_v6 }
 0x7e8   : > { %2570 = vmatpush3.bf16.xpose.msra.mxu0 %v1581_v8 }
 0x7ef   : > { %2572 = vmatmul.mubr.msk.bf16.vlgmr.msra.gmra.mxu0 %vm995_vm6, %v1569_v9  ;;  %vm1750_vm6 = vcmask 257216  }
 0x89f   : > { %v3177_v10 = vpop.f32.mrf.mxu0 }
 0x8a1   : > { %v3179_v11 = vpop.f32.mrf.mxu0 }
 0x8a3   : > { %v2566_v12 = vpop.f32.mrf.mxu0 }
 0x8a5   : > { %v3181_v13 = vpop.f32.mrf.mxu0 }
 0x8af   : > { %v2573_v16 = vpop.f32.mrf.mxu0 }
 0x8b0   : > { %v1640_v17 = vsel %vm1063_vm8, %v2573_v16, -inf }
 0x8b1   : > { %1641 = vmax.xlane.f32.xlu0 %v1640_v17  ;;  %v1620_v18 = vpop.f32.mrf.mxu0 }
 0x8b2   : > { %v1634_v22 = vsel %vm1056_vm9, %v1620_v18, -inf }
 0x8b3   : > { %1635 = vmax.xlane.f32.xlu1 %v1634_v22  ;;  %v2574_v27 = vpop.f32.mrf.mxu0 }
 0x8b5   : > { %v1623_v29 = vpop.f32.mrf.mxu0 }
 0x8b6   : > { %v1637_v30 = vsel %vm1056_vm9, %v1623_v29, -inf }
 0x8b7   : > { %1638 = vmax.xlane.f32.xlu0 %v1637_v30 }
 0x8c4   : > { %1663 = vrot.lane.b32.xlu1 %v3070_v14, %s2813_s0 }
 0x8cd   : > { %1665 = vrot.lane.b32.xlu0 %v3067_v7, %s2813_s0  ;;  %v1460_v7 = vsel %vm1056_vm9, %v2715_v0, 0.0 }
 0x8e8   : > { %1275 = vadd.xlane.f32.xlu1 %v1274_v31 }
 0x8ec   : > { %1272 = vadd.xlane.f32.xlu1 %v1271_v32  ;;  %1467 = vadd.xlane.f32.xlu0 %v1466_v33 }
 0x8f0   : > { %1464 = vadd.xlane.f32.xlu1 %v1463_v34  ;;  %1269 = vadd.xlane.f32.xlu0 %v1268_v37 }
 0x8f4   : > { %1461 = vadd.xlane.f32.xlu0 %v1460_v7 }
 0x93a   : > { %v1642_v14 = vpop.xlane.xlu0 %1641 }
 0x93b   : > { %v1645_v24 = vsub.f32 %v2573_v16, %v1642_v14 }
 0x93c   : > { %v1636_v39 = vpop.xlane.xlu1 %1635 }
 0x93d   : > { %v1643_v40 = vsub.f32 %v1620_v18, %v1636_v39  ;;  %v1650_v41 = vmul.f32 1.442695, %v1645_v24 }
 0x93f   : > { %v1646_v26 = vmul.f32 1.442695, %v1643_v40 }
 0x940   : > { %v1639_v42 = vpop.xlane.xlu0 %1638  ;;  %v1664_v46 = vpop.permute.xlu1 %1663 }
 0x941   : > { %2718 = vpow2.f32 %v1646_v26  ;;  %v1644_v43 = vsub.f32 %v1623_v29, %v1639_v42 }
 0x942   : > { %2720 = vpow2.f32 %v1650_v41 }
 0x943   : > { %v1648_v44 = vmul.f32 1.442695, %v1644_v43 }
 0x944   : > { %v1666_v45 = vpop.permute.xlu0 %1665 }
 0x945   : > { %2722 = vpow2.f32 %v1648_v44  ;;  %v1675_v25 = vand.u32 %v1666_v45, %v3082_v23  ;;  %v1076_v23 = vsel %vm1056_vm9, %v3102_v49, 0.0 }
 0x947   : > { %2575 = vmatprep.subr.bf16.mxu1 %v1675_v25 }
 0x948   : > { %2576 = vmatpush3.bf16.msra.mxu1 %v1675_v25 }
 0x949   : > { %2577 = vmatprep.subr.bf16.mxu1 %v1664_v46 }
 0x94c   : > { %2578 = vmatpush3.bf16.msra.mxu1 %v1664_v46 }
 0x94e   : > { %v2719_v48 = vpop.eup %2718 }
 0x94f   : > { %v1652_v51 = vsel %vm1056_vm9, %v2719_v48, 0.0  ;;  %v2721_v52 = vpop.eup %2720 }
 0x950   : > { %1653 = vadd.xlane.f32.xlu0 %v1652_v51  ;;  %v1658_v54 = vsel %vm1063_vm8, %v2721_v52, 0.0  ;;  %v1662_v59 = vpack.c.bf16 %v2721_v52, %v2721_v52  ;;  %v2684_v51 = vld [vmem:[%s2964_s18 + $0x8] sm:$0xff]   ;;  %v2685_v52 = vld [vmem:[%s2964_s18] sm:$0xff]   ;;  %vm1754_vm8 = vmand %vm1753_vm7, %vm1175_vm11 }
 0x951   : > { %2583 = vmatprep.subr.bf16.mxu1 %v2684_v51 }
 0x952   : > { %v2723_v53 = vpop.eup %2722 }
 0x953   : > { %v1655_v55 = vsel %vm1056_vm9, %v2723_v53, 0.0  ;;  %v1661_v56 = vpack.c.bf16 %v2723_v53, %v2719_v48 }
 0x954   : > { %1659 = vadd.xlane.f32.xlu0 %v1658_v54  ;;  %1656 = vadd.xlane.f32.xlu1 %v1655_v55 }
 0x955   : > { %2579 = vmatprep.mubr.msk.bf16.mxu1 %vm1056_vm9, %v1661_v56 }
 0x956   : > { %2580 = vmatmul.mubr.msk.bf16.vlgmr.msra.gmra.mxu1 %vm1056_vm9, %v1662_v59  ;;  %vm2055_vm9 = vcmask 523264  }
 0x957   : > { %2584 = vmatpush3.bf16.msra.mxu1 %v2684_v51  ;;  %v2408_v51 = vld [vmem:[%s3361_s19] ss:$0 sm:$0xff] }
 0x958   : > { %1077 = vadd.xlane.f32.xlu0 %v1076_v23  ;;  %1083 = vadd.xlane.f32.xlu1 %v1082_v61 }
 0x959   : > { %2585 = vmatprep.subr.bf16.mxu1 %v2685_v52 }
 0x95b   : > { %2586 = vmatpush3.bf16.msra.mxu1 %v2685_v52 }
 0x95c   : > { %1080 = vadd.xlane.f32.xlu1 %v1079_v62 }
 0x971   : > { %v1276_v63 = vpop.xlane.xlu1 %1275 }
 0x972   : > { %2724 = vrcp.f32 %v1276_v63 }
 0x975   : > { %v1468_v15 = vpop.xlane.xlu0 %1467  ;;  %v1273_v28 = vpop.xlane.xlu1 %1272 }
 0x976   : > { %2726 = vrcp.f32 %v1468_v15 }
 0x977   : > { %2728 = vrcp.f32 %v1273_v28 }
 0x979   : > { %v1270_v0 = vpop.xlane.xlu0 %1269  ;;  %v1465_v1 = vpop.xlane.xlu1 %1464 }
 0x97a   : > { %2730 = vrcp.f32 %v1270_v0 }
 0x97d   : > { %v1462_v2 = vpop.xlane.xlu0 %1461 }
 0x97e   : > { %2732 = vrcp.f32 %v1462_v2 }
 0x97f   : > { %v2725_v49 = vpop.eup %2724  ;;  %2734 = vrcp.f32 %v1465_v1 }
 0x980   : > { %v1346_v47 = vmul.f32 %v2725_v49, %v3153_v35 }
 0x982   : > { %v2437_v3 = vpack.c.bf16 %v1346_v47, %v1346_v47 }
 0x983   : > { %v2727_v4 = vpop.eup %2726 }
 0x984   : > { %1361 = vrot.lane.b32.xlu0 %v2437_v3, %s2814_s25  ;;  %v1538_v50 = vmul.f32 %v2727_v4, %v3177_v10  ;;  %v2729_v5 = vpop.eup %2728 }
 0x985   : > { %v1345_v17 = vmul.f32 %v2729_v5, %v3157_v38 }
 0x986   : > { %v2440_v6 = vpack.c.bf16 %v1538_v50, %v1538_v50 }
 0x987   : > { %v2731_v8 = vpop.eup %2730  ;;  %v2436_v27 = vpack.c.bf16 %v1345_v17, %v1345_v17 }
 0x988   : > { %1553 = vrot.lane.b32.xlu1 %v2440_v6, %s2815_s24  ;;  %v1344_v9 = vmul.f32 %v2731_v8, %v3155_v36  ;;  %v2401_v8 = vld [vmem:[%s3360_s2] ss:$0 sm:$0xff] }
 0x98a   : > { %v2435_v16 = vpack.c.bf16 %v1344_v9, %v1344_v9 }
 0x98b   : > { %v2733_v12 = vpop.eup %2732 }
 0x98c   : > { %v2735_v18 = vpop.eup %2734  ;;  %v1536_v35 = vmul.f32 %v2733_v12, %v3179_v11  ;;  %1357 = vrot.lane.b32.xlu1 %v2435_v16, %s2814_s25 }
 0x98d   : > { %v1537_v29 = vmul.f32 %v2735_v18, %v3181_v13  ;;  %v1177_v13 = vld [vmem:[#allocation3 + $0x8] sm:$0x1] }
 0x98e   : > { %v2438_v22 = vpack.c.bf16 %v1536_v35, %v1536_v35 }
 0x98f   : > { %v2439_v10 = vpack.c.bf16 %v1537_v29, %v1537_v29 }
 0x990   : > { %1549 = vrot.lane.b32.xlu0 %v2438_v22, %s2815_s24  ;;  %1359 = vrot.lane.b32.xlu1 %v2436_v27, %s2814_s25 }
 0x994   : > { %1551 = vrot.lane.b32.xlu1 %v2439_v10, %s2815_s24 }
 0x9d9   : > { %v1654_v30 = vpop.xlane.xlu0 %1653 }
 0x9dd   : > { %v1657_v31 = vpop.xlane.xlu1 %1656  ;;  %v1660_v32 = vpop.xlane.xlu0 %1659 }
 0x9e1   : > { %v1084_v36 = vpop.xlane.xlu1 %1083  ;;  %v1078_v33 = vpop.xlane.xlu0 %1077 }
 0x9e2   : > { %2736 = vrcp.f32 %v1084_v36 }
 0x9e3   : > { %2738 = vrcp.f32 %v1078_v33 }
 0x9e5   : > { %v1081_v38 = vpop.xlane.xlu1 %1080 }
 0x9e6   : > { %2740 = vrcp.f32 %v1081_v38 }
 0x9e7   : > { %2742 = vrcp.f32 %v1654_v30 }
 0x9e8   : > { %2744 = vrcp.f32 %v1660_v32 }
 0x9e9   : > { %2746 = vrcp.f32 %v1657_v31 }
 0x9ef   : > { %v2737_v11 = vpop.eup %2736 }
 0x9f0   : > { %v2739_v34 = vpop.eup %2738  ;;  %v1157_v37 = vmul.f32 %v2737_v11, %v3117_v57 }
 0x9f1   : > { %v1155_v7 = vmul.f32 %v2739_v34, %v3119_v58 }
 0x9f2   : > { %v2434_v14 = vpack.c.bf16 %v1157_v37, %v1157_v37 }
 0x9f3   : > { %v2741_v24 = vpop.eup %2740  ;;  %v2432_v39 = vpack.c.bf16 %v1155_v7, %v1155_v7 }
 0x9f4   : > { %v1178_v40 = vsel %vm1176_vm12, %v2434_v14, %v1177_v13  ;;  %v1156_v41 = vmul.f32 %v2741_v24, %v3121_v60  ;;  %v2743_v54 = vpop.eup %2742  ;;  %vm2129_vm12 = vcmask 257024  }
 0x9f5   : > { %1179 = vst [vmem:[#allocation3 + $0x8] sm:$0x1] %v1178_v40  ;;  %1172 = vst.msk [vmem:[#allocation3] sm:$0xf] %vm1171_vm13, %v2432_v39  ;;  %v2745_v59 = vpop.eup %2744  ;;  %v2688_v40 = vld [vmem:[%s2981_s22 + $0x8] sm:$0xff]  }
 0x9f6   : > { %v2433_v26 = vpack.c.bf16 %v1156_v41, %v1156_v41  ;;  %v1362_v43 = vpop.permute.xlu0 %1361  ;;  %v2747_v63 = vpop.eup %2746  ;;  %v2689_v41 = vld [vmem:[%s2981_s22] sm:$0xff]   ;;  %2591 = vmatprep.subr.bf16.mxu0 %v2688_v40 }
 0x9f7   : > { %2592 = vmatpush3.bf16.msra.mxu0 %v2688_v40 }
 0x9f8   : > { %1173 = vst.msk [vmem:[#allocation3 + $0x4] sm:$0xf] %vm1171_vm13, %v2433_v26  ;;  %2593 = vmatprep.subr.bf16.mxu0 %v2689_v41 }
 0x9fa   : > { %v1554_v57 = vpop.permute.xlu1 %1553 }
 0x9fb   : > { %2594 = vmatpush3.bf16.msra.mxu0 %v2689_v41 }
 0x9fc   : > { %v1371_v42 = vld [vmem:[#allocation3 + $0x8] sm:$0x1] }
 0x9fd   : > { %v1372_v44 = vsel %vm1370_vm15, %v1362_v43, %v1371_v42 }
 0x9fe   : > { %1373 = vst [vmem:[#allocation3 + $0x8] sm:$0x1] %v1372_v44  ;;  %v1358_v58 = vpop.permute.xlu1 %1357 }
 0x9ff   : > { %1367 = vst.msk [vmem:[#allocation3] sm:$0xf] %vm1366_vm0, %v1358_v58 }
 0xa02   : > { %v1550_v60 = vpop.permute.xlu0 %1549  ;;  %v1360_v45 = vpop.permute.xlu1 %1359 }
 0xa03   : > { %1559 = vst.msk [vmem:[#allocation3] sm:$0xf] %vm1558_vm2, %v1550_v60 }
 0xa04   : > { %1368 = vst.msk [vmem:[#allocation3 + $0x4] sm:$0xf] %vm1366_vm0, %v1360_v45 }
 0xa05   : > { %v1563_v25 = vld [vmem:[#allocation3 + $0x8] sm:$0x1] }
 0xa06   : > { %v1564_v46 = vsel %vm1562_vm3, %v1554_v57, %v1563_v25  ;;  %v1552_v48 = vpop.permute.xlu1 %1551 }
 0xa07   : > { %1565 = vst [vmem:[#allocation3 + $0x8] sm:$0x1] %v1564_v46  ;;  %1560 = vst.msk [vmem:[#allocation3 + $0x4] sm:$0xf] %vm1558_vm2, %v1552_v48 }
 0xa0e   : > { %v1755_v47 = vld [vmem:[#allocation3 + $0x8] sm:$0x1] }
 0xa16   : > { %v2581_v53 = vpop.f32.mrf.mxu1 }
 0xa17   : > { %v1730_v61 = vmul.f32 %v2745_v59, %v2581_v53 }
 0xa18   : > { %v1711_v55 = vpop.f32.mrf.mxu1 }
 0xa19   : > { %v1728_v56 = vmul.f32 %v2743_v54, %v1711_v55  ;;  %v2443_v0 = vpack.c.bf16 %v1730_v61, %v1730_v61  ;;  %v2409_v55 = vld [vmem:[%s3362_s21] ss:$0 sm:$0xff] }
 0xa1a   : > { %v2582_v23 = vpop.f32.mrf.mxu1 }
 0xa1b   : > { %v2441_v62 = vpack.c.bf16 %v1728_v56, %v1728_v56 }
 0xa1c   : > { %v1714_v15 = vpop.f32.mrf.mxu1 }
 0xa1d   : > { %v1729_v28 = vmul.f32 %v2747_v63, %v1714_v15  ;;  %1741 = vrot.lane.b32.xlu0 %v2441_v62, %s2816_s3 }
 0xa1f   : > { %v2442_v1 = vpack.c.bf16 %v1729_v28, %v1729_v28 }
 0xa21   : > { %1743 = vrot.lane.b32.xlu1 %v2442_v1, %s2816_s3  ;;  %1745 = vrot.lane.b32.xlu0 %v2443_v0, %s2816_s3  ;;  %v2690_v1 = vld [vmem:[%s2995_s26 + $0x18] sm:$0xff]  }
 0xa22   : > { %2599 = vmatprep.subr.bf16.mxu1 %v2690_v1 }
 0xa8f   : > { %v1742_v2 = vpop.permute.xlu0 %1741 }
 0xa90   : > { %1751 = vst.msk [vmem:[#allocation3] sm:$0xf] %vm1750_vm6, %v1742_v2  ;;  %v2691_v2 = vld [vmem:[%s2995_s26 + $0x10] sm:$0xff]  }
 0xa93   : > { %v1744_v49 = vpop.permute.xlu1 %1743  ;;  %v1746_v3 = vpop.permute.xlu0 %1745 }
 0xa94   : > { %1752 = vst.msk [vmem:[#allocation3 + $0x4] sm:$0xf] %vm1750_vm6, %v1744_v49  ;;  %v1756_v4 = vsel %vm1754_vm8, %v1746_v3, %v1755_v47  ;;  %v2692_v49 = vld [vmem:[%s2995_s26 + $0x8] sm:$0xff]   ;;  %v2693_v47 = vld [vmem:[%s2995_s26] sm:$0xff]  }
 0xa95   : > { %1757 = vst [vmem:[#allocation3 + $0x8] sm:$0x1] %v1756_v4  ;;  %v2410_v3 = vld [vmem:[%s3363_s6] ss:$0 sm:$0xff] }
 0xa9b   : > { %v2686_v50 = vld [vmem:[#allocation3] sm:$0xff]  }
 0xa9c   : > { %v2687_v5 = vld [vmem:[#allocation3 + $0x8] ss:$0 sps:$4 sm:$0x11]   ;;  %2587 = vmatprep.mubr.msk.bf16.mxu1 %vm843_vm4, %v2686_v50 }
 0xa9d   : > { %2588 = vmatmul.mubr.msk.bf16.vlgmr.msra.gmra.mxu1 %vm843_vm4, %v2687_v5 }
 0xa9e   : > { %2600 = vmatpush3.bf16.msra.mxu1 %v2690_v1 }
 0xa9f   : > { %2601 = vmatprep.subr.bf16.mxu1 %v2691_v2 }
 0xaa2   : > { %2602 = vmatpush3.bf16.msra.mxu1 %v2691_v2 }
 0xaa3   : > { %2603 = vmatprep.subr.bf16.mxu1 %v2692_v49 }
 0xaa6   : > { %2604 = vmatpush3.bf16.msra.mxu1 %v2692_v49 }
 0xaa7   : > { %2605 = vmatprep.subr.bf16.mxu1 %v2693_v47 }
 0xaaa   : > { %2606 = vmatpush3.bf16.msra.mxu1 %v2693_v47 }
 0xb5d   : > { %v2589_v6 = vpop.f32.mrf.mxu1 }
 0xb5e   : > { %v1841_v35 = vadd.f32 %v2589_v6, %v2401_v8 }
 0xb5f   : > { %v1832_v9 = vpop.f32.mrf.mxu1 }
 0xb60   : > { %v1833_v12 = vadd.f32 %v2401_v8, %v1832_v9  ;;  %v3240_v10 = vadd.f32 %v1841_v35, %v3032_v20 }
 0xb61   : > { %v2590_v16 = vpop.f32.mrf.mxu1 }
 0xb62   : > { %v3232_v17 = vadd.f32 %v1833_v12, %v3030_v19  ;;  %v1857_v19 = vsel %vm850_vm5, %v3240_v10, 0.0 }
 0xb63   : > { %v1835_v18 = vpop.f32.mrf.mxu1 }
 0xb64   : > { %v1836_v22 = vadd.f32 %v2401_v8, %v1835_v18  ;;  %v1851_v27 = vsel %vm843_vm4, %v3232_v17, 0.0 }
 0xb65   : > { %1852 = vadd.xlane.f32.xlu1 %v1851_v27 }
 0xb66   : > { %v3237_v29 = vadd.f32 %v1836_v22, %v3034_v21 }
 0xb68   : > { %v1854_v30 = vsel %vm843_vm4, %v3237_v29, 0.0 }
 0xb69   : > { %1855 = vadd.xlane.f32.xlu0 %v1854_v30 }
 0xb6d   : > { %1858 = vadd.xlane.f32.xlu0 %v1857_v19 }
 0xbee   : > { %v1853_v31 = vpop.xlane.xlu1 %1852 }
 0xbef   : > { %v1860_v32 = vmul.f32 0.03125, %v1853_v31 }
 0xbf1   : > { %v1863_v36 = vsub.f32 %v3232_v17, %v1860_v32 }
 0xbf2   : > { %v1856_v33 = vpop.xlane.xlu0 %1855 }
 0xbf3   : > { %v1861_v21 = vmul.f32 0.03125, %v1856_v33  ;;  %v1866_v38 = vmul.f32 %v1863_v36, %v1863_v36 }
 0xbf5   : > { %v1864_v20 = vsub.f32 %v3237_v29, %v1861_v21  ;;  %v1869_v11 = vsel %vm843_vm4, %v1866_v38, 0.0 }
 0xbf6   : > { %v1859_v34 = vpop.xlane.xlu0 %1858  ;;  %1870 = vadd.xlane.f32.xlu0 %v1869_v11 }
 0xbf7   : > { %v1862_v37 = vmul.f32 0.03125, %v1859_v34  ;;  %v1867_v13 = vmul.f32 %v1864_v20, %v1864_v20 }
 0xbf9   : > { %v1865_v7 = vsub.f32 %v3240_v10, %v1862_v37  ;;  %v1872_v14 = vsel %vm843_vm4, %v1867_v13, 0.0 }
 0xbfa   : > { %1873 = vadd.xlane.f32.xlu1 %v1872_v14 }
 0xbfb   : > { %v1868_v24 = vmul.f32 %v1865_v7, %v1865_v7 }
 0xbfd   : > { %v1875_v39 = vsel %vm850_vm5, %v1868_v24, 0.0 }
 0xbfe   : > { %1876 = vadd.xlane.f32.xlu0 %v1875_v39 }
 0xc7f   : > { %v1871_v26 = vpop.xlane.xlu0 %1870 }
 0xc80   : > { %v1878_v57 = vmul.f32 0.03125, %v1871_v26 }
 0xc82   : > { %v1881_v42 = vadd.f32 1e-06, %v1878_v57 }
 0xc83   : > { %v1874_v43 = vpop.xlane.xlu1 %1873 }
 0xc84   : > { %2748 = vrsqrt.f32 %v1881_v42  ;;  %v1879_v44 = vmul.f32 0.03125, %v1874_v43 }
 0xc86   : > { %v1882_v58 = vadd.f32 1e-06, %v1879_v44 }
 0xc87   : > { %v1877_v60 = vpop.xlane.xlu0 %1876 }
 0xc88   : > { %2750 = vrsqrt.f32 %v1882_v58  ;;  %v1880_v45 = vmul.f32 0.03125, %v1877_v60  ;;  %v2415_v58 = vld [vmem:[%s726_s23] ss:$0 sm:$0xff] }
 0xc8a   : > { %v1883_v25 = vadd.f32 1e-06, %v1880_v45 }
 0xc8c   : > { %2752 = vrsqrt.f32 %v1883_v25 }
 0xc91   : > { %v2749_v46 = vpop.eup %2748 }
 0xc92   : > { %v1887_v48 = vmul.f32 %v2749_v46, %v1863_v36 }
 0xc94   : > { %v1896_v54 = vmul.f32 %v2408_v51, %v1887_v48 }
 0xc95   : > { %v2751_v52 = vpop.eup %2750 }
 0xc96   : > { %v1888_v53 = vmul.f32 %v2751_v52, %v1864_v20  ;;  %v1905_v61 = vadd.f32 %v2409_v55, %v1896_v54 }
 0xc98   : > { %v1897_v56 = vmul.f32 %v2408_v51, %v1888_v53 }
 0xc99   : > { %v2753_v59 = vpop.eup %2752 }
 0xc9a   : > { %v1889_v23 = vmul.f32 %v2753_v59, %v1865_v7  ;;  %v1906_v62 = vadd.f32 %v2409_v55, %v1897_v56 }
 0xc9c   : > { %v1908_v63 = vpack.c.bf16 %v1906_v62, %v1905_v61  ;;  %v1898_v15 = vmul.f32 %v2408_v51, %v1889_v23  ;;  %v2134_v51 = vld [vmem:[%s3001_s12 + $0x8] sm:$0x1] }
 0xc9e   : > { %2595 = vmatprep.mubr.msk.bf16.mxu0 %vm843_vm4, %v1908_v63  ;;  %v1907_v28 = vadd.f32 %v2409_v55, %v1898_v15 }
 0xca0   : > { %v1909_v0 = vpack.c.bf16 %v1907_v28, %v1907_v28 }
 0xca2   : > { %2596 = vmatmul.mubr.msk.bf16.vlgmr.msra.gmra.mxu0 %vm843_vm4, %v1909_v0 }
 0xd62   : > { %v2597_v4 = vpop.f32.mrf.mxu0 }
 0xd63   : > { %v1982_v50 = vadd.f32 %v2597_v4, %v2410_v3 }
 0xd64   : > { %v1973_v5 = vpop.f32.mrf.mxu0 }
 0xd65   : > { %v1989_v6 = vmul.f32 %v1982_v50, %v1982_v50  ;;  %v1974_v8 = vadd.f32 %v2410_v3, %v1973_v5 }
 0xd66   : > { %v2598_v9 = vpop.f32.mrf.mxu0 }
 0xd67   : > { %v1992_v12 = vmul.f32 %v1989_v6, %v1982_v50  ;;  %v1987_v16 = vmul.f32 %v1974_v8, %v1974_v8 }
 0xd68   : > { %v1976_v18 = vpop.f32.mrf.mxu0 }
 0xd69   : > { %v1995_v35 = vmul.f32 0.044715, %v1992_v12  ;;  %v1990_v22 = vmul.f32 %v1987_v16, %v1974_v8  ;;  %v1977_v27 = vadd.f32 %v2410_v3, %v1976_v18 }
 0xd6b   : > { %v1998_v30 = vadd.f32 %v1995_v35, %v1982_v50  ;;  %v1993_v19 = vmul.f32 0.044715, %v1990_v22  ;;  %v1988_v31 = vmul.f32 %v1977_v27, %v1977_v27 }
 0xd6d   : > { %v2001_v32 = vmul.f32 0.7978846, %v1998_v30  ;;  %v1996_v36 = vadd.f32 %v1993_v19, %v1974_v8  ;;  %v1991_v33 = vmul.f32 %v1988_v31, %v1977_v27 }
 0xd6f   : > { %2754 = vtanh.f32 %v2001_v32  ;;  %v1999_v21 = vmul.f32 0.7978846, %v1996_v36  ;;  %v1994_v38 = vmul.f32 0.044715, %v1991_v33 }
 0xd71   : > { %2756 = vtanh.f32 %v1999_v21  ;;  %v1997_v20 = vadd.f32 %v1994_v38, %v1977_v27 }
 0xd73   : > { %v2000_v11 = vmul.f32 0.7978846, %v1997_v20 }
 0xd75   : > { %2758 = vtanh.f32 %v2000_v11 }
 0xd7c   : > { %v2755_v34 = vpop.eup %2754 }
 0xd7d   : > { %v2007_v13 = vadd.f32 1.0, %v2755_v34 }
 0xd7e   : > { %v2757_v37 = vpop.eup %2756 }
 0xd7f   : > { %v2005_v7 = vadd.f32 1.0, %v2757_v37  ;;  %v2010_v24 = vmul.f32 0.5, %v2007_v13 }
 0xd81   : > { %v2008_v39 = vmul.f32 0.5, %v2005_v7  ;;  %v2013_v26 = vmul.f32 %v2010_v24, %v1982_v50 }
 0xd82   : > { %v2759_v14 = vpop.eup %2758 }
 0xd83   : > { %v2006_v40 = vadd.f32 1.0, %v2759_v14  ;;  %v2011_v57 = vmul.f32 %v2008_v39, %v1974_v8  ;;  %v2015_v44 = vpack.c.bf16 %v2013_v26, %v2013_v26 }
 0xd85   : > { %v2009_v41 = vmul.f32 0.5, %v2006_v40 }
 0xd87   : > { %v2012_v42 = vmul.f32 %v2009_v41, %v1977_v27 }
 0xd89   : > { %v2014_v43 = vpack.c.bf16 %v2012_v42, %v2011_v57 }
 0xd8b   : > { %2607 = vmatprep.mubr.msk.bf16.mxu1 %vm2055_vm9, %v2014_v43 }
 0xd8c   : > { %2608 = vmatmul.mubr.msk.bf16.vlgmr.msra.gmra.mxu1 %vm2055_vm9, %v2015_v44 }
 0xe4c   : > { %v2609_v60 = vpop.f32.mrf.mxu1 }
 0xe4d   : > { %v2105_v45 = vadd.f32 %v2609_v60, %v2415_v58 }
 0xe4e   : > { %v2096_v25 = vpop.f32.mrf.mxu1 }
 0xe4f   : > { %v2112_v46 = vadd.f32 %v2105_v45, %v3240_v10  ;;  %v2097_v48 = vadd.f32 %v2415_v58, %v2096_v25 }
 0xe50   : > { %v2610_v52 = vpop.f32.mrf.mxu1 }
 0xe51   : > { %2115 = vst.msk [vmem:[#allocation2 + $0x10] sm:$0x1] %vm850_vm5, %v2112_v46  ;;  %v2446_v53 = vpack.c.bf16 %v2112_v46, %v2112_v46  ;;  %v2110_v54 = vadd.f32 %v2097_v48, %v3232_v17 }
 0xe52   : > { %v2099_v55 = vpop.f32.mrf.mxu1 }
 0xe53   : > { %v2135_v56 = vsel %vm2133_vm10, %v2446_v53, %v2134_v51  ;;  %2113 = vst.msk [vmem:[#allocation2] sm:$0xff] %vm843_vm4, %v2110_v54  ;;  %v2444_v59 = vpack.c.bf16 %v2110_v54, %v2110_v54  ;;  %v2100_v23 = vadd.f32 %v2415_v58, %v2099_v55 }
 0xe54   : > { %2136 = vst [vmem:[%s3001_s12 + $0x8] sm:$0x1] %v2135_v56 }
 0xe55   : > { %2130 = vst.msk [vmem:[%s3001_s12] sm:$0xf] %vm2129_vm12, %v2444_v59  ;;  %v2111_v10 = vadd.f32 %v2100_v23, %v3237_v29 }
 0xe57   : > { %2114 = vst.msk [vmem:[#allocation2 + $0x8] sm:$0xff] %vm843_vm4, %v2111_v10  ;;  %v2445_v61 = vpack.c.bf16 %v2111_v10, %v2111_v10 }
 0xe59   : > { %2131 = vst.msk [vmem:[%s3001_s12 + $0x4] sm:$0xf] %vm2129_vm12, %v2445_v61 }
 0xe5a PF: > { %s3364_s28 = sld [smem:[#allocation7_spill]] }
 0xe5b   : > { %s3365_s21 = sld [smem:[#allocation5_spill]] }
 0xe5c   : > { %s3366_s22 = sld [smem:[#allocation6_spill]] }
 0xe5d   : > { %s3367_s23 = sld [smem:[#allocation8_spill]] }
 0xe5e   : > { %s3368_s24 = sld [smem:[#allocation9_spill]] }
 0xe60   : > { %s26_s25 = sadd.s32 1, %s3364_s28  }
 0xe61   : > { %p23_p8 = scmp.ge.s32.totalorder %s26_s25, 10  }
 0xe63   :  { %25 = sbr.rel (!%p23_p8) target bundleno = 10 (0xa), region = 154 }

</bundles_post_ra>
